<compile_context>
chip_gen: v7x
topology: tpu7x:2x2x1
jax: 0.10.0
libtpu: 0.0.40
codegen_flags: <defaults>
</compile_context>

<pallas_src>
import functools
import math

import jax
import jax.numpy as jnp
from jax.experimental import pallas as pl
from jax.experimental.pallas import tpu as pltpu


# --------------------------------------------------------------------------
# math helpers (pure jnp -> used both inside the kernel and in the reference)
# --------------------------------------------------------------------------
def _bf16_dot(a, b):
    """a @ b with bf16 operands and f32 MXU accumulation."""
    return jnp.dot(a.astype(jnp.bfloat16), b.astype(jnp.bfloat16),
                   preferred_element_type=jnp.float32)


def _bf16_dot_nt(a, b):
    """a @ b.T (bf16 operands, f32 accumulation) without materializing b.T."""
    return jax.lax.dot_general(
        a.astype(jnp.bfloat16), b.astype(jnp.bfloat16),
        (((1,), (1,)), ((), ())), preferred_element_type=jnp.float32)


def _layernorm(z, g, b, eps, d):
    # matches torch: mean / std (unbiased, ddof=1) along last dim,
    # a_2 * (x - mean) / (std + eps) + b_2            (all f32)
    mean = jnp.mean(z, axis=-1, keepdims=True)
    var = jnp.sum((z - mean) ** 2, axis=-1, keepdims=True) / (d - 1)
    std = jnp.sqrt(var)
    return g * (z - mean) / (std + eps) + b


def _attn_heads(q, k, v, bias, h, dk):
    """Per-head scaled-dot-product attention for one batch element.

    q: (T, D), k/v: (S, D) (already projected, f32); bias: (T, S) additive mask.
    Returns list of h arrays of shape (T, dk), f32.
    """
    scale = 1.0 / math.sqrt(dk)
    heads = []
    for hi in range(h):
        cs = slice(hi * dk, (hi + 1) * dk)
        s = _bf16_dot_nt(q[:, cs], k[:, cs]) * scale + bias
        p = jax.nn.softmax(s, axis=-1)                     # f32 softmax
        heads.append(_bf16_dot(p, v[:, cs]))
    return heads


# --------------------------------------------------------------------------
# Pallas kernel: Bb batch elements of a full DecoderLayer per grid step
# --------------------------------------------------------------------------
def decoder_layer_kernel(x_ref, mem_ref, tmask_ref, smask_ref,
                         ln_g_ref, ln_b_ref,
                         sa_wqkv_ref, sa_bqkv_ref, sa_wo_ref, sa_bo_ref,
                         ca_wq_ref, ca_bq_ref, ca_wkv_ref, ca_bkv_ref,
                         ca_wo_ref, ca_bo_ref,
                         w1_ref, b1_ref, w2_ref, b2_ref,
                         out_ref, ctx_ref,
                         *, h, dk, d, bb, t, s, eps):
    x = x_ref[...]            # (Bb*T, D) f32 -- residual stream stays f32
    mem = mem_ref[...]        # (Bb*S, D) f32

    # -- sublayer 0: x + dropout(self_attn(norm(x), norm(x), norm(x), tgt_mask))
    # TODO(synk): dropout is identity here (eval mode / p=0).
    n0 = _layernorm(x, ln_g_ref[0:1, :], ln_b_ref[0:1, :], eps, d)
    qkv = _bf16_dot(n0, sa_wqkv_ref[...]) + sa_bqkv_ref[...]       # (Bb*T, 3D)
    for bi in range(bb):
        r = slice(bi * t, (bi + 1) * t)
        bias = jnp.where(tmask_ref[bi] == 0.0, -1e9, 0.0)          # hoisted out of head loop
        heads = _attn_heads(qkv[r, 0:d], qkv[r, d:2 * d], qkv[r, 2 * d:3 * d],
                            bias, h, dk)
        for hi in range(h):
            ctx_ref[r, hi * dk:(hi + 1) * dk] = heads[hi]
    x = x + _bf16_dot(ctx_ref[...], sa_wo_ref[...]) + sa_bo_ref[...]

    # -- sublayer 1: x + dropout(src_attn(norm(x), m, m, src_mask))
    n1 = _layernorm(x, ln_g_ref[1:2, :], ln_b_ref[1:2, :], eps, d)
    q = _bf16_dot(n1, ca_wq_ref[...]) + ca_bq_ref[...]             # (Bb*T, D)
    kv = _bf16_dot(mem, ca_wkv_ref[...]) + ca_bkv_ref[...]         # (Bb*S, 2D)
    for bi in range(bb):
        rq = slice(bi * t, (bi + 1) * t)
        rk = slice(bi * s, (bi + 1) * s)
        bias = jnp.where(smask_ref[bi] == 0.0, -1e9, 0.0)
        heads = _attn_heads(q[rq], kv[rk, 0:d], kv[rk, d:2 * d], bias, h, dk)
        for hi in range(h):
            ctx_ref[rq, hi * dk:(hi + 1) * dk] = heads[hi]
    x = x + _bf16_dot(ctx_ref[...], ca_wo_ref[...]) + ca_bo_ref[...]

    # -- sublayer 2: x + dropout(feed_forward(norm(x)))
    n2 = _layernorm(x, ln_g_ref[2:3, :], ln_b_ref[2:3, :], eps, d)
    hid = jnp.maximum(_bf16_dot(n2, w1_ref[...]) + b1_ref[...], 0.0)
    ff = _bf16_dot(hid, w2_ref[...]) + b2_ref[...]
    out_ref[...] = x + ff


def decoder_layer(x, memory, src_mask, tgt_mask, params, *, h, eps=1e-6,
                  block_b=None):
    B, T, D = x.shape
    S = memory.shape[1]
    dk = D // h
    Dff = params["w1"].shape[1]
    bf16 = jnp.bfloat16

    # Fold enough batch elements per grid step that the matmul M-dim (Bb*T rows)
    # approaches the MXU height.
    if block_b is None:
        block_b = max(1, min(B, max(1, 256 // max(T, 1))))
    while B % block_b:
        block_b -= 1
    Bb = block_b
    M = Bb * T

    # ---- repack / cast weights in the wrapper (fused QKV / KV, bf16) -------
    sa_w, sa_b = params["sa_w"], params["sa_b"]        # (4,D,D), (4,D): q,k,v,o
    ca_w, ca_b = params["ca_w"], params["ca_b"]
    sa_wqkv = jnp.concatenate([sa_w[0], sa_w[1], sa_w[2]], axis=1).astype(bf16)
    sa_bqkv = jnp.concatenate([sa_b[0], sa_b[1], sa_b[2]])[None, :]
    sa_wo, sa_bo = sa_w[3].astype(bf16), sa_b[3][None, :]
    ca_wq, ca_bq = ca_w[0].astype(bf16), ca_b[0][None, :]
    ca_wkv = jnp.concatenate([ca_w[1], ca_w[2]], axis=1).astype(bf16)
    ca_bkv = jnp.concatenate([ca_b[1], ca_b[2]])[None, :]
    ca_wo, ca_bo = ca_w[3].astype(bf16), ca_b[3][None, :]
    w1, b1 = params["w1"].astype(bf16), params["b1"]
    w2, b2 = params["w2"].astype(bf16), params["b2"]

    # Flatten activations to row-major (B*T, D)/(B*S, D): the kernel sees dense
    # row tiles (lane-dense output stores at realistic D).
    x2 = x.reshape(B * T, D)
    mem2 = memory.reshape(B * S, D)

    kernel = functools.partial(decoder_layer_kernel, h=h, dk=dk, d=D,
                               bb=Bb, t=T, s=S, eps=eps)

    def full(shape):
        return pl.BlockSpec(shape, lambda *_: (0,) * len(shape))

    grid_spec = pltpu.PrefetchScalarGridSpec(
        num_scalar_prefetch=0,
        grid=(B // Bb,),
        in_specs=[
            pl.BlockSpec((M, D), lambda i: (i, 0)),         # x rows
            pl.BlockSpec((Bb * S, D), lambda i: (i, 0)),    # memory rows
            pl.BlockSpec((Bb, T, T), lambda i: (i, 0, 0)),  # tgt_mask
            pl.BlockSpec((Bb, T, S), lambda i: (i, 0, 0)),  # src_mask
            full((3, D)), full((3, D)),                     # layernorm gamma/beta
            full((D, 3 * D)), full((1, 3 * D)),             # self-attn fused QKV
            full((D, D)), full((1, D)),                     # self-attn out proj
            full((D, D)), full((1, D)),                     # cross-attn Q proj
            full((D, 2 * D)), full((1, 2 * D)),             # cross-attn fused KV
            full((D, D)), full((1, D)),                     # cross-attn out proj
            full((D, Dff)), full((1, Dff)),                 # FFN w1/b1
            full((Dff, D)), full((1, D)),                   # FFN w2/b2
        ],
        out_specs=pl.BlockSpec((M, D), lambda i: (i, 0)),
        scratch_shapes=[pltpu.VMEM((M, D), jnp.float32)],   # stacked heads ctx
    )

    out = pl.pallas_call(
        kernel,
        out_shape=jax.ShapeDtypeStruct((B * T, D), jnp.float32),
        grid_spec=grid_spec,
        compiler_params=pltpu.CompilerParams(
            dimension_semantics=("parallel",),              # batch blocks independent
            vmem_limit_bytes=48 * 1024 * 1024),
    )(x2, mem2, tgt_mask, src_mask,
      params["ln_g"], params["ln_b"],
      sa_wqkv, sa_bqkv, sa_wo, sa_bo,
      ca_wq, ca_bq, ca_wkv, ca_bkv, ca_wo, ca_bo,
      w1, b1, w2, b2)
    return out.reshape(B, T, D)


# --------------------------------------------------------------------------
# pure-JAX reference (same math / same bf16 casting discipline, no Pallas)
# --------------------------------------------------------------------------
def ref_decoder_layer(x, memory, src_mask, tgt_mask, p, *, h, eps=1e-6):
    D = x.shape[-1]
    dk = D // h

    def mha(q_in, kv_in, mask, w, b):
        q = _bf16_dot(q_in, w[0]) + b[0]
        k = _bf16_dot(kv_in, w[1]) + b[1]
        v = _bf16_dot(kv_in, w[2]) + b[2]
        bias = jnp.where(mask == 0.0, -1e9, 0.0)
        ctx = jnp.concatenate(_attn_heads(q, k, v, bias, h, dk), axis=-1)
        return _bf16_dot(ctx, w[3]) + b[3]

    def one(xb, mb, sm, tm):
        n0 = _layernorm(xb, p["ln_g"][0], p["ln_b"][0], eps, D)
        xb = xb + mha(n0, n0, tm, p["sa_w"], p["sa_b"])
        n1 = _layernorm(xb, p["ln_g"][1], p["ln_b"][1], eps, D)
        xb = xb + mha(n1, mb, sm, p["ca_w"], p["ca_b"])
        n2 = _layernorm(xb, p["ln_g"][2], p["ln_b"][2], eps, D)
        hid = jnp.maximum(_bf16_dot(n2, p["w1"]) + p["b1"][0], 0.0)
        return xb + _bf16_dot(hid, p["w2"]) + p["b2"][0]

    return jax.vmap(one)(x, memory, src_mask, tgt_mask)


# --------------------------------------------------------------------------
if __name__ == "__main__":
    B, T, S, D, H, DFF = 2, 8, 16, 32, 4, 64

    key = jax.random.PRNGKey(0)
    ks = jax.random.split(key, 12)

    x = jax.random.normal(ks[0], (B, T, D), jnp.float32)
    memory = jax.random.normal(ks[1], (B, S, D), jnp.float32)

    # masks: tgt = causal mask, src = last 4 memory slots padded on batch 1
    tgt_mask = jnp.broadcast_to(
        jnp.tril(jnp.ones((T, T), jnp.float32)), (B, T, T))
    src_mask = jnp.ones((B, T, S), jnp.float32)
    src_mask = src_mask.at[1, :, S - 4:].set(0.0)

    params = {
        "ln_g": 1.0 + 0.05 * jax.random.normal(ks[2], (3, D), jnp.float32),
        "ln_b": 0.05 * jax.random.normal(ks[3], (3, D), jnp.float32),
        "sa_w": 0.1 * jax.random.normal(ks[4], (4, D, D), jnp.float32),
        "sa_b": 0.05 * jax.random.normal(ks[5], (4, D), jnp.float32),
        "ca_w": 0.1 * jax.random.normal(ks[6], (4, D, D), jnp.float32),
        "ca_b": 0.05 * jax.random.normal(ks[7], (4, D), jnp.float32),
        "w1": 0.1 * jax.random.normal(ks[8], (D, DFF), jnp.float32),
        "b1": 0.05 * jax.random.normal(ks[9], (1, DFF), jnp.float32),
        "w2": 0.1 * jax.random.normal(ks[10], (DFF, D), jnp.float32),
        "b2": 0.05 * jax.random.normal(ks[11], (1, D), jnp.float32),
    }

    out = decoder_layer(x, memory, src_mask, tgt_mask, params, h=H)
    out = jax.block_until_ready(out)

    ref = ref_decoder_layer(x, memory, src_mask, tgt_mask, params, h=H)
    assert out.shape == (B, T, D)
    err = float(jnp.max(jnp.abs(out - ref)))
    assert jnp.allclose(out, ref, rtol=2e-3, atol=2e-3), err

    print("KERNEL_OK")
</pallas_src>

<mosaic_0001>
module attributes {stable_mosaic.version = 11 : i64} {
  func.func @decoder_layer_kernel(%arg0: i32, %arg1: memref<16x32xf32, #tpu.memory_space<vmem>>, %arg2: memref<32x32xf32, #tpu.memory_space<vmem>>, %arg3: memref<2x8x8xf32, #tpu.memory_space<vmem>>, %arg4: memref<2x8x16xf32, #tpu.memory_space<vmem>>, %arg5: memref<3x32xf32, #tpu.memory_space<vmem>>, %arg6: memref<3x32xf32, #tpu.memory_space<vmem>>, %arg7: memref<32x96xbf16, #tpu.memory_space<vmem>>, %arg8: memref<1x96xf32, #tpu.memory_space<vmem>>, %arg9: memref<32x32xbf16, #tpu.memory_space<vmem>>, %arg10: memref<1x32xf32, #tpu.memory_space<vmem>>, %arg11: memref<32x32xbf16, #tpu.memory_space<vmem>>, %arg12: memref<1x32xf32, #tpu.memory_space<vmem>>, %arg13: memref<32x64xbf16, #tpu.memory_space<vmem>>, %arg14: memref<1x64xf32, #tpu.memory_space<vmem>>, %arg15: memref<32x32xbf16, #tpu.memory_space<vmem>>, %arg16: memref<1x32xf32, #tpu.memory_space<vmem>>, %arg17: memref<32x64xbf16, #tpu.memory_space<vmem>>, %arg18: memref<1x64xf32, #tpu.memory_space<vmem>>, %arg19: memref<64x32xbf16, #tpu.memory_space<vmem>>, %arg20: memref<1x32xf32, #tpu.memory_space<vmem>>, %arg21: memref<16x32xf32, #tpu.memory_space<vmem>>, %arg22: memref<16x32xf32, #tpu.memory_space<vmem>>) attributes {dimension_semantics = [#tpu.dimension_semantics<parallel>], iteration_bounds = array<i64: 1>, scalar_prefetch = 0 : i64, scratch_operands = 1 : i64, tpu.core_type = #tpu.core_type<tc>, window_params = [{transform_indices = @transform_0, window_bounds = array<i64: 16, 32>}, {transform_indices = @transform_1, window_bounds = array<i64: 32, 32>}, {transform_indices = @transform_2, window_bounds = array<i64: 2, 8, 8>}, {transform_indices = @transform_3, window_bounds = array<i64: 2, 8, 16>}, {pipeline_mode = #tpu.pipeline_mode<synchronous>, transform_indices = @transform_4, window_bounds = array<i64: 3, 32>}, {pipeline_mode = #tpu.pipeline_mode<synchronous>, transform_indices = @transform_5, window_bounds = array<i64: 3, 32>}, {pipeline_mode = #tpu.pipeline_mode<synchronous>, transform_indices = @transform_6, window_bounds = array<i64: 32, 96>}, {pipeline_mode = #tpu.pipeline_mode<synchronous>, transform_indices = @transform_7, window_bounds = array<i64: 1, 96>}, {pipeline_mode = #tpu.pipeline_mode<synchronous>, transform_indices = @transform_8, window_bounds = array<i64: 32, 32>}, {pipeline_mode = #tpu.pipeline_mode<synchronous>, transform_indices = @transform_9, window_bounds = array<i64: 1, 32>}, {pipeline_mode = #tpu.pipeline_mode<synchronous>, transform_indices = @transform_10, window_bounds = array<i64: 32, 32>}, {pipeline_mode = #tpu.pipeline_mode<synchronous>, transform_indices = @transform_11, window_bounds = array<i64: 1, 32>}, {pipeline_mode = #tpu.pipeline_mode<synchronous>, transform_indices = @transform_12, window_bounds = array<i64: 32, 64>}, {pipeline_mode = #tpu.pipeline_mode<synchronous>, transform_indices = @transform_13, window_bounds = array<i64: 1, 64>}, {pipeline_mode = #tpu.pipeline_mode<synchronous>, transform_indices = @transform_14, window_bounds = array<i64: 32, 32>}, {pipeline_mode = #tpu.pipeline_mode<synchronous>, transform_indices = @transform_15, window_bounds = array<i64: 1, 32>}, {pipeline_mode = #tpu.pipeline_mode<synchronous>, transform_indices = @transform_16, window_bounds = array<i64: 32, 64>}, {pipeline_mode = #tpu.pipeline_mode<synchronous>, transform_indices = @transform_17, window_bounds = array<i64: 1, 64>}, {pipeline_mode = #tpu.pipeline_mode<synchronous>, transform_indices = @transform_18, window_bounds = array<i64: 64, 32>}, {pipeline_mode = #tpu.pipeline_mode<synchronous>, transform_indices = @transform_19, window_bounds = array<i64: 1, 32>}, {transform_indices = @transform_20, window_bounds = array<i64: 16, 32>}]} {
    %c0 = arith.constant 0 : index
    %c0_0 = arith.constant 0 : index
    %0 = vector.load %arg1[%c0, %c0_0] : memref<16x32xf32, #tpu.memory_space<vmem>>, vector<16x32xf32>
    %c0_1 = arith.constant 0 : index
    %c0_2 = arith.constant 0 : index
    %1 = vector.load %arg2[%c0_1, %c0_2] : memref<32x32xf32, #tpu.memory_space<vmem>>, vector<32x32xf32>
    %c0_3 = arith.constant 0 : index
    %c0_4 = arith.constant 0 : index
    %2 = vector.load %arg5[%c0_3, %c0_4] : memref<3x32xf32, #tpu.memory_space<vmem>>, vector<1x32xf32>
    %c0_5 = arith.constant 0 : index
    %c0_6 = arith.constant 0 : index
    %3 = vector.load %arg6[%c0_5, %c0_6] : memref<3x32xf32, #tpu.memory_space<vmem>>, vector<1x32xf32>
    %cst = arith.constant dense<0.000000e+00> : vector<16xf32>
    %4 = vector.multi_reduction <add>, %0, %cst [1] : vector<16x32xf32> to vector<16xf32>
    %5 = vector.shape_cast %4 : vector<16xf32> to vector<16x1xf32>
    %cst_7 = arith.constant 3.200000e+01 : f32
    %6 = vector.broadcast %cst_7 : f32 to vector<16x1xf32>
    %7 = arith.divf %5, %6 : vector<16x1xf32>
    %8 = vector.broadcast %7 : vector<16x1xf32> to vector<16x32xf32>
    %9 = arith.subf %0, %8 : vector<16x32xf32>
    %10 = arith.mulf %9, %9 : vector<16x32xf32>
    %cst_8 = arith.constant dense<0.000000e+00> : vector<16xf32>
    %11 = vector.multi_reduction <add>, %10, %cst_8 [1] : vector<16x32xf32> to vector<16xf32>
    %12 = vector.shape_cast %11 : vector<16xf32> to vector<16x1xf32>
    %cst_9 = arith.constant 3.100000e+01 : f32
    %13 = vector.broadcast %cst_9 : f32 to vector<16x1xf32>
    %14 = arith.divf %12, %13 : vector<16x1xf32>
    %15 = math.sqrt %14 : vector<16x1xf32>
    %16 = vector.broadcast %7 : vector<16x1xf32> to vector<16x32xf32>
    %17 = arith.subf %0, %16 : vector<16x32xf32>
    %18 = vector.broadcast %2 : vector<1x32xf32> to vector<16x32xf32>
    %19 = arith.mulf %18, %17 : vector<16x32xf32>
    %cst_10 = arith.constant 9.99999997E-7 : f32
    %20 = vector.broadcast %cst_10 : f32 to vector<16x1xf32>
    %21 = arith.addf %15, %20 : vector<16x1xf32>
    %22 = vector.broadcast %21 : vector<16x1xf32> to vector<16x32xf32>
    %23 = arith.divf %19, %22 : vector<16x32xf32>
    %24 = vector.broadcast %3 : vector<1x32xf32> to vector<16x32xf32>
    %25 = arith.addf %23, %24 : vector<16x32xf32>
    %c0_11 = arith.constant 0 : index
    %c0_12 = arith.constant 0 : index
    %26 = vector.load %arg7[%c0_11, %c0_12] : memref<32x96xbf16, #tpu.memory_space<vmem>>, vector<32x96xbf16>
    %27 = arith.truncf %25 : vector<16x32xf32> to vector<16x32xbf16>
    %cst_13 = arith.constant dense<0.000000e+00> : vector<16x96xf32>
    %28 = tpu.matmul %27, %26, %cst_13 {dimension_numbers = #tpu.dot_dimension_numbers<[1], [0], [0], [1], [0, 0, 1, 1], [], []>} : vector<16x32xbf16>, vector<32x96xbf16>, vector<16x96xf32> -> vector<16x96xf32>
    %c0_14 = arith.constant 0 : index
    %c0_15 = arith.constant 0 : index
    %29 = vector.load %arg8[%c0_14, %c0_15] : memref<1x96xf32, #tpu.memory_space<vmem>>, vector<1x96xf32>
    %30 = vector.broadcast %29 : vector<1x96xf32> to vector<16x96xf32>
    %31 = arith.addf %28, %30 : vector<16x96xf32>
    %c0_16 = arith.constant 0 : index
    %c0_17 = arith.constant 0 : index
    %c0_18 = arith.constant 0 : index
    %32 = vector.load %arg3[%c0_16, %c0_17, %c0_18] : memref<2x8x8xf32, #tpu.memory_space<vmem>>, vector<1x8x8xf32>
    %33 = vector.shape_cast %32 : vector<1x8x8xf32> to vector<8x8xf32>
    %cst_19 = arith.constant 0.000000e+00 : f32
    %34 = vector.broadcast %cst_19 : f32 to vector<8x8xf32>
    %35 = arith.cmpf oeq, %33, %34 : vector<8x8xf32>
    %cst_20 = arith.constant -1.000000e+09 : f32
    %cst_21 = arith.constant 0.000000e+00 : f32
    %36 = vector.broadcast %cst_20 : f32 to vector<8x8xf32>
    %37 = vector.broadcast %cst_21 : f32 to vector<8x8xf32>
    %38 = arith.select %35, %36, %37 : vector<8x8xi1>, vector<8x8xf32>
    %39 = vector.extract_strided_slice %31 {offsets = [0, 0], sizes = [8, 32], strides = [1, 1]} : vector<16x96xf32> to vector<8x32xf32>
    %40 = vector.extract_strided_slice %31 {offsets = [0, 32], sizes = [8, 32], strides = [1, 1]} : vector<16x96xf32> to vector<8x32xf32>
    %41 = vector.extract_strided_slice %31 {offsets = [0, 64], sizes = [8, 32], strides = [1, 1]} : vector<16x96xf32> to vector<8x32xf32>
    %42 = vector.extract_strided_slice %39 {offsets = [0, 0], sizes = [8, 8], strides = [1, 1]} : vector<8x32xf32> to vector<8x8xf32>
    %43 = vector.extract_strided_slice %40 {offsets = [0, 0], sizes = [8, 8], strides = [1, 1]} : vector<8x32xf32> to vector<8x8xf32>
    %44 = arith.truncf %42 : vector<8x8xf32> to vector<8x8xbf16>
    %45 = arith.truncf %43 : vector<8x8xf32> to vector<8x8xbf16>
    %cst_22 = arith.constant dense<0.000000e+00> : vector<8x8xf32>
    %46 = tpu.matmul %44, %45, %cst_22 {dimension_numbers = #tpu.dot_dimension_numbers<[1], [1], [0], [0], [0, 0, 1, 0], [], []>} : vector<8x8xbf16>, vector<8x8xbf16>, vector<8x8xf32> -> vector<8x8xf32>
    %cst_23 = arith.constant 0.353553385 : f32
    %47 = vector.broadcast %cst_23 : f32 to vector<8x8xf32>
    %48 = arith.mulf %46, %47 : vector<8x8xf32>
    %49 = arith.addf %48, %38 : vector<8x8xf32>
    %cst_24 = arith.constant dense<0xFF800000> : vector<8xf32>
    %50 = vector.multi_reduction <maximumf>, %49, %cst_24 [1] : vector<8x8xf32> to vector<8xf32>
    %cst_25 = arith.constant 0xFF800000 : f32
    %51 = vector.broadcast %cst_25 : f32 to vector<8xf32>
    %52 = arith.maximumf %51, %50 : vector<8xf32>
    %53 = vector.shape_cast %52 : vector<8xf32> to vector<8x1xf32>
    %54 = vector.broadcast %53 : vector<8x1xf32> to vector<8x8xf32>
    %55 = arith.subf %49, %54 : vector<8x8xf32>
    %56 = math.exp %55 : vector<8x8xf32>
    %cst_26 = arith.constant dense<0.000000e+00> : vector<8xf32>
    %57 = vector.multi_reduction <add>, %56, %cst_26 [1] : vector<8x8xf32> to vector<8xf32>
    %58 = vector.shape_cast %57 : vector<8xf32> to vector<8x1xf32>
    %59 = vector.broadcast %58 : vector<8x1xf32> to vector<8x8xf32>
    %60 = arith.divf %56, %59 : vector<8x8xf32>
    %61 = vector.extract_strided_slice %41 {offsets = [0, 0], sizes = [8, 8], strides = [1, 1]} : vector<8x32xf32> to vector<8x8xf32>
    %62 = arith.truncf %60 : vector<8x8xf32> to vector<8x8xbf16>
    %63 = arith.truncf %61 : vector<8x8xf32> to vector<8x8xbf16>
    %cst_27 = arith.constant dense<0.000000e+00> : vector<8x8xf32>
    %64 = tpu.matmul %62, %63, %cst_27 {dimension_numbers = #tpu.dot_dimension_numbers<[1], [0], [0], [1], [0, 0, 1, 1], [], []>} : vector<8x8xbf16>, vector<8x8xbf16>, vector<8x8xf32> -> vector<8x8xf32>
    %65 = vector.extract_strided_slice %39 {offsets = [0, 8], sizes = [8, 8], strides = [1, 1]} : vector<8x32xf32> to vector<8x8xf32>
    %66 = vector.extract_strided_slice %40 {offsets = [0, 8], sizes = [8, 8], strides = [1, 1]} : vector<8x32xf32> to vector<8x8xf32>
    %67 = arith.truncf %65 : vector<8x8xf32> to vector<8x8xbf16>
    %68 = arith.truncf %66 : vector<8x8xf32> to vector<8x8xbf16>
    %cst_28 = arith.constant dense<0.000000e+00> : vector<8x8xf32>
    %69 = tpu.matmul %67, %68, %cst_28 {dimension_numbers = #tpu.dot_dimension_numbers<[1], [1], [0], [0], [0, 0, 1, 0], [], []>} : vector<8x8xbf16>, vector<8x8xbf16>, vector<8x8xf32> -> vector<8x8xf32>
    %cst_29 = arith.constant 0.353553385 : f32
    %70 = vector.broadcast %cst_29 : f32 to vector<8x8xf32>
    %71 = arith.mulf %69, %70 : vector<8x8xf32>
    %72 = arith.addf %71, %38 : vector<8x8xf32>
    %cst_30 = arith.constant dense<0xFF800000> : vector<8xf32>
    %73 = vector.multi_reduction <maximumf>, %72, %cst_30 [1] : vector<8x8xf32> to vector<8xf32>
    %cst_31 = arith.constant 0xFF800000 : f32
    %74 = vector.broadcast %cst_31 : f32 to vector<8xf32>
    %75 = arith.maximumf %74, %73 : vector<8xf32>
    %76 = vector.shape_cast %75 : vector<8xf32> to vector<8x1xf32>
    %77 = vector.broadcast %76 : vector<8x1xf32> to vector<8x8xf32>
    %78 = arith.subf %72, %77 : vector<8x8xf32>
    %79 = math.exp %78 : vector<8x8xf32>
    %cst_32 = arith.constant dense<0.000000e+00> : vector<8xf32>
    %80 = vector.multi_reduction <add>, %79, %cst_32 [1] : vector<8x8xf32> to vector<8xf32>
    %81 = vector.shape_cast %80 : vector<8xf32> to vector<8x1xf32>
    %82 = vector.broadcast %81 : vector<8x1xf32> to vector<8x8xf32>
    %83 = arith.divf %79, %82 : vector<8x8xf32>
    %84 = vector.extract_strided_slice %41 {offsets = [0, 8], sizes = [8, 8], strides = [1, 1]} : vector<8x32xf32> to vector<8x8xf32>
    %85 = arith.truncf %83 : vector<8x8xf32> to vector<8x8xbf16>
    %86 = arith.truncf %84 : vector<8x8xf32> to vector<8x8xbf16>
    %cst_33 = arith.constant dense<0.000000e+00> : vector<8x8xf32>
    %87 = tpu.matmul %85, %86, %cst_33 {dimension_numbers = #tpu.dot_dimension_numbers<[1], [0], [0], [1], [0, 0, 1, 1], [], []>} : vector<8x8xbf16>, vector<8x8xbf16>, vector<8x8xf32> -> vector<8x8xf32>
    %88 = vector.extract_strided_slice %39 {offsets = [0, 16], sizes = [8, 8], strides = [1, 1]} : vector<8x32xf32> to vector<8x8xf32>
    %89 = vector.extract_strided_slice %40 {offsets = [0, 16], sizes = [8, 8], strides = [1, 1]} : vector<8x32xf32> to vector<8x8xf32>
    %90 = arith.truncf %88 : vector<8x8xf32> to vector<8x8xbf16>
    %91 = arith.truncf %89 : vector<8x8xf32> to vector<8x8xbf16>
    %cst_34 = arith.constant dense<0.000000e+00> : vector<8x8xf32>
    %92 = tpu.matmul %90, %91, %cst_34 {dimension_numbers = #tpu.dot_dimension_numbers<[1], [1], [0], [0], [0, 0, 1, 0], [], []>} : vector<8x8xbf16>, vector<8x8xbf16>, vector<8x8xf32> -> vector<8x8xf32>
    %cst_35 = arith.constant 0.353553385 : f32
    %93 = vector.broadcast %cst_35 : f32 to vector<8x8xf32>
    %94 = arith.mulf %92, %93 : vector<8x8xf32>
    %95 = arith.addf %94, %38 : vector<8x8xf32>
    %cst_36 = arith.constant dense<0xFF800000> : vector<8xf32>
    %96 = vector.multi_reduction <maximumf>, %95, %cst_36 [1] : vector<8x8xf32> to vector<8xf32>
    %cst_37 = arith.constant 0xFF800000 : f32
    %97 = vector.broadcast %cst_37 : f32 to vector<8xf32>
    %98 = arith.maximumf %97, %96 : vector<8xf32>
    %99 = vector.shape_cast %98 : vector<8xf32> to vector<8x1xf32>
    %100 = vector.broadcast %99 : vector<8x1xf32> to vector<8x8xf32>
    %101 = arith.subf %95, %100 : vector<8x8xf32>
    %102 = math.exp %101 : vector<8x8xf32>
    %cst_38 = arith.constant dense<0.000000e+00> : vector<8xf32>
    %103 = vector.multi_reduction <add>, %102, %cst_38 [1] : vector<8x8xf32> to vector<8xf32>
    %104 = vector.shape_cast %103 : vector<8xf32> to vector<8x1xf32>
    %105 = vector.broadcast %104 : vector<8x1xf32> to vector<8x8xf32>
    %106 = arith.divf %102, %105 : vector<8x8xf32>
    %107 = vector.extract_strided_slice %41 {offsets = [0, 16], sizes = [8, 8], strides = [1, 1]} : vector<8x32xf32> to vector<8x8xf32>
    %108 = arith.truncf %106 : vector<8x8xf32> to vector<8x8xbf16>
    %109 = arith.truncf %107 : vector<8x8xf32> to vector<8x8xbf16>
    %cst_39 = arith.constant dense<0.000000e+00> : vector<8x8xf32>
    %110 = tpu.matmul %108, %109, %cst_39 {dimension_numbers = #tpu.dot_dimension_numbers<[1], [0], [0], [1], [0, 0, 1, 1], [], []>} : vector<8x8xbf16>, vector<8x8xbf16>, vector<8x8xf32> -> vector<8x8xf32>
    %111 = vector.extract_strided_slice %39 {offsets = [0, 24], sizes = [8, 8], strides = [1, 1]} : vector<8x32xf32> to vector<8x8xf32>
    %112 = vector.extract_strided_slice %40 {offsets = [0, 24], sizes = [8, 8], strides = [1, 1]} : vector<8x32xf32> to vector<8x8xf32>
    %113 = arith.truncf %111 : vector<8x8xf32> to vector<8x8xbf16>
    %114 = arith.truncf %112 : vector<8x8xf32> to vector<8x8xbf16>
    %cst_40 = arith.constant dense<0.000000e+00> : vector<8x8xf32>
    %115 = tpu.matmul %113, %114, %cst_40 {dimension_numbers = #tpu.dot_dimension_numbers<[1], [1], [0], [0], [0, 0, 1, 0], [], []>} : vector<8x8xbf16>, vector<8x8xbf16>, vector<8x8xf32> -> vector<8x8xf32>
    %cst_41 = arith.constant 0.353553385 : f32
    %116 = vector.broadcast %cst_41 : f32 to vector<8x8xf32>
    %117 = arith.mulf %115, %116 : vector<8x8xf32>
    %118 = arith.addf %117, %38 : vector<8x8xf32>
    %cst_42 = arith.constant dense<0xFF800000> : vector<8xf32>
    %119 = vector.multi_reduction <maximumf>, %118, %cst_42 [1] : vector<8x8xf32> to vector<8xf32>
    %cst_43 = arith.constant 0xFF800000 : f32
    %120 = vector.broadcast %cst_43 : f32 to vector<8xf32>
    %121 = arith.maximumf %120, %119 : vector<8xf32>
    %122 = vector.shape_cast %121 : vector<8xf32> to vector<8x1xf32>
    %123 = vector.broadcast %122 : vector<8x1xf32> to vector<8x8xf32>
    %124 = arith.subf %118, %123 : vector<8x8xf32>
    %125 = math.exp %124 : vector<8x8xf32>
    %cst_44 = arith.constant dense<0.000000e+00> : vector<8xf32>
    %126 = vector.multi_reduction <add>, %125, %cst_44 [1] : vector<8x8xf32> to vector<8xf32>
    %127 = vector.shape_cast %126 : vector<8xf32> to vector<8x1xf32>
    %128 = vector.broadcast %127 : vector<8x1xf32> to vector<8x8xf32>
    %129 = arith.divf %125, %128 : vector<8x8xf32>
    %130 = vector.extract_strided_slice %41 {offsets = [0, 24], sizes = [8, 8], strides = [1, 1]} : vector<8x32xf32> to vector<8x8xf32>
    %131 = arith.truncf %129 : vector<8x8xf32> to vector<8x8xbf16>
    %132 = arith.truncf %130 : vector<8x8xf32> to vector<8x8xbf16>
    %cst_45 = arith.constant dense<0.000000e+00> : vector<8x8xf32>
    %133 = tpu.matmul %131, %132, %cst_45 {dimension_numbers = #tpu.dot_dimension_numbers<[1], [0], [0], [1], [0, 0, 1, 1], [], []>} : vector<8x8xbf16>, vector<8x8xbf16>, vector<8x8xf32> -> vector<8x8xf32>
    %c0_46 = arith.constant 0 : index
    %c0_47 = arith.constant 0 : index
    %134 = vector.load %arg22[%c0_46, %c0_47] : memref<16x32xf32, #tpu.memory_space<vmem>>, vector<8x8xf32>
    tpu.vector_store %arg22[%c0_46, %c0_47], %64 {strides = array<i32>} : memref<16x32xf32, #tpu.memory_space<vmem>>, vector<8x8xf32>,
    %c0_48 = arith.constant 0 : index
    %c8 = arith.constant 8 : index
    %135 = vector.load %arg22[%c0_48, %c8] : memref<16x32xf32, #tpu.memory_space<vmem>>, vector<8x8xf32>
    tpu.vector_store %arg22[%c0_48, %c8], %87 {strides = array<i32>} : memref<16x32xf32, #tpu.memory_space<vmem>>, vector<8x8xf32>,
    %c0_49 = arith.constant 0 : index
    %c16 = arith.constant 16 : index
    %136 = vector.load %arg22[%c0_49, %c16] : memref<16x32xf32, #tpu.memory_space<vmem>>, vector<8x8xf32>
    tpu.vector_store %arg22[%c0_49, %c16], %110 {strides = array<i32>} : memref<16x32xf32, #tpu.memory_space<vmem>>, vector<8x8xf32>,
    %c0_50 = arith.constant 0 : index
    %c24 = arith.constant 24 : index
    %137 = vector.load %arg22[%c0_50, %c24] : memref<16x32xf32, #tpu.memory_space<vmem>>, vector<8x8xf32>
    tpu.vector_store %arg22[%c0_50, %c24], %133 {strides = array<i32>} : memref<16x32xf32, #tpu.memory_space<vmem>>, vector<8x8xf32>,
    %c1 = arith.constant 1 : index
    %c0_51 = arith.constant 0 : index
    %c0_52 = arith.constant 0 : index
    %138 = vector.load %arg3[%c1, %c0_51, %c0_52] : memref<2x8x8xf32, #tpu.memory_space<vmem>>, vector<1x8x8xf32>
    %139 = vector.shape_cast %138 : vector<1x8x8xf32> to vector<8x8xf32>
    %cst_53 = arith.constant 0.000000e+00 : f32
    %140 = vector.broadcast %cst_53 : f32 to vector<8x8xf32>
    %141 = arith.cmpf oeq, %139, %140 : vector<8x8xf32>
    %cst_54 = arith.constant -1.000000e+09 : f32
    %cst_55 = arith.constant 0.000000e+00 : f32
    %142 = vector.broadcast %cst_54 : f32 to vector<8x8xf32>
    %143 = vector.broadcast %cst_55 : f32 to vector<8x8xf32>
    %144 = arith.select %141, %142, %143 : vector<8x8xi1>, vector<8x8xf32>
    %145 = vector.extract_strided_slice %31 {offsets = [8, 0], sizes = [8, 32], strides = [1, 1]} : vector<16x96xf32> to vector<8x32xf32>
    %146 = vector.extract_strided_slice %31 {offsets = [8, 32], sizes = [8, 32], strides = [1, 1]} : vector<16x96xf32> to vector<8x32xf32>
    %147 = vector.extract_strided_slice %31 {offsets = [8, 64], sizes = [8, 32], strides = [1, 1]} : vector<16x96xf32> to vector<8x32xf32>
    %148 = vector.extract_strided_slice %145 {offsets = [0, 0], sizes = [8, 8], strides = [1, 1]} : vector<8x32xf32> to vector<8x8xf32>
    %149 = vector.extract_strided_slice %146 {offsets = [0, 0], sizes = [8, 8], strides = [1, 1]} : vector<8x32xf32> to vector<8x8xf32>
    %150 = arith.truncf %148 : vector<8x8xf32> to vector<8x8xbf16>
    %151 = arith.truncf %149 : vector<8x8xf32> to vector<8x8xbf16>
    %cst_56 = arith.constant dense<0.000000e+00> : vector<8x8xf32>
    %152 = tpu.matmul %150, %151, %cst_56 {dimension_numbers = #tpu.dot_dimension_numbers<[1], [1], [0], [0], [0, 0, 1, 0], [], []>} : vector<8x8xbf16>, vector<8x8xbf16>, vector<8x8xf32> -> vector<8x8xf32>
    %cst_57 = arith.constant 0.353553385 : f32
    %153 = vector.broadcast %cst_57 : f32 to vector<8x8xf32>
    %154 = arith.mulf %152, %153 : vector<8x8xf32>
    %155 = arith.addf %154, %144 : vector<8x8xf32>
    %cst_58 = arith.constant dense<0xFF800000> : vector<8xf32>
    %156 = vector.multi_reduction <maximumf>, %155, %cst_58 [1] : vector<8x8xf32> to vector<8xf32>
    %cst_59 = arith.constant 0xFF800000 : f32
    %157 = vector.broadcast %cst_59 : f32 to vector<8xf32>
    %158 = arith.maximumf %157, %156 : vector<8xf32>
    %159 = vector.shape_cast %158 : vector<8xf32> to vector<8x1xf32>
    %160 = vector.broadcast %159 : vector<8x1xf32> to vector<8x8xf32>
    %161 = arith.subf %155, %160 : vector<8x8xf32>
    %162 = math.exp %161 : vector<8x8xf32>
    %cst_60 = arith.constant dense<0.000000e+00> : vector<8xf32>
    %163 = vector.multi_reduction <add>, %162, %cst_60 [1] : vector<8x8xf32> to vector<8xf32>
    %164 = vector.shape_cast %163 : vector<8xf32> to vector<8x1xf32>
    %165 = vector.broadcast %164 : vector<8x1xf32> to vector<8x8xf32>
    %166 = arith.divf %162, %165 : vector<8x8xf32>
    %167 = vector.extract_strided_slice %147 {offsets = [0, 0], sizes = [8, 8], strides = [1, 1]} : vector<8x32xf32> to vector<8x8xf32>
    %168 = arith.truncf %166 : vector<8x8xf32> to vector<8x8xbf16>
    %169 = arith.truncf %167 : vector<8x8xf32> to vector<8x8xbf16>
    %cst_61 = arith.constant dense<0.000000e+00> : vector<8x8xf32>
    %170 = tpu.matmul %168, %169, %cst_61 {dimension_numbers = #tpu.dot_dimension_numbers<[1], [0], [0], [1], [0, 0, 1, 1], [], []>} : vector<8x8xbf16>, vector<8x8xbf16>, vector<8x8xf32> -> vector<8x8xf32>
    %171 = vector.extract_strided_slice %145 {offsets = [0, 8], sizes = [8, 8], strides = [1, 1]} : vector<8x32xf32> to vector<8x8xf32>
    %172 = vector.extract_strided_slice %146 {offsets = [0, 8], sizes = [8, 8], strides = [1, 1]} : vector<8x32xf32> to vector<8x8xf32>
    %173 = arith.truncf %171 : vector<8x8xf32> to vector<8x8xbf16>
    %174 = arith.truncf %172 : vector<8x8xf32> to vector<8x8xbf16>
    %cst_62 = arith.constant dense<0.000000e+00> : vector<8x8xf32>
    %175 = tpu.matmul %173, %174, %cst_62 {dimension_numbers = #tpu.dot_dimension_numbers<[1], [1], [0], [0], [0, 0, 1, 0], [], []>} : vector<8x8xbf16>, vector<8x8xbf16>, vector<8x8xf32> -> vector<8x8xf32>
    %cst_63 = arith.constant 0.353553385 : f32
    %176 = vector.broadcast %cst_63 : f32 to vector<8x8xf32>
    %177 = arith.mulf %175, %176 : vector<8x8xf32>
    %178 = arith.addf %177, %144 : vector<8x8xf32>
    %cst_64 = arith.constant dense<0xFF800000> : vector<8xf32>
    %179 = vector.multi_reduction <maximumf>, %178, %cst_64 [1] : vector<8x8xf32> to vector<8xf32>
    %cst_65 = arith.constant 0xFF800000 : f32
    %180 = vector.broadcast %cst_65 : f32 to vector<8xf32>
    %181 = arith.maximumf %180, %179 : vector<8xf32>
    %182 = vector.shape_cast %181 : vector<8xf32> to vector<8x1xf32>
    %183 = vector.broadcast %182 : vector<8x1xf32> to vector<8x8xf32>
    %184 = arith.subf %178, %183 : vector<8x8xf32>
    %185 = math.exp %184 : vector<8x8xf32>
    %cst_66 = arith.constant dense<0.000000e+00> : vector<8xf32>
    %186 = vector.multi_reduction <add>, %185, %cst_66 [1] : vector<8x8xf32> to vector<8xf32>
    %187 = vector.shape_cast %186 : vector<8xf32> to vector<8x1xf32>
    %188 = vector.broadcast %187 : vector<8x1xf32> to vector<8x8xf32>
    %189 = arith.divf %185, %188 : vector<8x8xf32>
    %190 = vector.extract_strided_slice %147 {offsets = [0, 8], sizes = [8, 8], strides = [1, 1]} : vector<8x32xf32> to vector<8x8xf32>
    %191 = arith.truncf %189 : vector<8x8xf32> to vector<8x8xbf16>
    %192 = arith.truncf %190 : vector<8x8xf32> to vector<8x8xbf16>
    %cst_67 = arith.constant dense<0.000000e+00> : vector<8x8xf32>
    %193 = tpu.matmul %191, %192, %cst_67 {dimension_numbers = #tpu.dot_dimension_numbers<[1], [0], [0], [1], [0, 0, 1, 1], [], []>} : vector<8x8xbf16>, vector<8x8xbf16>, vector<8x8xf32> -> vector<8x8xf32>
    %194 = vector.extract_strided_slice %145 {offsets = [0, 16], sizes = [8, 8], strides = [1, 1]} : vector<8x32xf32> to vector<8x8xf32>
    %195 = vector.extract_strided_slice %146 {offsets = [0, 16], sizes = [8, 8], strides = [1, 1]} : vector<8x32xf32> to vector<8x8xf32>
    %196 = arith.truncf %194 : vector<8x8xf32> to vector<8x8xbf16>
    %197 = arith.truncf %195 : vector<8x8xf32> to vector<8x8xbf16>
    %cst_68 = arith.constant dense<0.000000e+00> : vector<8x8xf32>
    %198 = tpu.matmul %196, %197, %cst_68 {dimension_numbers = #tpu.dot_dimension_numbers<[1], [1], [0], [0], [0, 0, 1, 0], [], []>} : vector<8x8xbf16>, vector<8x8xbf16>, vector<8x8xf32> -> vector<8x8xf32>
    %cst_69 = arith.constant 0.353553385 : f32
    %199 = vector.broadcast %cst_69 : f32 to vector<8x8xf32>
    %200 = arith.mulf %198, %199 : vector<8x8xf32>
    %201 = arith.addf %200, %144 : vector<8x8xf32>
    %cst_70 = arith.constant dense<0xFF800000> : vector<8xf32>
    %202 = vector.multi_reduction <maximumf>, %201, %cst_70 [1] : vector<8x8xf32> to vector<8xf32>
    %cst_71 = arith.constant 0xFF800000 : f32
    %203 = vector.broadcast %cst_71 : f32 to vector<8xf32>
    %204 = arith.maximumf %203, %202 : vector<8xf32>
    %205 = vector.shape_cast %204 : vector<8xf32> to vector<8x1xf32>
    %206 = vector.broadcast %205 : vector<8x1xf32> to vector<8x8xf32>
    %207 = arith.subf %201, %206 : vector<8x8xf32>
    %208 = math.exp %207 : vector<8x8xf32>
    %cst_72 = arith.constant dense<0.000000e+00> : vector<8xf32>
    %209 = vector.multi_reduction <add>, %208, %cst_72 [1] : vector<8x8xf32> to vector<8xf32>
    %210 = vector.shape_cast %209 : vector<8xf32> to vector<8x1xf32>
    %211 = vector.broadcast %210 : vector<8x1xf32> to vector<8x8xf32>
    %212 = arith.divf %208, %211 : vector<8x8xf32>
    %213 = vector.extract_strided_slice %147 {offsets = [0, 16], sizes = [8, 8], strides = [1, 1]} : vector<8x32xf32> to vector<8x8xf32>
    %214 = arith.truncf %212 : vector<8x8xf32> to vector<8x8xbf16>
    %215 = arith.truncf %213 : vector<8x8xf32> to vector<8x8xbf16>
    %cst_73 = arith.constant dense<0.000000e+00> : vector<8x8xf32>
    %216 = tpu.matmul %214, %215, %cst_73 {dimension_numbers = #tpu.dot_dimension_numbers<[1], [0], [0], [1], [0, 0, 1, 1], [], []>} : vector<8x8xbf16>, vector<8x8xbf16>, vector<8x8xf32> -> vector<8x8xf32>
    %217 = vector.extract_strided_slice %145 {offsets = [0, 24], sizes = [8, 8], strides = [1, 1]} : vector<8x32xf32> to vector<8x8xf32>
    %218 = vector.extract_strided_slice %146 {offsets = [0, 24], sizes = [8, 8], strides = [1, 1]} : vector<8x32xf32> to vector<8x8xf32>
    %219 = arith.truncf %217 : vector<8x8xf32> to vector<8x8xbf16>
    %220 = arith.truncf %218 : vector<8x8xf32> to vector<8x8xbf16>
    %cst_74 = arith.constant dense<0.000000e+00> : vector<8x8xf32>
    %221 = tpu.matmul %219, %220, %cst_74 {dimension_numbers = #tpu.dot_dimension_numbers<[1], [1], [0], [0], [0, 0, 1, 0], [], []>} : vector<8x8xbf16>, vector<8x8xbf16>, vector<8x8xf32> -> vector<8x8xf32>
    %cst_75 = arith.constant 0.353553385 : f32
    %222 = vector.broadcast %cst_75 : f32 to vector<8x8xf32>
    %223 = arith.mulf %221, %222 : vector<8x8xf32>
    %224 = arith.addf %223, %144 : vector<8x8xf32>
    %cst_76 = arith.constant dense<0xFF800000> : vector<8xf32>
    %225 = vector.multi_reduction <maximumf>, %224, %cst_76 [1] : vector<8x8xf32> to vector<8xf32>
    %cst_77 = arith.constant 0xFF800000 : f32
    %226 = vector.broadcast %cst_77 : f32 to vector<8xf32>
    %227 = arith.maximumf %226, %225 : vector<8xf32>
    %228 = vector.shape_cast %227 : vector<8xf32> to vector<8x1xf32>
    %229 = vector.broadcast %228 : vector<8x1xf32> to vector<8x8xf32>
    %230 = arith.subf %224, %229 : vector<8x8xf32>
    %231 = math.exp %230 : vector<8x8xf32>
    %cst_78 = arith.constant dense<0.000000e+00> : vector<8xf32>
    %232 = vector.multi_reduction <add>, %231, %cst_78 [1] : vector<8x8xf32> to vector<8xf32>
    %233 = vector.shape_cast %232 : vector<8xf32> to vector<8x1xf32>
    %234 = vector.broadcast %233 : vector<8x1xf32> to vector<8x8xf32>
    %235 = arith.divf %231, %234 : vector<8x8xf32>
    %236 = vector.extract_strided_slice %147 {offsets = [0, 24], sizes = [8, 8], strides = [1, 1]} : vector<8x32xf32> to vector<8x8xf32>
    %237 = arith.truncf %235 : vector<8x8xf32> to vector<8x8xbf16>
    %238 = arith.truncf %236 : vector<8x8xf32> to vector<8x8xbf16>
    %cst_79 = arith.constant dense<0.000000e+00> : vector<8x8xf32>
    %239 = tpu.matmul %237, %238, %cst_79 {dimension_numbers = #tpu.dot_dimension_numbers<[1], [0], [0], [1], [0, 0, 1, 1], [], []>} : vector<8x8xbf16>, vector<8x8xbf16>, vector<8x8xf32> -> vector<8x8xf32>
    %c8_80 = arith.constant 8 : index
    %c0_81 = arith.constant 0 : index
    %240 = vector.load %arg22[%c8_80, %c0_81] : memref<16x32xf32, #tpu.memory_space<vmem>>, vector<8x8xf32>
    tpu.vector_store %arg22[%c8_80, %c0_81], %170 {strides = array<i32>} : memref<16x32xf32, #tpu.memory_space<vmem>>, vector<8x8xf32>,
    %c8_82 = arith.constant 8 : index
    %c8_83 = arith.constant 8 : index
    %241 = vector.load %arg22[%c8_82, %c8_83] : memref<16x32xf32, #tpu.memory_space<vmem>>, vector<8x8xf32>
    tpu.vector_store %arg22[%c8_82, %c8_83], %193 {strides = array<i32>} : memref<16x32xf32, #tpu.memory_space<vmem>>, vector<8x8xf32>,
    %c8_84 = arith.constant 8 : index
    %c16_85 = arith.constant 16 : index
    %242 = vector.load %arg22[%c8_84, %c16_85] : memref<16x32xf32, #tpu.memory_space<vmem>>, vector<8x8xf32>
    tpu.vector_store %arg22[%c8_84, %c16_85], %216 {strides = array<i32>} : memref<16x32xf32, #tpu.memory_space<vmem>>, vector<8x8xf32>,
    %c8_86 = arith.constant 8 : index
    %c24_87 = arith.constant 24 : index
    %243 = vector.load %arg22[%c8_86, %c24_87] : memref<16x32xf32, #tpu.memory_space<vmem>>, vector<8x8xf32>
    tpu.vector_store %arg22[%c8_86, %c24_87], %239 {strides = array<i32>} : memref<16x32xf32, #tpu.memory_space<vmem>>, vector<8x8xf32>,
    %c0_88 = arith.constant 0 : index
    %c0_89 = arith.constant 0 : index
    %244 = vector.load %arg22[%c0_88, %c0_89] : memref<16x32xf32, #tpu.memory_space<vmem>>, vector<16x32xf32>
    %c0_90 = arith.constant 0 : index
    %c0_91 = arith.constant 0 : index
    %245 = vector.load %arg9[%c0_90, %c0_91] : memref<32x32xbf16, #tpu.memory_space<vmem>>, vector<32x32xbf16>
    %246 = arith.truncf %244 : vector<16x32xf32> to vector<16x32xbf16>
    %cst_92 = arith.constant dense<0.000000e+00> : vector<16x32xf32>
    %247 = tpu.matmul %246, %245, %cst_92 {dimension_numbers = #tpu.dot_dimension_numbers<[1], [0], [0], [1], [0, 0, 1, 1], [], []>} : vector<16x32xbf16>, vector<32x32xbf16>, vector<16x32xf32> -> vector<16x32xf32>
    %248 = arith.addf %0, %247 : vector<16x32xf32>
    %c0_93 = arith.constant 0 : index
    %c0_94 = arith.constant 0 : index
    %249 = vector.load %arg10[%c0_93, %c0_94] : memref<1x32xf32, #tpu.memory_space<vmem>>, vector<1x32xf32>
    %250 = vector.broadcast %249 : vector<1x32xf32> to vector<16x32xf32>
    %251 = arith.addf %248, %250 : vector<16x32xf32>
    %c1_95 = arith.constant 1 : index
    %c0_96 = arith.constant 0 : index
    %252 = vector.load %arg5[%c1_95, %c0_96] : memref<3x32xf32, #tpu.memory_space<vmem>>, vector<1x32xf32>
    %c1_97 = arith.constant 1 : index
    %c0_98 = arith.constant 0 : index
    %253 = vector.load %arg6[%c1_97, %c0_98] : memref<3x32xf32, #tpu.memory_space<vmem>>, vector<1x32xf32>
    %cst_99 = arith.constant dense<0.000000e+00> : vector<16xf32>
    %254 = vector.multi_reduction <add>, %251, %cst_99 [1] : vector<16x32xf32> to vector<16xf32>
    %255 = vector.shape_cast %254 : vector<16xf32> to vector<16x1xf32>
    %cst_100 = arith.constant 3.200000e+01 : f32
    %256 = vector.broadcast %cst_100 : f32 to vector<16x1xf32>
    %257 = arith.divf %255, %256 : vector<16x1xf32>
    %258 = vector.broadcast %257 : vector<16x1xf32> to vector<16x32xf32>
    %259 = arith.subf %251, %258 : vector<16x32xf32>
    %260 = arith.mulf %259, %259 : vector<16x32xf32>
    %cst_101 = arith.constant dense<0.000000e+00> : vector<16xf32>
    %261 = vector.multi_reduction <add>, %260, %cst_101 [1] : vector<16x32xf32> to vector<16xf32>
    %262 = vector.shape_cast %261 : vector<16xf32> to vector<16x1xf32>
    %cst_102 = arith.constant 3.100000e+01 : f32
    %263 = vector.broadcast %cst_102 : f32 to vector<16x1xf32>
    %264 = arith.divf %262, %263 : vector<16x1xf32>
    %265 = math.sqrt %264 : vector<16x1xf32>
    %266 = vector.broadcast %257 : vector<16x1xf32> to vector<16x32xf32>
    %267 = arith.subf %251, %266 : vector<16x32xf32>
    %268 = vector.broadcast %252 : vector<1x32xf32> to vector<16x32xf32>
    %269 = arith.mulf %268, %267 : vector<16x32xf32>
    %cst_103 = arith.constant 9.99999997E-7 : f32
    %270 = vector.broadcast %cst_103 : f32 to vector<16x1xf32>
    %271 = arith.addf %265, %270 : vector<16x1xf32>
    %272 = vector.broadcast %271 : vector<16x1xf32> to vector<16x32xf32>
    %273 = arith.divf %269, %272 : vector<16x32xf32>
    %274 = vector.broadcast %253 : vector<1x32xf32> to vector<16x32xf32>
    %275 = arith.addf %273, %274 : vector<16x32xf32>
    %c0_104 = arith.constant 0 : index
    %c0_105 = arith.constant 0 : index
    %276 = vector.load %arg11[%c0_104, %c0_105] : memref<32x32xbf16, #tpu.memory_space<vmem>>, vector<32x32xbf16>
    %277 = arith.truncf %275 : vector<16x32xf32> to vector<16x32xbf16>
    %cst_106 = arith.constant dense<0.000000e+00> : vector<16x32xf32>
    %278 = tpu.matmul %277, %276, %cst_106 {dimension_numbers = #tpu.dot_dimension_numbers<[1], [0], [0], [1], [0, 0, 1, 1], [], []>} : vector<16x32xbf16>, vector<32x32xbf16>, vector<16x32xf32> -> vector<16x32xf32>
    %c0_107 = arith.constant 0 : index
    %c0_108 = arith.constant 0 : index
    %279 = vector.load %arg12[%c0_107, %c0_108] : memref<1x32xf32, #tpu.memory_space<vmem>>, vector<1x32xf32>
    %280 = vector.broadcast %279 : vector<1x32xf32> to vector<16x32xf32>
    %281 = arith.addf %278, %280 : vector<16x32xf32>
    %c0_109 = arith.constant 0 : index
    %c0_110 = arith.constant 0 : index
    %282 = vector.load %arg13[%c0_109, %c0_110] : memref<32x64xbf16, #tpu.memory_space<vmem>>, vector<32x64xbf16>
    %283 = arith.truncf %1 : vector<32x32xf32> to vector<32x32xbf16>
    %cst_111 = arith.constant dense<0.000000e+00> : vector<32x64xf32>
    %284 = tpu.matmul %283, %282, %cst_111 {dimension_numbers = #tpu.dot_dimension_numbers<[1], [0], [0], [1], [0, 0, 1, 1], [], []>} : vector<32x32xbf16>, vector<32x64xbf16>, vector<32x64xf32> -> vector<32x64xf32>
    %c0_112 = arith.constant 0 : index
    %c0_113 = arith.constant 0 : index
    %285 = vector.load %arg14[%c0_112, %c0_113] : memref<1x64xf32, #tpu.memory_space<vmem>>, vector<1x64xf32>
    %286 = vector.broadcast %285 : vector<1x64xf32> to vector<32x64xf32>
    %287 = arith.addf %284, %286 : vector<32x64xf32>
    %c0_114 = arith.constant 0 : index
    %c0_115 = arith.constant 0 : index
    %c0_116 = arith.constant 0 : index
    %288 = vector.load %arg4[%c0_114, %c0_115, %c0_116] : memref<2x8x16xf32, #tpu.memory_space<vmem>>, vector<1x8x16xf32>
    %289 = vector.shape_cast %288 : vector<1x8x16xf32> to vector<8x16xf32>
    %cst_117 = arith.constant 0.000000e+00 : f32
    %290 = vector.broadcast %cst_117 : f32 to vector<8x16xf32>
    %291 = arith.cmpf oeq, %289, %290 : vector<8x16xf32>
    %cst_118 = arith.constant -1.000000e+09 : f32
    %cst_119 = arith.constant 0.000000e+00 : f32
    %292 = vector.broadcast %cst_118 : f32 to vector<8x16xf32>
    %293 = vector.broadcast %cst_119 : f32 to vector<8x16xf32>
    %294 = arith.select %291, %292, %293 : vector<8x16xi1>, vector<8x16xf32>
    %295 = vector.extract_strided_slice %281 {offsets = [0, 0], sizes = [8, 32], strides = [1, 1]} : vector<16x32xf32> to vector<8x32xf32>
    %296 = vector.extract_strided_slice %287 {offsets = [0, 0], sizes = [16, 32], strides = [1, 1]} : vector<32x64xf32> to vector<16x32xf32>
    %297 = vector.extract_strided_slice %287 {offsets = [0, 32], sizes = [16, 32], strides = [1, 1]} : vector<32x64xf32> to vector<16x32xf32>
    %298 = vector.extract_strided_slice %295 {offsets = [0, 0], sizes = [8, 8], strides = [1, 1]} : vector<8x32xf32> to vector<8x8xf32>
    %299 = vector.extract_strided_slice %296 {offsets = [0, 0], sizes = [16, 8], strides = [1, 1]} : vector<16x32xf32> to vector<16x8xf32>
    %300 = arith.truncf %298 : vector<8x8xf32> to vector<8x8xbf16>
    %301 = arith.truncf %299 : vector<16x8xf32> to vector<16x8xbf16>
    %cst_120 = arith.constant dense<0.000000e+00> : vector<8x16xf32>
    %302 = tpu.matmul %300, %301, %cst_120 {dimension_numbers = #tpu.dot_dimension_numbers<[1], [1], [0], [0], [0, 0, 1, 0], [], []>} : vector<8x8xbf16>, vector<16x8xbf16>, vector<8x16xf32> -> vector<8x16xf32>
    %cst_121 = arith.constant 0.353553385 : f32
    %303 = vector.broadcast %cst_121 : f32 to vector<8x16xf32>
    %304 = arith.mulf %302, %303 : vector<8x16xf32>
    %305 = arith.addf %304, %294 : vector<8x16xf32>
    %cst_122 = arith.constant dense<0xFF800000> : vector<8xf32>
    %306 = vector.multi_reduction <maximumf>, %305, %cst_122 [1] : vector<8x16xf32> to vector<8xf32>
    %cst_123 = arith.constant 0xFF800000 : f32
    %307 = vector.broadcast %cst_123 : f32 to vector<8xf32>
    %308 = arith.maximumf %307, %306 : vector<8xf32>
    %309 = vector.shape_cast %308 : vector<8xf32> to vector<8x1xf32>
    %310 = vector.broadcast %309 : vector<8x1xf32> to vector<8x16xf32>
    %311 = arith.subf %305, %310 : vector<8x16xf32>
    %312 = math.exp %311 : vector<8x16xf32>
    %cst_124 = arith.constant dense<0.000000e+00> : vector<8xf32>
    %313 = vector.multi_reduction <add>, %312, %cst_124 [1] : vector<8x16xf32> to vector<8xf32>
    %314 = vector.shape_cast %313 : vector<8xf32> to vector<8x1xf32>
    %315 = vector.broadcast %314 : vector<8x1xf32> to vector<8x16xf32>
    %316 = arith.divf %312, %315 : vector<8x16xf32>
    %317 = vector.extract_strided_slice %297 {offsets = [0, 0], sizes = [16, 8], strides = [1, 1]} : vector<16x32xf32> to vector<16x8xf32>
    %318 = arith.truncf %316 : vector<8x16xf32> to vector<8x16xbf16>
    %319 = arith.truncf %317 : vector<16x8xf32> to vector<16x8xbf16>
    %cst_125 = arith.constant dense<0.000000e+00> : vector<8x8xf32>
    %320 = tpu.matmul %318, %319, %cst_125 {dimension_numbers = #tpu.dot_dimension_numbers<[1], [0], [0], [1], [0, 0, 1, 1], [], []>} : vector<8x16xbf16>, vector<16x8xbf16>, vector<8x8xf32> -> vector<8x8xf32>
    %321 = vector.extract_strided_slice %295 {offsets = [0, 8], sizes = [8, 8], strides = [1, 1]} : vector<8x32xf32> to vector<8x8xf32>
    %322 = vector.extract_strided_slice %296 {offsets = [0, 8], sizes = [16, 8], strides = [1, 1]} : vector<16x32xf32> to vector<16x8xf32>
    %323 = arith.truncf %321 : vector<8x8xf32> to vector<8x8xbf16>
    %324 = arith.truncf %322 : vector<16x8xf32> to vector<16x8xbf16>
    %cst_126 = arith.constant dense<0.000000e+00> : vector<8x16xf32>
    %325 = tpu.matmul %323, %324, %cst_126 {dimension_numbers = #tpu.dot_dimension_numbers<[1], [1], [0], [0], [0, 0, 1, 0], [], []>} : vector<8x8xbf16>, vector<16x8xbf16>, vector<8x16xf32> -> vector<8x16xf32>
    %cst_127 = arith.constant 0.353553385 : f32
    %326 = vector.broadcast %cst_127 : f32 to vector<8x16xf32>
    %327 = arith.mulf %325, %326 : vector<8x16xf32>
    %328 = arith.addf %327, %294 : vector<8x16xf32>
    %cst_128 = arith.constant dense<0xFF800000> : vector<8xf32>
    %329 = vector.multi_reduction <maximumf>, %328, %cst_128 [1] : vector<8x16xf32> to vector<8xf32>
    %cst_129 = arith.constant 0xFF800000 : f32
    %330 = vector.broadcast %cst_129 : f32 to vector<8xf32>
    %331 = arith.maximumf %330, %329 : vector<8xf32>
    %332 = vector.shape_cast %331 : vector<8xf32> to vector<8x1xf32>
    %333 = vector.broadcast %332 : vector<8x1xf32> to vector<8x16xf32>
    %334 = arith.subf %328, %333 : vector<8x16xf32>
    %335 = math.exp %334 : vector<8x16xf32>
    %cst_130 = arith.constant dense<0.000000e+00> : vector<8xf32>
    %336 = vector.multi_reduction <add>, %335, %cst_130 [1] : vector<8x16xf32> to vector<8xf32>
    %337 = vector.shape_cast %336 : vector<8xf32> to vector<8x1xf32>
    %338 = vector.broadcast %337 : vector<8x1xf32> to vector<8x16xf32>
    %339 = arith.divf %335, %338 : vector<8x16xf32>
    %340 = vector.extract_strided_slice %297 {offsets = [0, 8], sizes = [16, 8], strides = [1, 1]} : vector<16x32xf32> to vector<16x8xf32>
    %341 = arith.truncf %339 : vector<8x16xf32> to vector<8x16xbf16>
    %342 = arith.truncf %340 : vector<16x8xf32> to vector<16x8xbf16>
    %cst_131 = arith.constant dense<0.000000e+00> : vector<8x8xf32>
    %343 = tpu.matmul %341, %342, %cst_131 {dimension_numbers = #tpu.dot_dimension_numbers<[1], [0], [0], [1], [0, 0, 1, 1], [], []>} : vector<8x16xbf16>, vector<16x8xbf16>, vector<8x8xf32> -> vector<8x8xf32>
    %344 = vector.extract_strided_slice %295 {offsets = [0, 16], sizes = [8, 8], strides = [1, 1]} : vector<8x32xf32> to vector<8x8xf32>
    %345 = vector.extract_strided_slice %296 {offsets = [0, 16], sizes = [16, 8], strides = [1, 1]} : vector<16x32xf32> to vector<16x8xf32>
    %346 = arith.truncf %344 : vector<8x8xf32> to vector<8x8xbf16>
    %347 = arith.truncf %345 : vector<16x8xf32> to vector<16x8xbf16>
    %cst_132 = arith.constant dense<0.000000e+00> : vector<8x16xf32>
    %348 = tpu.matmul %346, %347, %cst_132 {dimension_numbers = #tpu.dot_dimension_numbers<[1], [1], [0], [0], [0, 0, 1, 0], [], []>} : vector<8x8xbf16>, vector<16x8xbf16>, vector<8x16xf32> -> vector<8x16xf32>
    %cst_133 = arith.constant 0.353553385 : f32
    %349 = vector.broadcast %cst_133 : f32 to vector<8x16xf32>
    %350 = arith.mulf %348, %349 : vector<8x16xf32>
    %351 = arith.addf %350, %294 : vector<8x16xf32>
    %cst_134 = arith.constant dense<0xFF800000> : vector<8xf32>
    %352 = vector.multi_reduction <maximumf>, %351, %cst_134 [1] : vector<8x16xf32> to vector<8xf32>
    %cst_135 = arith.constant 0xFF800000 : f32
    %353 = vector.broadcast %cst_135 : f32 to vector<8xf32>
    %354 = arith.maximumf %353, %352 : vector<8xf32>
    %355 = vector.shape_cast %354 : vector<8xf32> to vector<8x1xf32>
    %356 = vector.broadcast %355 : vector<8x1xf32> to vector<8x16xf32>
    %357 = arith.subf %351, %356 : vector<8x16xf32>
    %358 = math.exp %357 : vector<8x16xf32>
    %cst_136 = arith.constant dense<0.000000e+00> : vector<8xf32>
    %359 = vector.multi_reduction <add>, %358, %cst_136 [1] : vector<8x16xf32> to vector<8xf32>
    %360 = vector.shape_cast %359 : vector<8xf32> to vector<8x1xf32>
    %361 = vector.broadcast %360 : vector<8x1xf32> to vector<8x16xf32>
    %362 = arith.divf %358, %361 : vector<8x16xf32>
    %363 = vector.extract_strided_slice %297 {offsets = [0, 16], sizes = [16, 8], strides = [1, 1]} : vector<16x32xf32> to vector<16x8xf32>
    %364 = arith.truncf %362 : vector<8x16xf32> to vector<8x16xbf16>
    %365 = arith.truncf %363 : vector<16x8xf32> to vector<16x8xbf16>
    %cst_137 = arith.constant dense<0.000000e+00> : vector<8x8xf32>
    %366 = tpu.matmul %364, %365, %cst_137 {dimension_numbers = #tpu.dot_dimension_numbers<[1], [0], [0], [1], [0, 0, 1, 1], [], []>} : vector<8x16xbf16>, vector<16x8xbf16>, vector<8x8xf32> -> vector<8x8xf32>
    %367 = vector.extract_strided_slice %295 {offsets = [0, 24], sizes = [8, 8], strides = [1, 1]} : vector<8x32xf32> to vector<8x8xf32>
    %368 = vector.extract_strided_slice %296 {offsets = [0, 24], sizes = [16, 8], strides = [1, 1]} : vector<16x32xf32> to vector<16x8xf32>
    %369 = arith.truncf %367 : vector<8x8xf32> to vector<8x8xbf16>
    %370 = arith.truncf %368 : vector<16x8xf32> to vector<16x8xbf16>
    %cst_138 = arith.constant dense<0.000000e+00> : vector<8x16xf32>
    %371 = tpu.matmul %369, %370, %cst_138 {dimension_numbers = #tpu.dot_dimension_numbers<[1], [1], [0], [0], [0, 0, 1, 0], [], []>} : vector<8x8xbf16>, vector<16x8xbf16>, vector<8x16xf32> -> vector<8x16xf32>
    %cst_139 = arith.constant 0.353553385 : f32
    %372 = vector.broadcast %cst_139 : f32 to vector<8x16xf32>
    %373 = arith.mulf %371, %372 : vector<8x16xf32>
    %374 = arith.addf %373, %294 : vector<8x16xf32>
    %cst_140 = arith.constant dense<0xFF800000> : vector<8xf32>
    %375 = vector.multi_reduction <maximumf>, %374, %cst_140 [1] : vector<8x16xf32> to vector<8xf32>
    %cst_141 = arith.constant 0xFF800000 : f32
    %376 = vector.broadcast %cst_141 : f32 to vector<8xf32>
    %377 = arith.maximumf %376, %375 : vector<8xf32>
    %378 = vector.shape_cast %377 : vector<8xf32> to vector<8x1xf32>
    %379 = vector.broadcast %378 : vector<8x1xf32> to vector<8x16xf32>
    %380 = arith.subf %374, %379 : vector<8x16xf32>
    %381 = math.exp %380 : vector<8x16xf32>
    %cst_142 = arith.constant dense<0.000000e+00> : vector<8xf32>
    %382 = vector.multi_reduction <add>, %381, %cst_142 [1] : vector<8x16xf32> to vector<8xf32>
    %383 = vector.shape_cast %382 : vector<8xf32> to vector<8x1xf32>
    %384 = vector.broadcast %383 : vector<8x1xf32> to vector<8x16xf32>
    %385 = arith.divf %381, %384 : vector<8x16xf32>
    %386 = vector.extract_strided_slice %297 {offsets = [0, 24], sizes = [16, 8], strides = [1, 1]} : vector<16x32xf32> to vector<16x8xf32>
    %387 = arith.truncf %385 : vector<8x16xf32> to vector<8x16xbf16>
    %388 = arith.truncf %386 : vector<16x8xf32> to vector<16x8xbf16>
    %cst_143 = arith.constant dense<0.000000e+00> : vector<8x8xf32>
    %389 = tpu.matmul %387, %388, %cst_143 {dimension_numbers = #tpu.dot_dimension_numbers<[1], [0], [0], [1], [0, 0, 1, 1], [], []>} : vector<8x16xbf16>, vector<16x8xbf16>, vector<8x8xf32> -> vector<8x8xf32>
    %c0_144 = arith.constant 0 : index
    %c0_145 = arith.constant 0 : index
    %390 = vector.load %arg22[%c0_144, %c0_145] : memref<16x32xf32, #tpu.memory_space<vmem>>, vector<8x8xf32>
    tpu.vector_store %arg22[%c0_144, %c0_145], %320 {strides = array<i32>} : memref<16x32xf32, #tpu.memory_space<vmem>>, vector<8x8xf32>,
    %c0_146 = arith.constant 0 : index
    %c8_147 = arith.constant 8 : index
    %391 = vector.load %arg22[%c0_146, %c8_147] : memref<16x32xf32, #tpu.memory_space<vmem>>, vector<8x8xf32>
    tpu.vector_store %arg22[%c0_146, %c8_147], %343 {strides = array<i32>} : memref<16x32xf32, #tpu.memory_space<vmem>>, vector<8x8xf32>,
    %c0_148 = arith.constant 0 : index
    %c16_149 = arith.constant 16 : index
    %392 = vector.load %arg22[%c0_148, %c16_149] : memref<16x32xf32, #tpu.memory_space<vmem>>, vector<8x8xf32>
    tpu.vector_store %arg22[%c0_148, %c16_149], %366 {strides = array<i32>} : memref<16x32xf32, #tpu.memory_space<vmem>>, vector<8x8xf32>,
    %c0_150 = arith.constant 0 : index
    %c24_151 = arith.constant 24 : index
    %393 = vector.load %arg22[%c0_150, %c24_151] : memref<16x32xf32, #tpu.memory_space<vmem>>, vector<8x8xf32>
    tpu.vector_store %arg22[%c0_150, %c24_151], %389 {strides = array<i32>} : memref<16x32xf32, #tpu.memory_space<vmem>>, vector<8x8xf32>,
    %c1_152 = arith.constant 1 : index
    %c0_153 = arith.constant 0 : index
    %c0_154 = arith.constant 0 : index
    %394 = vector.load %arg4[%c1_152, %c0_153, %c0_154] : memref<2x8x16xf32, #tpu.memory_space<vmem>>, vector<1x8x16xf32>
    %395 = vector.shape_cast %394 : vector<1x8x16xf32> to vector<8x16xf32>
    %cst_155 = arith.constant 0.000000e+00 : f32
    %396 = vector.broadcast %cst_155 : f32 to vector<8x16xf32>
    %397 = arith.cmpf oeq, %395, %396 : vector<8x16xf32>
    %cst_156 = arith.constant -1.000000e+09 : f32
    %cst_157 = arith.constant 0.000000e+00 : f32
    %398 = vector.broadcast %cst_156 : f32 to vector<8x16xf32>
    %399 = vector.broadcast %cst_157 : f32 to vector<8x16xf32>
    %400 = arith.select %397, %398, %399 : vector<8x16xi1>, vector<8x16xf32>
    %401 = vector.extract_strided_slice %281 {offsets = [8, 0], sizes = [8, 32], strides = [1, 1]} : vector<16x32xf32> to vector<8x32xf32>
    %402 = vector.extract_strided_slice %287 {offsets = [16, 0], sizes = [16, 32], strides = [1, 1]} : vector<32x64xf32> to vector<16x32xf32>
    %403 = vector.extract_strided_slice %287 {offsets = [16, 32], sizes = [16, 32], strides = [1, 1]} : vector<32x64xf32> to vector<16x32xf32>
    %404 = vector.extract_strided_slice %401 {offsets = [0, 0], sizes = [8, 8], strides = [1, 1]} : vector<8x32xf32> to vector<8x8xf32>
    %405 = vector.extract_strided_slice %402 {offsets = [0, 0], sizes = [16, 8], strides = [1, 1]} : vector<16x32xf32> to vector<16x8xf32>
    %406 = arith.truncf %404 : vector<8x8xf32> to vector<8x8xbf16>
    %407 = arith.truncf %405 : vector<16x8xf32> to vector<16x8xbf16>
    %cst_158 = arith.constant dense<0.000000e+00> : vector<8x16xf32>
    %408 = tpu.matmul %406, %407, %cst_158 {dimension_numbers = #tpu.dot_dimension_numbers<[1], [1], [0], [0], [0, 0, 1, 0], [], []>} : vector<8x8xbf16>, vector<16x8xbf16>, vector<8x16xf32> -> vector<8x16xf32>
    %cst_159 = arith.constant 0.353553385 : f32
    %409 = vector.broadcast %cst_159 : f32 to vector<8x16xf32>
    %410 = arith.mulf %408, %409 : vector<8x16xf32>
    %411 = arith.addf %410, %400 : vector<8x16xf32>
    %cst_160 = arith.constant dense<0xFF800000> : vector<8xf32>
    %412 = vector.multi_reduction <maximumf>, %411, %cst_160 [1] : vector<8x16xf32> to vector<8xf32>
    %cst_161 = arith.constant 0xFF800000 : f32
    %413 = vector.broadcast %cst_161 : f32 to vector<8xf32>
    %414 = arith.maximumf %413, %412 : vector<8xf32>
    %415 = vector.shape_cast %414 : vector<8xf32> to vector<8x1xf32>
    %416 = vector.broadcast %415 : vector<8x1xf32> to vector<8x16xf32>
    %417 = arith.subf %411, %416 : vector<8x16xf32>
    %418 = math.exp %417 : vector<8x16xf32>
    %cst_162 = arith.constant dense<0.000000e+00> : vector<8xf32>
    %419 = vector.multi_reduction <add>, %418, %cst_162 [1] : vector<8x16xf32> to vector<8xf32>
    %420 = vector.shape_cast %419 : vector<8xf32> to vector<8x1xf32>
    %421 = vector.broadcast %420 : vector<8x1xf32> to vector<8x16xf32>
    %422 = arith.divf %418, %421 : vector<8x16xf32>
    %423 = vector.extract_strided_slice %403 {offsets = [0, 0], sizes = [16, 8], strides = [1, 1]} : vector<16x32xf32> to vector<16x8xf32>
    %424 = arith.truncf %422 : vector<8x16xf32> to vector<8x16xbf16>
    %425 = arith.truncf %423 : vector<16x8xf32> to vector<16x8xbf16>
    %cst_163 = arith.constant dense<0.000000e+00> : vector<8x8xf32>
    %426 = tpu.matmul %424, %425, %cst_163 {dimension_numbers = #tpu.dot_dimension_numbers<[1], [0], [0], [1], [0, 0, 1, 1], [], []>} : vector<8x16xbf16>, vector<16x8xbf16>, vector<8x8xf32> -> vector<8x8xf32>
    %427 = vector.extract_strided_slice %401 {offsets = [0, 8], sizes = [8, 8], strides = [1, 1]} : vector<8x32xf32> to vector<8x8xf32>
    %428 = vector.extract_strided_slice %402 {offsets = [0, 8], sizes = [16, 8], strides = [1, 1]} : vector<16x32xf32> to vector<16x8xf32>
    %429 = arith.truncf %427 : vector<8x8xf32> to vector<8x8xbf16>
    %430 = arith.truncf %428 : vector<16x8xf32> to vector<16x8xbf16>
    %cst_164 = arith.constant dense<0.000000e+00> : vector<8x16xf32>
    %431 = tpu.matmul %429, %430, %cst_164 {dimension_numbers = #tpu.dot_dimension_numbers<[1], [1], [0], [0], [0, 0, 1, 0], [], []>} : vector<8x8xbf16>, vector<16x8xbf16>, vector<8x16xf32> -> vector<8x16xf32>
    %cst_165 = arith.constant 0.353553385 : f32
    %432 = vector.broadcast %cst_165 : f32 to vector<8x16xf32>
    %433 = arith.mulf %431, %432 : vector<8x16xf32>
    %434 = arith.addf %433, %400 : vector<8x16xf32>
    %cst_166 = arith.constant dense<0xFF800000> : vector<8xf32>
    %435 = vector.multi_reduction <maximumf>, %434, %cst_166 [1] : vector<8x16xf32> to vector<8xf32>
    %cst_167 = arith.constant 0xFF800000 : f32
    %436 = vector.broadcast %cst_167 : f32 to vector<8xf32>
    %437 = arith.maximumf %436, %435 : vector<8xf32>
    %438 = vector.shape_cast %437 : vector<8xf32> to vector<8x1xf32>
    %439 = vector.broadcast %438 : vector<8x1xf32> to vector<8x16xf32>
    %440 = arith.subf %434, %439 : vector<8x16xf32>
    %441 = math.exp %440 : vector<8x16xf32>
    %cst_168 = arith.constant dense<0.000000e+00> : vector<8xf32>
    %442 = vector.multi_reduction <add>, %441, %cst_168 [1] : vector<8x16xf32> to vector<8xf32>
    %443 = vector.shape_cast %442 : vector<8xf32> to vector<8x1xf32>
    %444 = vector.broadcast %443 : vector<8x1xf32> to vector<8x16xf32>
    %445 = arith.divf %441, %444 : vector<8x16xf32>
    %446 = vector.extract_strided_slice %403 {offsets = [0, 8], sizes = [16, 8], strides = [1, 1]} : vector<16x32xf32> to vector<16x8xf32>
    %447 = arith.truncf %445 : vector<8x16xf32> to vector<8x16xbf16>
    %448 = arith.truncf %446 : vector<16x8xf32> to vector<16x8xbf16>
    %cst_169 = arith.constant dense<0.000000e+00> : vector<8x8xf32>
    %449 = tpu.matmul %447, %448, %cst_169 {dimension_numbers = #tpu.dot_dimension_numbers<[1], [0], [0], [1], [0, 0, 1, 1], [], []>} : vector<8x16xbf16>, vector<16x8xbf16>, vector<8x8xf32> -> vector<8x8xf32>
    %450 = vector.extract_strided_slice %401 {offsets = [0, 16], sizes = [8, 8], strides = [1, 1]} : vector<8x32xf32> to vector<8x8xf32>
    %451 = vector.extract_strided_slice %402 {offsets = [0, 16], sizes = [16, 8], strides = [1, 1]} : vector<16x32xf32> to vector<16x8xf32>
    %452 = arith.truncf %450 : vector<8x8xf32> to vector<8x8xbf16>
    %453 = arith.truncf %451 : vector<16x8xf32> to vector<16x8xbf16>
    %cst_170 = arith.constant dense<0.000000e+00> : vector<8x16xf32>
    %454 = tpu.matmul %452, %453, %cst_170 {dimension_numbers = #tpu.dot_dimension_numbers<[1], [1], [0], [0], [0, 0, 1, 0], [], []>} : vector<8x8xbf16>, vector<16x8xbf16>, vector<8x16xf32> -> vector<8x16xf32>
    %cst_171 = arith.constant 0.353553385 : f32
    %455 = vector.broadcast %cst_171 : f32 to vector<8x16xf32>
    %456 = arith.mulf %454, %455 : vector<8x16xf32>
    %457 = arith.addf %456, %400 : vector<8x16xf32>
    %cst_172 = arith.constant dense<0xFF800000> : vector<8xf32>
    %458 = vector.multi_reduction <maximumf>, %457, %cst_172 [1] : vector<8x16xf32> to vector<8xf32>
    %cst_173 = arith.constant 0xFF800000 : f32
    %459 = vector.broadcast %cst_173 : f32 to vector<8xf32>
    %460 = arith.maximumf %459, %458 : vector<8xf32>
    %461 = vector.shape_cast %460 : vector<8xf32> to vector<8x1xf32>
    %462 = vector.broadcast %461 : vector<8x1xf32> to vector<8x16xf32>
    %463 = arith.subf %457, %462 : vector<8x16xf32>
    %464 = math.exp %463 : vector<8x16xf32>
    %cst_174 = arith.constant dense<0.000000e+00> : vector<8xf32>
    %465 = vector.multi_reduction <add>, %464, %cst_174 [1] : vector<8x16xf32> to vector<8xf32>
    %466 = vector.shape_cast %465 : vector<8xf32> to vector<8x1xf32>
    %467 = vector.broadcast %466 : vector<8x1xf32> to vector<8x16xf32>
    %468 = arith.divf %464, %467 : vector<8x16xf32>
    %469 = vector.extract_strided_slice %403 {offsets = [0, 16], sizes = [16, 8], strides = [1, 1]} : vector<16x32xf32> to vector<16x8xf32>
    %470 = arith.truncf %468 : vector<8x16xf32> to vector<8x16xbf16>
    %471 = arith.truncf %469 : vector<16x8xf32> to vector<16x8xbf16>
    %cst_175 = arith.constant dense<0.000000e+00> : vector<8x8xf32>
    %472 = tpu.matmul %470, %471, %cst_175 {dimension_numbers = #tpu.dot_dimension_numbers<[1], [0], [0], [1], [0, 0, 1, 1], [], []>} : vector<8x16xbf16>, vector<16x8xbf16>, vector<8x8xf32> -> vector<8x8xf32>
    %473 = vector.extract_strided_slice %401 {offsets = [0, 24], sizes = [8, 8], strides = [1, 1]} : vector<8x32xf32> to vector<8x8xf32>
    %474 = vector.extract_strided_slice %402 {offsets = [0, 24], sizes = [16, 8], strides = [1, 1]} : vector<16x32xf32> to vector<16x8xf32>
    %475 = arith.truncf %473 : vector<8x8xf32> to vector<8x8xbf16>
    %476 = arith.truncf %474 : vector<16x8xf32> to vector<16x8xbf16>
    %cst_176 = arith.constant dense<0.000000e+00> : vector<8x16xf32>
    %477 = tpu.matmul %475, %476, %cst_176 {dimension_numbers = #tpu.dot_dimension_numbers<[1], [1], [0], [0], [0, 0, 1, 0], [], []>} : vector<8x8xbf16>, vector<16x8xbf16>, vector<8x16xf32> -> vector<8x16xf32>
    %cst_177 = arith.constant 0.353553385 : f32
    %478 = vector.broadcast %cst_177 : f32 to vector<8x16xf32>
    %479 = arith.mulf %477, %478 : vector<8x16xf32>
    %480 = arith.addf %479, %400 : vector<8x16xf32>
    %cst_178 = arith.constant dense<0xFF800000> : vector<8xf32>
    %481 = vector.multi_reduction <maximumf>, %480, %cst_178 [1] : vector<8x16xf32> to vector<8xf32>
    %cst_179 = arith.constant 0xFF800000 : f32
    %482 = vector.broadcast %cst_179 : f32 to vector<8xf32>
    %483 = arith.maximumf %482, %481 : vector<8xf32>
    %484 = vector.shape_cast %483 : vector<8xf32> to vector<8x1xf32>
    %485 = vector.broadcast %484 : vector<8x1xf32> to vector<8x16xf32>
    %486 = arith.subf %480, %485 : vector<8x16xf32>
    %487 = math.exp %486 : vector<8x16xf32>
    %cst_180 = arith.constant dense<0.000000e+00> : vector<8xf32>
    %488 = vector.multi_reduction <add>, %487, %cst_180 [1] : vector<8x16xf32> to vector<8xf32>
    %489 = vector.shape_cast %488 : vector<8xf32> to vector<8x1xf32>
    %490 = vector.broadcast %489 : vector<8x1xf32> to vector<8x16xf32>
    %491 = arith.divf %487, %490 : vector<8x16xf32>
    %492 = vector.extract_strided_slice %403 {offsets = [0, 24], sizes = [16, 8], strides = [1, 1]} : vector<16x32xf32> to vector<16x8xf32>
    %493 = arith.truncf %491 : vector<8x16xf32> to vector<8x16xbf16>
    %494 = arith.truncf %492 : vector<16x8xf32> to vector<16x8xbf16>
    %cst_181 = arith.constant dense<0.000000e+00> : vector<8x8xf32>
    %495 = tpu.matmul %493, %494, %cst_181 {dimension_numbers = #tpu.dot_dimension_numbers<[1], [0], [0], [1], [0, 0, 1, 1], [], []>} : vector<8x16xbf16>, vector<16x8xbf16>, vector<8x8xf32> -> vector<8x8xf32>
    %c8_182 = arith.constant 8 : index
    %c0_183 = arith.constant 0 : index
    %496 = vector.load %arg22[%c8_182, %c0_183] : memref<16x32xf32, #tpu.memory_space<vmem>>, vector<8x8xf32>
    tpu.vector_store %arg22[%c8_182, %c0_183], %426 {strides = array<i32>} : memref<16x32xf32, #tpu.memory_space<vmem>>, vector<8x8xf32>,
    %c8_184 = arith.constant 8 : index
    %c8_185 = arith.constant 8 : index
    %497 = vector.load %arg22[%c8_184, %c8_185] : memref<16x32xf32, #tpu.memory_space<vmem>>, vector<8x8xf32>
    tpu.vector_store %arg22[%c8_184, %c8_185], %449 {strides = array<i32>} : memref<16x32xf32, #tpu.memory_space<vmem>>, vector<8x8xf32>,
    %c8_186 = arith.constant 8 : index
    %c16_187 = arith.constant 16 : index
    %498 = vector.load %arg22[%c8_186, %c16_187] : memref<16x32xf32, #tpu.memory_space<vmem>>, vector<8x8xf32>
    tpu.vector_store %arg22[%c8_186, %c16_187], %472 {strides = array<i32>} : memref<16x32xf32, #tpu.memory_space<vmem>>, vector<8x8xf32>,
    %c8_188 = arith.constant 8 : index
    %c24_189 = arith.constant 24 : index
    %499 = vector.load %arg22[%c8_188, %c24_189] : memref<16x32xf32, #tpu.memory_space<vmem>>, vector<8x8xf32>
    tpu.vector_store %arg22[%c8_188, %c24_189], %495 {strides = array<i32>} : memref<16x32xf32, #tpu.memory_space<vmem>>, vector<8x8xf32>,
    %c0_190 = arith.constant 0 : index
    %c0_191 = arith.constant 0 : index
    %500 = vector.load %arg22[%c0_190, %c0_191] : memref<16x32xf32, #tpu.memory_space<vmem>>, vector<16x32xf32>
    %c0_192 = arith.constant 0 : index
    %c0_193 = arith.constant 0 : index
    %501 = vector.load %arg15[%c0_192, %c0_193] : memref<32x32xbf16, #tpu.memory_space<vmem>>, vector<32x32xbf16>
    %502 = arith.truncf %500 : vector<16x32xf32> to vector<16x32xbf16>
    %cst_194 = arith.constant dense<0.000000e+00> : vector<16x32xf32>
    %503 = tpu.matmul %502, %501, %cst_194 {dimension_numbers = #tpu.dot_dimension_numbers<[1], [0], [0], [1], [0, 0, 1, 1], [], []>} : vector<16x32xbf16>, vector<32x32xbf16>, vector<16x32xf32> -> vector<16x32xf32>
    %504 = arith.addf %251, %503 : vector<16x32xf32>
    %c0_195 = arith.constant 0 : index
    %c0_196 = arith.constant 0 : index
    %505 = vector.load %arg16[%c0_195, %c0_196] : memref<1x32xf32, #tpu.memory_space<vmem>>, vector<1x32xf32>
    %506 = vector.broadcast %505 : vector<1x32xf32> to vector<16x32xf32>
    %507 = arith.addf %504, %506 : vector<16x32xf32>
    %c2 = arith.constant 2 : index
    %c0_197 = arith.constant 0 : index
    %508 = vector.load %arg5[%c2, %c0_197] : memref<3x32xf32, #tpu.memory_space<vmem>>, vector<1x32xf32>
    %c2_198 = arith.constant 2 : index
    %c0_199 = arith.constant 0 : index
    %509 = vector.load %arg6[%c2_198, %c0_199] : memref<3x32xf32, #tpu.memory_space<vmem>>, vector<1x32xf32>
    %cst_200 = arith.constant dense<0.000000e+00> : vector<16xf32>
    %510 = vector.multi_reduction <add>, %507, %cst_200 [1] : vector<16x32xf32> to vector<16xf32>
    %511 = vector.shape_cast %510 : vector<16xf32> to vector<16x1xf32>
    %cst_201 = arith.constant 3.200000e+01 : f32
    %512 = vector.broadcast %cst_201 : f32 to vector<16x1xf32>
    %513 = arith.divf %511, %512 : vector<16x1xf32>
    %514 = vector.broadcast %513 : vector<16x1xf32> to vector<16x32xf32>
    %515 = arith.subf %507, %514 : vector<16x32xf32>
    %516 = arith.mulf %515, %515 : vector<16x32xf32>
    %cst_202 = arith.constant dense<0.000000e+00> : vector<16xf32>
    %517 = vector.multi_reduction <add>, %516, %cst_202 [1] : vector<16x32xf32> to vector<16xf32>
    %518 = vector.shape_cast %517 : vector<16xf32> to vector<16x1xf32>
    %cst_203 = arith.constant 3.100000e+01 : f32
    %519 = vector.broadcast %cst_203 : f32 to vector<16x1xf32>
    %520 = arith.divf %518, %519 : vector<16x1xf32>
    %521 = math.sqrt %520 : vector<16x1xf32>
    %522 = vector.broadcast %513 : vector<16x1xf32> to vector<16x32xf32>
    %523 = arith.subf %507, %522 : vector<16x32xf32>
    %524 = vector.broadcast %508 : vector<1x32xf32> to vector<16x32xf32>
    %525 = arith.mulf %524, %523 : vector<16x32xf32>
    %cst_204 = arith.constant 9.99999997E-7 : f32
    %526 = vector.broadcast %cst_204 : f32 to vector<16x1xf32>
    %527 = arith.addf %521, %526 : vector<16x1xf32>
    %528 = vector.broadcast %527 : vector<16x1xf32> to vector<16x32xf32>
    %529 = arith.divf %525, %528 : vector<16x32xf32>
    %530 = vector.broadcast %509 : vector<1x32xf32> to vector<16x32xf32>
    %531 = arith.addf %529, %530 : vector<16x32xf32>
    %c0_205 = arith.constant 0 : index
    %c0_206 = arith.constant 0 : index
    %532 = vector.load %arg17[%c0_205, %c0_206] : memref<32x64xbf16, #tpu.memory_space<vmem>>, vector<32x64xbf16>
    %533 = arith.truncf %531 : vector<16x32xf32> to vector<16x32xbf16>
    %cst_207 = arith.constant dense<0.000000e+00> : vector<16x64xf32>
    %534 = tpu.matmul %533, %532, %cst_207 {dimension_numbers = #tpu.dot_dimension_numbers<[1], [0], [0], [1], [0, 0, 1, 1], [], []>} : vector<16x32xbf16>, vector<32x64xbf16>, vector<16x64xf32> -> vector<16x64xf32>
    %c0_208 = arith.constant 0 : index
    %c0_209 = arith.constant 0 : index
    %535 = vector.load %arg18[%c0_208, %c0_209] : memref<1x64xf32, #tpu.memory_space<vmem>>, vector<1x64xf32>
    %536 = vector.broadcast %535 : vector<1x64xf32> to vector<16x64xf32>
    %537 = arith.addf %534, %536 : vector<16x64xf32>
    %cst_210 = arith.constant 0.000000e+00 : f32
    %538 = vector.broadcast %cst_210 : f32 to vector<16x64xf32>
    %539 = arith.maximumf %537, %538 : vector<16x64xf32>
    %c0_211 = arith.constant 0 : index
    %c0_212 = arith.constant 0 : index
    %540 = vector.load %arg19[%c0_211, %c0_212] : memref<64x32xbf16, #tpu.memory_space<vmem>>, vector<64x32xbf16>
    %541 = arith.truncf %539 : vector<16x64xf32> to vector<16x64xbf16>
    %cst_213 = arith.constant dense<0.000000e+00> : vector<16x32xf32>
    %542 = tpu.matmul %541, %540, %cst_213 {dimension_numbers = #tpu.dot_dimension_numbers<[1], [0], [0], [1], [0, 0, 1, 1], [], []>} : vector<16x64xbf16>, vector<64x32xbf16>, vector<16x32xf32> -> vector<16x32xf32>
    %c0_214 = arith.constant 0 : index
    %c0_215 = arith.constant 0 : index
    %543 = vector.load %arg20[%c0_214, %c0_215] : memref<1x32xf32, #tpu.memory_space<vmem>>, vector<1x32xf32>
    %544 = vector.broadcast %543 : vector<1x32xf32> to vector<16x32xf32>
    %545 = arith.addf %542, %544 : vector<16x32xf32>
    %546 = arith.addf %507, %545 : vector<16x32xf32>
    %c0_216 = arith.constant 0 : index
    %c0_217 = arith.constant 0 : index
    %547 = vector.load %arg21[%c0_216, %c0_217] : memref<16x32xf32, #tpu.memory_space<vmem>>, vector<16x32xf32>
    tpu.vector_store %arg21[%c0_216, %c0_217], %546 {strides = array<i32>} : memref<16x32xf32, #tpu.memory_space<vmem>>, vector<16x32xf32>,
    return
  }
  func.func @transform_0(%arg0: i32) -> (i32, i32) {
    %c0_i32 = arith.constant 0 : i32
    %c0_i32_0 = arith.constant 0 : i32
    return %arg0, %c0_i32 : i32, i32
  }
  func.func @transform_1(%arg0: i32) -> (i32, i32) {
    %c0_i32 = arith.constant 0 : i32
    %c0_i32_0 = arith.constant 0 : i32
    return %arg0, %c0_i32 : i32, i32
  }
  func.func @transform_2(%arg0: i32) -> (i32, i32, i32) {
    %c0_i32 = arith.constant 0 : i32
    %c0_i32_0 = arith.constant 0 : i32
    %c0_i32_1 = arith.constant 0 : i32
    return %arg0, %c0_i32, %c0_i32_0 : i32, i32, i32
  }
  func.func @transform_3(%arg0: i32) -> (i32, i32, i32) {
    %c0_i32 = arith.constant 0 : i32
    %c0_i32_0 = arith.constant 0 : i32
    %c0_i32_1 = arith.constant 0 : i32
    return %arg0, %c0_i32, %c0_i32_0 : i32, i32, i32
  }
  func.func @transform_4(%arg0: i32) -> (i32, i32) {
    %c0_i32 = arith.constant 0 : i32
    %c0_i32_0 = arith.constant 0 : i32
    %c0_i32_1 = arith.constant 0 : i32
    return %c0_i32, %c0_i32_0 : i32, i32
  }
  func.func @transform_5(%arg0: i32) -> (i32, i32) {
    %c0_i32 = arith.constant 0 : i32
    %c0_i32_0 = arith.constant 0 : i32
    %c0_i32_1 = arith.constant 0 : i32
    return %c0_i32, %c0_i32_0 : i32, i32
  }
  func.func @transform_6(%arg0: i32) -> (i32, i32) {
    %c0_i32 = arith.constant 0 : i32
    %c0_i32_0 = arith.constant 0 : i32
    %c0_i32_1 = arith.constant 0 : i32
    return %c0_i32, %c0_i32_0 : i32, i32
  }
  func.func @transform_7(%arg0: i32) -> (i32, i32) {
    %c0_i32 = arith.constant 0 : i32
    %c0_i32_0 = arith.constant 0 : i32
    %c0_i32_1 = arith.constant 0 : i32
    return %c0_i32, %c0_i32_0 : i32, i32
  }
  func.func @transform_8(%arg0: i32) -> (i32, i32) {
    %c0_i32 = arith.constant 0 : i32
    %c0_i32_0 = arith.constant 0 : i32
    %c0_i32_1 = arith.constant 0 : i32
    return %c0_i32, %c0_i32_0 : i32, i32
  }
  func.func @transform_9(%arg0: i32) -> (i32, i32) {
    %c0_i32 = arith.constant 0 : i32
    %c0_i32_0 = arith.constant 0 : i32
    %c0_i32_1 = arith.constant 0 : i32
    return %c0_i32, %c0_i32_0 : i32, i32
  }
  func.func @transform_10(%arg0: i32) -> (i32, i32) {
    %c0_i32 = arith.constant 0 : i32
    %c0_i32_0 = arith.constant 0 : i32
    %c0_i32_1 = arith.constant 0 : i32
    return %c0_i32, %c0_i32_0 : i32, i32
  }
  func.func @transform_11(%arg0: i32) -> (i32, i32) {
    %c0_i32 = arith.constant 0 : i32
    %c0_i32_0 = arith.constant 0 : i32
    %c0_i32_1 = arith.constant 0 : i32
    return %c0_i32, %c0_i32_0 : i32, i32
  }
  func.func @transform_12(%arg0: i32) -> (i32, i32) {
    %c0_i32 = arith.constant 0 : i32
    %c0_i32_0 = arith.constant 0 : i32
    %c0_i32_1 = arith.constant 0 : i32
    return %c0_i32, %c0_i32_0 : i32, i32
  }
  func.func @transform_13(%arg0: i32) -> (i32, i32) {
    %c0_i32 = arith.constant 0 : i32
    %c0_i32_0 = arith.constant 0 : i32
    %c0_i32_1 = arith.constant 0 : i32
    return %c0_i32, %c0_i32_0 : i32, i32
  }
  func.func @transform_14(%arg0: i32) -> (i32, i32) {
    %c0_i32 = arith.constant 0 : i32
    %c0_i32_0 = arith.constant 0 : i32
    %c0_i32_1 = arith.constant 0 : i32
    return %c0_i32, %c0_i32_0 : i32, i32
  }
  func.func @transform_15(%arg0: i32) -> (i32, i32) {
    %c0_i32 = arith.constant 0 : i32
    %c0_i32_0 = arith.constant 0 : i32
    %c0_i32_1 = arith.constant 0 : i32
    return %c0_i32, %c0_i32_0 : i32, i32
  }
  func.func @transform_16(%arg0: i32) -> (i32, i32) {
    %c0_i32 = arith.constant 0 : i32
    %c0_i32_0 = arith.constant 0 : i32
    %c0_i32_1 = arith.constant 0 : i32
    return %c0_i32, %c0_i32_0 : i32, i32
  }
  func.func @transform_17(%arg0: i32) -> (i32, i32) {
    %c0_i32 = arith.constant 0 : i32
    %c0_i32_0 = arith.constant 0 : i32
    %c0_i32_1 = arith.constant 0 : i32
    return %c0_i32, %c0_i32_0 : i32, i32
  }
  func.func @transform_18(%arg0: i32) -> (i32, i32) {
    %c0_i32 = arith.constant 0 : i32
    %c0_i32_0 = arith.constant 0 : i32
    %c0_i32_1 = arith.constant 0 : i32
    return %c0_i32, %c0_i32_0 : i32, i32
  }
  func.func @transform_19(%arg0: i32) -> (i32, i32) {
    %c0_i32 = arith.constant 0 : i32
    %c0_i32_0 = arith.constant 0 : i32
    %c0_i32_1 = arith.constant 0 : i32
    return %c0_i32, %c0_i32_0 : i32, i32
  }
  func.func @transform_20(%arg0: i32) -> (i32, i32) {
    %c0_i32 = arith.constant 0 : i32
    %c0_i32_0 = arith.constant 0 : i32
    return %arg0, %c0_i32 : i32, i32
  }
}

</mosaic_0001>

<bundles_post_ra>
// kernel: tpu_custom_call.1
= control target key start
LH: loop header
LB: loop body
LE: loop exit
PB: predicated region body
PF: predicated region fallthrough
CT: control target
= control target key end

     0   :  { %s4450_s0 = inlined_call_operand.vmem [shape: f32[16,32], index: 0, kind: input, shape index: {}]   ;;  %s4451_s1 = inlined_call_operand.vmem [shape: f32[32,32], index: 1, kind: input, shape index: {}]   ;;  %s4452_s2 = inlined_call_operand.hbm [shape: f32[2,8,8], index: 2, kind: input, shape index: {}]   ;;  %s4453_s3 = inlined_call_operand.hbm [shape: f32[2,8,16], index: 3, kind: input, shape index: {}]   ;;  %s4454_s4 = inlined_call_operand.hbm [shape: f32[3,32], index: 4, kind: input, shape index: {}]   ;;  %s4455_s5 = inlined_call_operand.hbm [shape: f32[3,32], index: 5, kind: input, shape index: {}]   ;;  %s4456_s6 = inlined_call_operand.hbm [shape: bf16[32,96], index: 6, kind: input, shape index: {}]   ;;  %s4457_s7 = inlined_call_operand.vmem [shape: f32[1,96], index: 7, kind: input, shape index: {}]   ;;  %s4458_s8 = inlined_call_operand.hbm [shape: bf16[32,32], index: 8, kind: input, shape index: {}]   ;;  %s4459_s9 = inlined_call_operand.hbm [shape: f32[1,32], index: 9, kind: input, shape index: {}]   ;;  %s4460_s10 = inlined_call_operand.vmem [shape: bf16[32,32], index: 10, kind: input, shape index: {}]   ;;  %s4461_s11 = inlined_call_operand.hbm [shape: f32[1,32], index: 11, kind: input, shape index: {}]   ;;  %s4462_s12 = inlined_call_operand.hbm [shape: bf16[32,64], index: 12, kind: input, shape index: {}]   ;;  %s4463_s13 = inlined_call_operand.hbm [shape: f32[1,64], index: 13, kind: input, shape index: {}]   ;;  %s4464_s14 = inlined_call_operand.vmem [shape: bf16[32,32], index: 14, kind: input, shape index: {}]   ;;  %s4465_s15 = inlined_call_operand.vmem [shape: f32[1,32], index: 15, kind: input, shape index: {}]   ;;  %s4466_s16 = inlined_call_operand.hbm [shape: bf16[32,64], index: 16, kind: input, shape index: {}]   ;;  %s4467_s17 = inlined_call_operand.vmem [shape: f32[1,64], index: 17, kind: input, shape index: {}]   ;;  %s4468_s18 = inlined_call_operand.vmem [shape: bf16[64,32], index: 18, kind: input, shape index: {}]   ;;  %s4469_s19 = inlined_call_operand.vmem [shape: f32[1,32], index: 19, kind: input, shape index: {}]   ;;  %s4470_s20 = inlined_call_operand.hbm [shape: f32[16,32], index: 20, kind: output, shape index: {}]  }
   0x1   :  { %4480 = sst [smem:[#allocation29_spill]] %s4450_s0 }
   0x2   :  { %4481 = sst [smem:[#allocation30_spill]] %s4451_s1 }
   0x3   :  { %4482 = sst [smem:[#allocation31_spill]] %s4452_s2 }
   0x4   :  { %4483 = sst [smem:[#allocation32_spill]] %s4453_s3 }
   0x5   :  { %4484 = sst [smem:[#allocation33_spill]] %s4454_s4 }
   0x6   :  { %25 = vsyncpa [#allocation4], 0 }
   0x7   :  { %26 = vsyncpa [#allocation7], 0 }
   0x8   :  { %27 = vsyncpa [#allocation10], 0 }
   0x9   :  { %28 = vsyncpa [#allocation13], 0 }
   0xa   :  { %29 = vsyncpa [#allocation16], 0 }
   0xb   :  { %30 = vsyncpa [#allocation19], 0 }
   0xc   :  { %31 = vsyncpa [#allocation5], 0  ;;  %s3603_s1 = smov [#allocation6]   ;;  %s3604_s23 = smov [#allocation9]  }
   0xd   :  { %s53_s22 = sshll.u32 %s3603_s1, 4  ;;  %s76_s24 = sshll.u32 %s3604_s23, 4  ;;  %s54_s22 = int_to_ptr.vmem [resolvable:$true] %s53_s22  ;;  %s77_s24 = int_to_ptr.vmem [resolvable:$true] %s76_s24 }
   0xe   :  { %s4485_s3 = sld [smem:[#allocation32_spill]] }
  0x14   :  { %s3325_s26 = scalar_lea.hbm %s4485_s3, 256 }
  0x15   :  { %p3326_p0 = scmp.ne.s32.totalorder %s4485_s3, %s3325_s26  ;;  %p3329_p1 = scmp.lt.u32.totalorder %s3325_s26, %s4485_s3 }
  0x17   :  { %p3331_p2 = pnand %p3329_p1, %p3326_p0 }
  0x19   :  { %3334 = shalt.err (!%p3331_p2)
}
  0x1a   :  { %s3335_s30 = scalar_lea.vmem %s54_s22, 256  ;;  %p3340_p4 = scmp.lt.s32.totalorder %s54_s22, %s54_s22 }
  0x1b   :  { %p3336_p3 = scmp.ne.s32.totalorder %s54_s22, %s3335_s30  ;;  %p3341_p5 = scmp.lt.s32.totalorder %s3335_s30, %s3335_s30 }
  0x1d   :  { %p3342_p6 = por %p3341_p5, %p3340_p4 }
  0x1f   :  { %p3343_p7 = pnand %p3342_p6, %p3336_p3 }
  0x21   :  { %3346 = shalt.err (!%p3343_p7)
}
  0x22   :  { %s4476_s0 = smov 128   ;;  %s3606_s21 = smov 8  }
  0x23   :  { %59 = dma.hbm_to_vmem [thread:$0]  %s4485_s3, 256, %s54_s22, [#allocation7], %s4476_s0, %s4476_s0, %s3606_s21  }
  0x24   :  { %s3347_s26 = scalar_lea.hbm %s4455_s5, 64 }
  0x25   :  { %p3348_p8 = scmp.ne.s32.totalorder %s4455_s5, %s3347_s26  ;;  %p3351_p9 = scmp.lt.u32.totalorder %s3347_s26, %s4455_s5 }
  0x27   :  { %p3353_p10 = pnand %p3351_p9, %p3348_p8 }
  0x29   :  { %3356 = shalt.err (!%p3353_p10)
}
  0x2a   :  { %s3357_s30 = scalar_lea.vmem %s77_s24, 64  ;;  %p3362_p12 = scmp.lt.s32.totalorder %s77_s24, %s77_s24 }
  0x2b   :  { %p3358_p11 = scmp.ne.s32.totalorder %s77_s24, %s3357_s30  ;;  %p3363_p13 = scmp.lt.s32.totalorder %s3357_s30, %s3357_s30 }
  0x2d   :  { %p3364_p0 = por %p3363_p13, %p3362_p12 }
  0x2f   :  { %p3365_p1 = pnand %p3364_p0, %p3358_p11 }
  0x31   :  { %3368 = shalt.err (!%p3365_p1)
}
  0x32   :  { %79 = dma.hbm_to_vmem [thread:$0]  %s4455_s5, 64, %s77_s24, [#allocation10]  }
  0x33   :  { %s3607_s1 = smov [#allocation12]   ;;  %s3608_s2 = smov [#allocation15]  }
  0x34   :  { %s99_s23 = sshll.u32 %s3607_s1, 4  ;;  %s124_s25 = sshll.u32 %s3608_s2, 4  ;;  %s100_s23 = int_to_ptr.vmem [resolvable:$true] %s99_s23  ;;  %s3765_s25 = int_to_ptr.vmem [resolvable:$true] %s124_s25 }
  0x35   :  { %s3369_s28 = scalar_lea.hbm %s4458_s8, 256 }
  0x36   :  { %p3370_p2 = scmp.ne.s32.totalorder %s4458_s8, %s3369_s28  ;;  %p3373_p3 = scmp.lt.u32.totalorder %s3369_s28, %s4458_s8 }
  0x38   :  { %p3375_p4 = pnand %p3373_p3, %p3370_p2 }
  0x3a   :  { %3378 = shalt.err (!%p3375_p4)
}
  0x3b   :  { %s3379_s5 = scalar_lea.vmem %s100_s23, 256  ;;  %p3384_p6 = scmp.lt.s32.totalorder %s100_s23, %s100_s23 }
  0x3c   :  { %p3380_p5 = scmp.ne.s32.totalorder %s100_s23, %s3379_s5  ;;  %p3385_p7 = scmp.lt.s32.totalorder %s3379_s5, %s3379_s5 }
  0x3e   :  { %p3386_p8 = por %p3385_p7, %p3384_p6 }
  0x40   :  { %p3387_p9 = pnand %p3386_p8, %p3380_p5 }
  0x42   :  { %3390 = shalt.err (!%p3387_p9)
}
  0x43   :  { %s4478_s24 = smov 64   ;;  %s3610_s22 = smov 4  }
  0x44   :  { %105 = dma.hbm_to_vmem [thread:$0]  %s4458_s8, 256, %s100_s23, [#allocation13], %s4478_s24, %s4478_s24, %s3610_s22  }
  0x45   :  { %s3391_s26 = scalar_lea.hbm %s4461_s11, 16 }
  0x46   :  { %p3392_p10 = scmp.ne.s32.totalorder %s4461_s11, %s3391_s26  ;;  %p3395_p11 = scmp.lt.u32.totalorder %s3391_s26, %s4461_s11 }
  0x48   :  { %p3397_p12 = pnand %p3395_p11, %p3392_p10 }
  0x4a   :  { %3400 = shalt.err (!%p3397_p12)
}
  0x4b   :  { %s3401_s30 = scalar_lea.vmem %s3765_s25, 16  ;;  %s3405_s8 = scalar_lea.vmem %s3765_s25, 32 }
  0x4c   :  { %p3402_p13 = scmp.ne.s32.totalorder %s3765_s25, %s3401_s30  ;;  %p3406_p0 = scmp.lt.s32.totalorder %s3765_s25, %s3765_s25 }
  0x4d   :  { %p3407_p1 = scmp.lt.s32.totalorder %s3405_s8, %s3401_s30 }
  0x4f   :  { %p3408_p2 = por %p3407_p1, %p3406_p0 }
  0x51   :  { %p3409_p3 = pnand %p3408_p2, %p3402_p13 }
  0x53   :  { %3412 = shalt.err (!%p3409_p3)
}
  0x54   :  { %127 = dma.hbm_to_vmem [thread:$0]  %s4461_s11, 16, %s3765_s25, [#allocation16]  }
  0x55   :  { %s3611_s3 = smov [#allocation18]   ;;  %s3612_s0 = smov [#allocation3]  }
  0x56   :  { %s146_s1 = sshll.u32 %s3611_s3, 4  ;;  %s41_s2 = sshll.u32 %s3612_s0, 4  ;;  %s147_s1 = int_to_ptr.vmem [resolvable:$true] %s146_s1  ;;  %s3800_s2 = int_to_ptr.vmem [resolvable:$true] %s41_s2 }
  0x57   :  { %s3413_s28 = scalar_lea.hbm %s4463_s13, 16 }
  0x58   :  { %p3414_p4 = scmp.ne.s32.totalorder %s4463_s13, %s3413_s28  ;;  %p3417_p5 = scmp.lt.u32.totalorder %s3413_s28, %s4463_s13 }
  0x5a   :  { %p3419_p6 = pnand %p3417_p5, %p3414_p4 }
  0x5c   :  { %3422 = shalt.err (!%p3419_p6)
}
  0x5d   :  { %s3423_s11 = scalar_lea.vmem %s147_s1, 16  ;;  %s3427_s25 = scalar_lea.vmem %s147_s1, 32 }
  0x5e   :  { %p3424_p7 = scmp.ne.s32.totalorder %s147_s1, %s3423_s11  ;;  %p3428_p8 = scmp.lt.s32.totalorder %s147_s1, %s147_s1 }
  0x5f   :  { %p3429_p9 = scmp.lt.s32.totalorder %s3427_s25, %s3423_s11 }
  0x61   :  { %p3430_p10 = por %p3429_p9, %p3428_p8 }
  0x63   :  { %p3431_p11 = pnand %p3430_p10, %p3424_p7 }
  0x65   :  { %3434 = shalt.err (!%p3431_p11)
}
  0x66   :  { %149 = dma.hbm_to_vmem [thread:$0]  %s4463_s13, 16, %s147_s1, [#allocation19]  }
  0x67   :  { %s4486_s26 = sld [smem:[#allocation31_spill]] }
  0x6d   :  { %s3435_s27 = scalar_lea.hbm %s4486_s26, 256 }
  0x6e   :  { %p3436_p12 = scmp.ne.s32.totalorder %s4486_s26, %s3435_s27  ;;  %p3439_p13 = scmp.lt.u32.totalorder %s3435_s27, %s4486_s26 }
  0x70   :  { %p3441_p0 = pnand %p3439_p13, %p3436_p12 }
  0x72   :  { %3444 = shalt.err (!%p3441_p0)
}
  0x73   :  { %s3445_s8 = scalar_lea.vmem %s3800_s2, 256  ;;  %p3450_p2 = scmp.lt.s32.totalorder %s3800_s2, %s3800_s2 }
  0x74   :  { %p3446_p1 = scmp.ne.s32.totalorder %s3800_s2, %s3445_s8  ;;  %p3451_p3 = scmp.lt.s32.totalorder %s3445_s8, %s3445_s8 }
  0x76   :  { %p3452_p4 = por %p3451_p3, %p3450_p2 }
  0x78   :  { %p3453_p5 = pnand %p3452_p4, %p3446_p1 }
  0x7a   :  { %3456 = shalt.err (!%p3453_p5)
}
  0x7b   :  { %s4487_s13 = smov 128   ;;  %s3613_s25 = smov [#allocation8]  }
  0x7c   :  { %47 = dma.hbm_to_vmem [thread:$0]  %s4486_s26, 256, %s3800_s2, [#allocation4], %s4487_s13, %s4487_s13, %s3606_s21  }
  0x7d   :  { %s66_s23 = sshll.u32 %s3613_s25, 4  ;;  %s3614_s5 = smov [#allocation11]   ;;  %s67_s23 = int_to_ptr.vmem [resolvable:$true] %s66_s23 }
  0x7e   :  { %s85_s3 = sshll.u32 %s3614_s5, 4  ;;  %s4488_s4 = sld [smem:[#allocation33_spill]]  ;;  %s3834_s3 = int_to_ptr.vmem [resolvable:$true] %s85_s3 }
  0x84   :  { %s3457_s28 = scalar_lea.hbm %s4488_s4, 64 }
  0x85   :  { %p3458_p6 = scmp.ne.s32.totalorder %s4488_s4, %s3457_s28  ;;  %p3461_p7 = scmp.lt.u32.totalorder %s3457_s28, %s4488_s4 }
  0x87   :  { %p3463_p8 = pnand %p3461_p7, %p3458_p6 }
  0x89   :  { %3466 = shalt.err (!%p3463_p8)
}
  0x8a   :  { %s3467_s2 = scalar_lea.vmem %s67_s23, 64  ;;  %p3472_p10 = scmp.lt.s32.totalorder %s67_s23, %s67_s23 }
  0x8b   :  { %p3468_p9 = scmp.ne.s32.totalorder %s67_s23, %s3467_s2  ;;  %p3473_p11 = scmp.lt.s32.totalorder %s3467_s2, %s3467_s2 }
  0x8d   :  { %p3474_p12 = por %p3473_p11, %p3472_p10 }
  0x8f   :  { %p3475_p13 = pnand %p3474_p12, %p3468_p9 }
  0x91   :  { %3478 = shalt.err (!%p3475_p13)
}
  0x92   :  { %69 = dma.hbm_to_vmem [thread:$0]  %s4488_s4, 64, %s67_s23, [#allocation7]  }
  0x93   :  { %s3479_s5 = scalar_lea.hbm %s4456_s6, 256 }
  0x94   :  { %p3480_p0 = scmp.ne.s32.totalorder %s4456_s6, %s3479_s5  ;;  %p3483_p1 = scmp.lt.u32.totalorder %s3479_s5, %s4456_s6 }
  0x96   :  { %p3485_p2 = pnand %p3483_p1, %p3480_p0 }
  0x98   :  { %3488 = shalt.err (!%p3485_p2)
}
  0x99   :  { %s3489_s29 = scalar_lea.vmem %s3834_s3, 256  ;;  %p3494_p4 = scmp.lt.s32.totalorder %s3834_s3, %s3834_s3 }
  0x9a   :  { %p3490_p3 = scmp.ne.s32.totalorder %s3834_s3, %s3489_s29  ;;  %p3495_p5 = scmp.lt.s32.totalorder %s3489_s29, %s3489_s29 }
  0x9c   :  { %p3496_p6 = por %p3495_p5, %p3494_p4 }
  0x9e   :  { %p3497_p7 = pnand %p3496_p6, %p3490_p3 }
  0xa0   :  { %3500 = shalt.err (!%p3497_p7)
}
  0xa1   :  { %s4489_s23 = smov 64   ;;  %s3615_s8 = smov [#allocation14]  }
  0xa2   :  { %91 = dma.hbm_to_vmem [thread:$0]  %s4456_s6, 256, %s3834_s3, [#allocation10], %s4489_s23, %s4489_s23, %s3610_s22  }
  0xa3   :  { %s112_s2 = sshll.u32 %s3615_s8, 4  ;;  %s3616_s26 = smov [#allocation17]   ;;  %s113_s2 = int_to_ptr.vmem [resolvable:$true] %s112_s2 }
  0xa4   :  { %s133_s1 = sshll.u32 %s3616_s26, 4  ;;  %s3501_s5 = scalar_lea.hbm %s4459_s9, 16  ;;  %s3868_s1 = int_to_ptr.vmem [resolvable:$true] %s133_s1 }
  0xa5   :  { %p3502_p8 = scmp.ne.s32.totalorder %s4459_s9, %s3501_s5  ;;  %p3505_p9 = scmp.lt.u32.totalorder %s3501_s5, %s4459_s9 }
  0xa7   :  { %p3507_p10 = pnand %p3505_p9, %p3502_p8 }
  0xa9   :  { %3510 = shalt.err (!%p3507_p10)
}
  0xaa   :  { %s3511_s6 = scalar_lea.vmem %s113_s2, 16  ;;  %s3515_s3 = scalar_lea.vmem %s113_s2, 32 }
  0xab   :  { %p3512_p11 = scmp.ne.s32.totalorder %s113_s2, %s3511_s6  ;;  %p3516_p12 = scmp.lt.s32.totalorder %s113_s2, %s113_s2 }
  0xac   :  { %p3517_p13 = scmp.lt.s32.totalorder %s3515_s3, %s3511_s6 }
  0xae   :  { %p3518_p0 = por %p3517_p13, %p3516_p12 }
  0xb0   :  { %p3519_p1 = pnand %p3518_p0, %p3512_p11 }
  0xb2   :  { %3522 = shalt.err (!%p3519_p1)
}
  0xb3   :  { %115 = dma.hbm_to_vmem [thread:$0]  %s4459_s9, 16, %s113_s2, [#allocation13]  }
  0xb4   :  { %s3523_s26 = scalar_lea.hbm %s4462_s12, 256 }
  0xb5   :  { %p3524_p2 = scmp.ne.s32.totalorder %s4462_s12, %s3523_s26  ;;  %p3527_p3 = scmp.lt.u32.totalorder %s3523_s26, %s4462_s12 }
  0xb7   :  { %p3529_p4 = pnand %p3527_p3, %p3524_p2 }
  0xb9   :  { %3532 = shalt.err (!%p3529_p4)
}
  0xba   :  { %s3533_s24 = scalar_lea.vmem %s3868_s1, 256  ;;  %p3538_p6 = scmp.lt.s32.totalorder %s3868_s1, %s3868_s1 }
  0xbb   :  { %p3534_p5 = scmp.ne.s32.totalorder %s3868_s1, %s3533_s24  ;;  %p3539_p7 = scmp.lt.s32.totalorder %s3533_s24, %s3533_s24 }
  0xbd   :  { %p3540_p8 = por %p3539_p7, %p3538_p6 }
  0xbf   :  { %p3541_p9 = pnand %p3540_p8, %p3534_p5 }
  0xc1   :  { %3544 = shalt.err (!%p3541_p9)
}
  0xc2   :  { %139 = dma.hbm_to_vmem [thread:$0]  %s4462_s12, 256, %s3868_s1, [#allocation16], %s4489_s23, %s4489_s23, %s3610_s22  }
  0xc3   :  { %s3617_s27 = smov [#allocation20]   ;;  %s3545_s29 = scalar_lea.hbm %s4466_s16, 256 }
  0xc4   :  { %s159_s28 = sshll.u32 %s3617_s27, 4  ;;  %p3546_p10 = scmp.ne.s32.totalorder %s4466_s16, %s3545_s29  ;;  %s160_s28 = int_to_ptr.vmem [resolvable:$true] %s159_s28 }
  0xc5   :  { %p3549_p11 = scmp.lt.u32.totalorder %s3545_s29, %s4466_s16 }
  0xc7   :  { %p3551_p12 = pnand %p3549_p11, %p3546_p10 }
  0xc9   :  { %3554 = shalt.err (!%p3551_p12)
}
  0xca   :  { %s3555_s11 = scalar_lea.vmem %s160_s28, 256  ;;  %p3560_p0 = scmp.lt.s32.totalorder %s160_s28, %s160_s28 }
  0xcb   :  { %p3556_p13 = scmp.ne.s32.totalorder %s160_s28, %s3555_s11  ;;  %p3561_p1 = scmp.lt.s32.totalorder %s3555_s11, %s3555_s11 }
  0xcd   :  { %p3562_p2 = por %p3561_p1, %p3560_p0 }
  0xcf   :  { %p3563_p3 = pnand %p3562_p2, %p3556_p13 }
  0xd1   :  { %3566 = shalt.err (!%p3563_p3)
}
  0xd2   :  { %165 = dma.hbm_to_vmem [thread:$0]  %s4466_s16, 256, %s160_s28, [#allocation19], %s4489_s23, %s4489_s23, %s3610_s22  }
  0xd3   :  { %3589 = dma.done.wait [#allocation4], 256  }
  0xd4   :  { %3590 = vsyncadd [#allocation4], 4294967040 }
  0xd5   :  { %3591 = dma.done.wait [#allocation7], 320  }
  0xd6   :  { %3592 = vsyncadd [#allocation7], 4294966976 }
  0xd7   :  { %3593 = dma.done.wait [#allocation10], 320  }
  0xd8   :  { %3594 = vsyncadd [#allocation10], 4294966976 }
  0xd9   :  { %3595 = dma.done.wait [#allocation13], 272  }
  0xda   :  { %3596 = vsyncadd [#allocation13], 4294967024 }
  0xdb   :  { %3597 = dma.done.wait [#allocation16], 272  }
  0xdc   :  { %3598 = vsyncadd [#allocation16], 4294967024 }
  0xdd   :  { %3599 = dma.done.wait [#allocation19], 272  }
  0xde   :  { %3600 = vsyncadd [#allocation19], 4294967024  ;;  %vm214_vm0 = vcmask 261120   ;;  %s4490_s0 = sld [smem:[#allocation29_spill]]  ;;  %v3221_v14 = vld [vmem:[#allocation11] sm:$0xff]   ;;  %v3618_v15 = vmov 0.0  }
  0xdf   :  { %2939 = vmatprep.subr.bf16.mxu1 %v3618_v15  ;;  %vm3619_vm1 = vmmov 0   ;;  %v3222_v16 = vld [vmem:[#allocation11 + $0x8] sm:$0xff]   ;;  %2953 = vmatprep.subr.bf16.mxu0 %v3618_v15  ;;  %v2782_v33 = vld [vmem:[#allocation8] ss:$0 sm:$0xff]  ;;  %v2783_v39 = vld [vmem:[#allocation9] ss:$0 sm:$0xff] }
  0xe0   :  { %2943 = vmatprep.mubr.msk.bf16.mxu1 %vm3619_vm1, %v3618_v15  ;;  %2940 = vmatpush3.bf16.msra.mxu1 %v3221_v14  ;;  %v2784_v44 = vld [vmem:[%s4457_s7] ss:$0 sm:$0xff]  ;;  %s3620_s2 = smov 88   ;;  %s3621_s27 = smov 96   ;;  %vm344_vm6 = vcmask 64512   ;;  %vm410_vm9 = vcmask 1043456  }
  0xe1   :  { %2941 = vmatprep.subr.bf16.mxu1 %v3618_v15  ;;  %2955 = vmatprep.mubr.msk.bf16.mxu0 %vm3619_vm1, %v3618_v15  ;;  %s3622_s28 = smov 120   ;;  %s3623_s7 = smov 112   ;;  %vm795_vm10 = vcmask 130112   ;;  %vm801_vm11 = vcmask 195712   ;;  %vm807_vm12 = vcmask 261312  }
  0xe2   :  { %s3624_s6 = smov 80   ;;  %s3625_s3 = smov 104  }
  0xe3   :  { %s3626_s29 = smov 72   ;;  %s3627_s4 = smov 56  }
  0xe4   :  { %v3920_v0 = vld [vmem:[%s4490_s0] sm:$0xff]  ;;  %v3925_v1 = vld [vmem:[%s4490_s0 + $0x8] sm:$0xff]  ;;  %2942 = vmatpush3.bf16.msra.mxu1 %v3222_v16  ;;  %s3628_s30 = smov 48   ;;  %s3630_s8 = smov 16  }
  0xe5   :  { %v215_v2 = vsel %vm214_vm0, %v3920_v0, 0.0  ;;  %v218_v3 = vsel %vm214_vm0, %v3925_v1, 0.0  ;;  %2947 = vmatprep.subr.bf16.mxu1 %v3618_v15  ;;  %s3631_s26 = smov 24   ;;  %s4491_s1 = sld [smem:[#allocation30_spill]] }
  0xe6   :  { %216 = vadd.xlane.f32.xlu0 %v215_v2 }
  0xea   :  { %219 = vadd.xlane.f32.xlu0 %v218_v3 }
 0x173   :  { %v217_v4 = vpop.xlane.xlu0 %216 }
 0x174   :  { %v222_v5 = vmul.f32 0.03125, %v217_v4 }
 0x176   :  { %v224_v6 = vsub.f32 %v3920_v0, %v222_v5 }
 0x177   :  { %v220_v7 = vpop.xlane.xlu0 %219 }
 0x178   :  { %v223_v8 = vmul.f32 0.03125, %v220_v7  ;;  %v226_v9 = vmul.f32 %v224_v6, %v224_v6  ;;  %v255_v35 = vmul.f32 %v2782_v33, %v224_v6 }
 0x17a   :  { %v225_v10 = vsub.f32 %v3925_v1, %v223_v8  ;;  %v228_v11 = vsel %vm214_vm0, %v226_v9, 0.0 }
 0x17b   :  { %229 = vadd.xlane.f32.xlu1 %v228_v11 }
 0x17c   :  { %v227_v12 = vmul.f32 %v225_v10, %v225_v10  ;;  %v256_v36 = vmul.f32 %v2782_v33, %v225_v10 }
 0x17e   :  { %v231_v13 = vsel %vm214_vm0, %v227_v12, 0.0 }
 0x17f   :  { %232 = vadd.xlane.f32.xlu1 %v231_v13  ;;  %v337_v13 = vld [vmem:[#allocation3] sm:$0xff] }
 0x180   :  { %vm338_vm7 = vcmp.eq.f32.partialorder %v337_v13, 0.0 }
 0x181   :  { %v339_v16 = vsel %vm338_vm7, -1e+09, %v3618_v15 }
 0x208   :  { %v230_v17 = vpop.xlane.xlu1 %229 }
 0x209   :  { %v235_v18 = vmul.f32 0.032258064, %v230_v17 }
 0x20b   :  { %3237 = vrsqrt.f32 %v235_v18  ;;  %vm239_vm2 = vcmp.eq.f32.partialorder %v235_v18, inf  ;;  %v242_v23 = vand.u32 2147483648, %v235_v18  ;;  %vm241_vm3 = vcmp.eq.f32.partialorder %v235_v18, 0.0 }
 0x20c   :  { %v233_v19 = vpop.xlane.xlu1 %232 }
 0x20d   :  { %v236_v20 = vmul.f32 0.032258064, %v233_v19 }
 0x20f   :  { %3239 = vrsqrt.f32 %v236_v20  ;;  %vm246_vm4 = vcmp.eq.f32.partialorder %v236_v20, inf  ;;  %v249_v29 = vand.u32 2147483648, %v236_v20  ;;  %vm248_vm5 = vcmp.eq.f32.partialorder %v236_v20, 0.0 }
 0x215   :  { %v3238_v21 = vpop.eup %3237 }
 0x216   :  { %v238_v22 = vmul.f32 %v3238_v21, %v235_v18 }
 0x218   :  { %v240_v24 = vsel %vm239_vm2, %v235_v18, %v238_v22 }
 0x219   :  { %v3240_v25 = vpop.eup %3239  ;;  %v243_v26 = vsel %vm241_vm3, %v242_v23, %v240_v24 }
 0x21a   :  { %v257_v27 = vadd.f32 1e-06, %v243_v26  ;;  %v245_v28 = vmul.f32 %v3240_v25, %v236_v20 }
 0x21c   :  { %3241 = vrcp.f32 %v257_v27  ;;  %v247_v30 = vsel %vm246_vm4, %v236_v20, %v245_v28  ;;  %vm1606_vm4 = vcmask 130048  }
 0x21d   :  { %v250_v31 = vsel %vm248_vm5, %v249_v29, %v247_v30 }
 0x21e   :  { %v258_v32 = vadd.f32 1e-06, %v250_v31 }
 0x220   :  { %3243 = vrcp.f32 %v258_v32 }
 0x226   :  { %v3242_v34 = vpop.eup %3241 }
 0x227   :  { %v260_v37 = vmul.f32 %v3242_v34, %v255_v35 }
 0x229   :  { %v267_v41 = vadd.f32 %v2783_v39, %v260_v37 }
 0x22a   :  { %v3244_v38 = vpop.eup %3243 }
 0x22b   :  { %v262_v40 = vmul.f32 %v3244_v38, %v256_v36 }
 0x22d   :  { %v268_v42 = vadd.f32 %v2783_v39, %v262_v40 }
 0x22f   :  { %v273_v43 = vpack.c.bf16 %v268_v42, %v267_v41  ;;  %v810_v42 = vld [vmem:[#allocation3 + $0x8] sm:$0xff] }
 0x230   :  { %vm811_vm8 = vcmp.eq.f32.partialorder %v810_v42, 0.0 }
 0x231   :  { %2944 = vmatmul.mubr.msk.bf16.vlgmr.msra.gmra.mrb[0].mxu1 %vm214_vm0, %v273_v43 }
 0x232   :  { %2949 = vmatprep.mubr.msk.bf16.mxu1 %vm3619_vm1, %v3618_v15 }
 0x304   :  { %v330_v45 = vpop.f32.mrb[0].mxu1 }
 0x305   :  { %v331_v46 = vadd.f32 %v2784_v44, %v330_v45  ;;  %v2945_v47 = vpop.f32.mrb[1].mxu1 }
 0x306   :  { %v333_v48 = vpop.f32.mrb[2].mxu1  ;;  %v812_v47 = vsel %vm811_vm8, -1e+09, %v3618_v15 }
 0x307   :  { %v3949_v49 = vpack.c.bf16 %v331_v46, %v331_v46  ;;  %v2946_v50 = vpop.f32.mrb[3].mxu1  ;;  %v334_v51 = vadd.f32 %v2784_v44, %v333_v48 }
 0x309   :  { %456 = vrot.lane.b32.xlu1 %v3949_v49, %s3620_s2  ;;  %342 = vrot.lane.b32.xlu0 %v3949_v49, %s3621_s27  ;;  %v3963_v52 = vpack.c.bf16 %v334_v51, %v334_v51 }
 0x30d   :  { %454 = vrot.lane.b32.xlu1 %v3949_v49, %s3622_s28  ;;  %566 = vrot.lane.b32.xlu0 %v3949_v49, %s3623_s7 }
 0x311   :  { %568 = vrot.lane.b32.xlu1 %v3949_v49, %s3624_s6  ;;  %678 = vrot.lane.b32.xlu0 %v3949_v49, %s3625_s3 }
 0x315   :  { %680 = vrot.lane.b32.xlu1 %v3949_v49, %s3626_s29  ;;  %927 = vrot.lane.b32.xlu0 %v3963_v52, %s3620_s2 }
 0x319   :  { %1039 = vrot.lane.b32.xlu0 %v3963_v52, %s3624_s6  ;;  %815 = vrot.lane.b32.xlu1 %v3963_v52, %s3621_s27 }
 0x31d   :  { %1151 = vrot.lane.b32.xlu0 %v3963_v52, %s3626_s29  ;;  %925 = vrot.lane.b32.xlu1 %v3963_v52, %s3622_s28 }
 0x321   :  { %1037 = vrot.lane.b32.xlu1 %v3963_v52, %s3623_s7 }
 0x325   :  { %1149 = vrot.lane.b32.xlu1 %v3963_v52, %s3625_s3 }
 0x329   :  { %518 = vrot.lane.b32.xlu1 %v3949_v49, %s3627_s4 }
 0x37b   :  { %v343_v53 = vpop.permute.xlu0 %342  ;;  %v457_v55 = vpop.permute.xlu1 %456 }
 0x37c   :  { %v349_v54 = vsel %vm344_vm6, %v343_v53, 0  ;;  %v462_v57 = vsel %vm344_vm6, %v457_v55, 0 }
 0x37d   :  { %2948 = vmatpush3.bf16.xpose.msra.mxu1 %v349_v54 }
 0x37e   :  { %2959 = vmatprep.subr.bf16.mxu1 %v3618_v15 }
 0x37f   :  { %v455_v56 = vpop.permute.xlu1 %454  ;;  %v567_v61 = vpop.permute.xlu0 %566 }
 0x383   :  { %v569_v58 = vpop.permute.xlu1 %568  ;;  %v679_v2 = vpop.permute.xlu0 %678 }
 0x384   :  { %2950 = vmatmul.mubr.msk.bf16.vlgmr.msra.gmra.mrb[4].mxu1 %vm344_vm6, %v3949_v49  ;;  %v574_v59 = vsel %vm344_vm6, %v569_v58, 0 }
 0x385   :  { %2960 = vmatpush3.bf16.xpose.msra.mxu1 %v462_v57  ;;  %2961 = vmatprep.mubr.msk.bf16.mxu1 %vm3619_vm1, %v3618_v15 }
 0x386   :  { %2971 = vmatprep.subr.bf16.mxu1 %v3618_v15 }
 0x387   :  { %v681_v60 = vpop.permute.xlu1 %680  ;;  %v928_v4 = vpop.permute.xlu0 %927 }
 0x388   :  { %v686_v62 = vsel %vm344_vm6, %v681_v60, 0  ;;  %v933_v5 = vsel %vm344_vm6, %v928_v4, 0 }
 0x38b   :  { %v816_v63 = vpop.permute.xlu1 %815  ;;  %v1040_v6 = vpop.permute.xlu0 %1039 }
 0x38c   :  { %2962 = vmatmul.mubr.msk.bf16.vlgmr.msra.gmra.mrb[8].mxu1 %vm344_vm6, %v455_v56  ;;  %v821_v3 = vsel %vm344_vm6, %v816_v63, 0  ;;  %v1045_v8 = vsel %vm344_vm6, %v1040_v6, 0 }
 0x38d   :  { %2972 = vmatpush3.bf16.xpose.msra.mxu1 %v574_v59  ;;  %2973 = vmatprep.mubr.msk.bf16.mxu1 %vm3619_vm1, %v3618_v15 }
 0x38e   :  { %2983 = vmatprep.subr.bf16.mxu1 %v3618_v15 }
 0x38f   :  { %v926_v7 = vpop.permute.xlu1 %925  ;;  %v1152_v9 = vpop.permute.xlu0 %1151 }
 0x390   :  { %v1157_v11 = vsel %vm344_vm6, %v1152_v9, 0 }
 0x393   :  { %v1038_v10 = vpop.permute.xlu1 %1037 }
 0x394   :  { %2974 = vmatmul.mubr.msk.bf16.vlgmr.msra.gmra.mrb[12].mxu1 %vm344_vm6, %v567_v61 }
 0x395   :  { %2984 = vmatpush3.bf16.xpose.msra.mxu1 %v686_v62  ;;  %2985 = vmatprep.mubr.msk.bf16.mxu1 %vm3619_vm1, %v3618_v15 }
 0x396   :  { %2995 = vmatprep.subr.bf16.mxu1 %v3618_v15 }
 0x397   :  { %v1150_v12 = vpop.permute.xlu1 %1149 }
 0x39c   :  { %2986 = vmatmul.mubr.msk.bf16.vlgmr.msra.gmra.mrb[16].mxu1 %vm344_vm6, %v679_v2 }
 0x39d   :  { %2996 = vmatpush3.bf16.xpose.msra.mxu1 %v821_v3  ;;  %2997 = vmatprep.mubr.msk.bf16.mxu1 %vm3619_vm1, %v3618_v15 }
 0x39e   :  { %3007 = vmatprep.subr.bf16.mxu1 %v3618_v15 }
 0x3a4   :  { %2998 = vmatmul.mubr.msk.bf16.vlgmr.msra.gmra.mrb[20].mxu1 %vm344_vm6, %v3963_v52 }
 0x3a5   :  { %3008 = vmatpush3.bf16.xpose.msra.mxu1 %v933_v5  ;;  %3009 = vmatprep.mubr.msk.bf16.mxu1 %vm3619_vm1, %v3618_v15 }
 0x3a6   :  { %3019 = vmatprep.subr.bf16.mxu1 %v3618_v15 }
 0x3ac   :  { %3010 = vmatmul.mubr.msk.bf16.vlgmr.msra.gmra.mrb[24].mxu1 %vm344_vm6, %v926_v7 }
 0x3ad   :  { %3020 = vmatpush3.bf16.xpose.msra.mxu1 %v1045_v8  ;;  %3021 = vmatprep.mubr.msk.bf16.mxu1 %vm3619_vm1, %v3618_v15 }
 0x3ae   :  { %3031 = vmatprep.subr.bf16.mxu1 %v3618_v15 }
 0x3b4   :  { %3022 = vmatmul.mubr.msk.bf16.vlgmr.msra.gmra.mrb[28].mxu1 %vm344_vm6, %v1038_v10 }
 0x3b5   :  { %3032 = vmatpush3.bf16.xpose.msra.mxu1 %v1157_v11  ;;  %3033 = vmatprep.mubr.msk.bf16.mxu1 %vm3619_vm1, %v3618_v15 }
 0x3b6   :  { %3043 = vmatprep.subr.bf16.mxu1 %v3618_v15 }
 0x3bc   :  { %3034 = vmatmul.mubr.msk.bf16.vlgmr.msra.gmra.mrb[32].mxu1 %vm344_vm6, %v1150_v12 }
 0x3bd   :  { %3047 = vmatprep.mubr.msk.bf16.mxu1 %vm3619_vm1, %v3618_v15 }
 0x457   :  { %v385_v14 = vpop.f32.mrb[4].mxu1 }
 0x458   :  { %v391_v17 = vmul.f32 0.35355338, %v385_v14  ;;  %v2951_v18 = vpop.f32.mrb[5].mxu1 }
 0x459   :  { %v388_v19 = vpop.f32.mrb[6].mxu1  ;;  %v4052_v18 = vpop.permute.xlu1 %518 }
 0x45a   :  { %v2952_v20 = vpop.f32.mrb[7].mxu1  ;;  %v4026_v21 = vadd.f32 %v391_v17, %v339_v16 }
 0x45c   :  { %v393_v22 = vsel %vm344_vm6, %v4026_v21, -inf }
 0x45d   :  { %394 = vmax.xlane.f32.xlu0 %v393_v22 }
 0x45f   :  { %v498_v23 = vpop.f32.mrb[8].mxu1 }
 0x460   :  { %v504_v24 = vmul.f32 0.35355338, %v498_v23  ;;  %v2963_v25 = vpop.f32.mrb[9].mxu1 }
 0x461   :  { %v501_v26 = vpop.f32.mrb[10].mxu1 }
 0x462   :  { %v2964_v27 = vpop.f32.mrb[11].mxu1  ;;  %v4030_v28 = vadd.f32 %v504_v24, %v339_v16 }
 0x464   :  { %v506_v29 = vsel %vm344_vm6, %v4030_v28, -inf }
 0x465   :  { %507 = vmax.xlane.f32.xlu1 %v506_v29 }
 0x467   :  { %v610_v30 = vpop.f32.mrb[12].mxu1 }
 0x468   :  { %v2975_v31 = vpop.f32.mrb[13].mxu1  ;;  %v616_v55 = vmul.f32 0.35355338, %v610_v30 }
 0x469   :  { %v613_v32 = vpop.f32.mrb[14].mxu1 }
 0x46a   :  { %v2976_v33 = vpop.f32.mrb[15].mxu1  ;;  %v617_v59 = vadd.f32 %v616_v55, %v339_v16 }
 0x46c   :  { %v618_v3 = vsel %vm344_vm6, %v617_v59, -inf }
 0x46f   :  { %v722_v34 = vpop.f32.mrb[16].mxu1 }
 0x470   :  { %v2987_v35 = vpop.f32.mrb[17].mxu1  ;;  %v728_v58 = vmul.f32 0.35355338, %v722_v34 }
 0x471   :  { %v725_v36 = vpop.f32.mrb[18].mxu1 }
 0x472   :  { %v2988_v37 = vpop.f32.mrb[19].mxu1  ;;  %v729_v4 = vadd.f32 %v728_v58, %v339_v16 }
 0x473   :  { %405 = vrot.lane.b32.xlu0 %v3949_v49, %s4489_s23 }
 0x474   :  { %v730_v9 = vsel %vm344_vm6, %v729_v4, -inf }
 0x477   :  { %v857_v38 = vpop.f32.mrb[20].mxu1 }
 0x478   :  { %v2999_v39 = vpop.f32.mrb[21].mxu1  ;;  %v863_v63 = vmul.f32 0.35355338, %v857_v38 }
 0x479   :  { %v860_v40 = vpop.f32.mrb[22].mxu1 }
 0x47a   :  { %v3000_v41 = vpop.f32.mrb[23].mxu1  ;;  %v864_v10 = vadd.f32 %v863_v63, %v812_v47 }
 0x47c   :  { %v865_v11 = vsel %vm344_vm6, %v864_v10, -inf }
 0x47f   :  { %v969_v43 = vpop.f32.mrb[24].mxu1 }
 0x480   :  { %v975_v44 = vmul.f32 0.35355338, %v969_v43  ;;  %v3011_v45 = vpop.f32.mrb[25].mxu1 }
 0x481   :  { %v972_v46 = vpop.f32.mrb[26].mxu1 }
 0x482   :  { %v3012_v48 = vpop.f32.mrb[27].mxu1  ;;  %v4037_v50 = vadd.f32 %v975_v44, %v812_v47 }
 0x484   :  { %v977_v51 = vsel %vm344_vm6, %v4037_v50, -inf }
 0x485   :  { %978 = vmax.xlane.f32.xlu1 %v977_v51 }
 0x487   :  { %v1081_v53 = vpop.f32.mrb[28].mxu1 }
 0x488   :  { %v3023_v54 = vpop.f32.mrb[29].mxu1  ;;  %v1087_v8 = vmul.f32 0.35355338, %v1081_v53 }
 0x489   :  { %v1084_v56 = vpop.f32.mrb[30].mxu1 }
 0x48a   :  { %v3024_v57 = vpop.f32.mrb[31].mxu1  ;;  %v1088_v12 = vadd.f32 %v1087_v8, %v812_v47 }
 0x48c   :  { %v1089_v13 = vsel %vm344_vm6, %v1088_v12, -inf }
 0x48f   :  { %v1193_v60 = vpop.f32.mrb[32].mxu1 }
 0x490   :  { %v1199_v61 = vmul.f32 0.35355338, %v1193_v60  ;;  %v3035_v62 = vpop.f32.mrb[33].mxu1 }
 0x491   :  { %v1196_v2 = vpop.f32.mrb[34].mxu1 }
 0x492   :  { %619 = vmax.xlane.f32.xlu0 %v618_v3  ;;  %v3036_v5 = vpop.f32.mrb[35].mxu1  ;;  %v4042_v6 = vadd.f32 %v1199_v61, %v812_v47  ;;  %v524_v3 = vsel %vm410_vm9, %v4052_v18, 0 }
 0x494   :  { %v1201_v7 = vsel %vm344_vm6, %v4042_v6, -inf }
 0x495   :  { %1202 = vmax.xlane.f32.xlu1 %v1201_v7 }
 0x496   :  { %731 = vmax.xlane.f32.xlu0 %v730_v9 }
 0x49a   :  { %866 = vmax.xlane.f32.xlu0 %v865_v11 }
 0x49e   :  { %1090 = vmax.xlane.f32.xlu0 %v1089_v13 }
 0x4b4   :  { %630 = vrot.lane.b32.xlu0 %v3949_v49, %s3628_s30 }
 0x4ea   :  { %v395_v14 = vpop.xlane.xlu0 %394 }
 0x4eb   :  { %v396_v16 = vsub.f32 %v4026_v21, %v395_v14 }
 0x4ed   :  { %v397_v17 = vmul.f32 1.442695, %v396_v16 }
 0x4ee   :  { %v406_v19 = vpop.permute.xlu0 %405 }
 0x4ef   :  { %3245 = vpow2.f32 %v397_v17  ;;  %v412_v20 = vsel %vm410_vm9, %v406_v19, 0 }
 0x4f0   :  { %2954 = vmatpush3.bf16.msra.mxu0 %v412_v20 }
 0x4f1   :  { %2965 = vmatprep.subr.bf16.mxu0 %v3618_v15 }
 0x4f2   :  { %v508_v22 = vpop.xlane.xlu1 %507 }
 0x4f3   :  { %v509_v23 = vsub.f32 %v4030_v28, %v508_v22 }
 0x4f5   :  { %v510_v24 = vmul.f32 1.442695, %v509_v23 }
 0x4f7   :  { %3247 = vpow2.f32 %v510_v24 }
 0x4f9   :  { %v3246_v25 = vpop.eup %3245 }
 0x4fa   :  { %v399_v26 = vsel %vm344_vm6, %v3246_v25, 0.0 }
 0x4fb   :  { %400 = vadd.xlane.f32.xlu0 %v399_v26 }
 0x501   :  { %v4058_v21 = vpop.eup %3247 }
 0x502   :  { %v512_v27 = vsel %vm344_vm6, %v4058_v21, 0.0 }
 0x503   :  { %513 = vadd.xlane.f32.xlu1 %v512_v27 }
 0x512   :  { %v979_v34 = vpop.xlane.xlu1 %978 }
 0x513   :  { %v980_v37 = vsub.f32 %v4037_v50, %v979_v34 }
 0x514   :  { %877 = vrot.lane.b32.xlu1 %v3963_v52, %s4489_s23  ;;  %s3629_s23 = smov 40  }
 0x515   :  { %v981_v40 = vmul.f32 1.442695, %v980_v37 }
 0x51f   :  { %v620_v29 = vpop.xlane.xlu0 %619 }
 0x520   :  { %v621_v30 = vsub.f32 %v617_v59, %v620_v29 }
 0x522   :  { %v622_v31 = vmul.f32 1.442695, %v621_v30  ;;  %v1203_v53 = vpop.xlane.xlu1 %1202 }
 0x523   :  { %v732_v32 = vpop.xlane.xlu0 %731  ;;  %v1204_v54 = vsub.f32 %v4042_v6, %v1203_v53 }
 0x524   :  { %3249 = vpow2.f32 %v622_v31  ;;  %v733_v28 = vsub.f32 %v729_v4, %v732_v32 }
 0x525   :  { %v1205_v56 = vmul.f32 1.442695, %v1204_v54 }
 0x526   :  { %v734_v33 = vmul.f32 1.442695, %v733_v28 }
 0x527   :  { %v867_v35 = vpop.xlane.xlu0 %866 }
 0x528   :  { %v868_v36 = vsub.f32 %v864_v10, %v867_v35  ;;  %3251 = vpow2.f32 %v734_v33 }
 0x52a   :  { %v869_v38 = vmul.f32 1.442695, %v868_v36 }
 0x52b   :  { %v1091_v48 = vpop.xlane.xlu0 %1090 }
 0x52c   :  { %3253 = vpow2.f32 %v869_v38  ;;  %v1092_v50 = vsub.f32 %v1088_v12, %v1091_v48 }
 0x52d   :  { %3255 = vpow2.f32 %v981_v40 }
 0x52e   :  { %v3250_v39 = vpop.eup %3249  ;;  %v1093_v51 = vmul.f32 1.442695, %v1092_v50 }
 0x52f   :  { %v624_v41 = vsel %vm344_vm6, %v3250_v39, 0.0  ;;  %v631_v59 = vpop.permute.xlu0 %630 }
 0x530   :  { %625 = vadd.xlane.f32.xlu0 %v624_v41  ;;  %3257 = vpow2.f32 %v1093_v51  ;;  %v636_v6 = vsel %vm410_vm9, %v631_v59, 0 }
 0x531   :  { %3259 = vpow2.f32 %v1205_v56 }
 0x532   :  { %v4066_v42 = vpop.eup %3251 }
 0x533   :  { %v736_v43 = vsel %vm344_vm6, %v4066_v42, 0.0 }
 0x536   :  { %v4070_v44 = vpop.eup %3253 }
 0x537   :  { %v871_v45 = vsel %vm344_vm6, %v4070_v44, 0.0  ;;  %v4074_v46 = vpop.eup %3255 }
 0x538   :  { %737 = vadd.xlane.f32.xlu1 %v736_v43  ;;  %v983_v47 = vsel %vm344_vm6, %v4074_v46, 0.0 }
 0x53a   :  { %v4082_v55 = vpop.eup %3257 }
 0x53b   :  { %v1095_v57 = vsel %vm344_vm6, %v4082_v55, 0.0  ;;  %v4086_v58 = vpop.eup %3259 }
 0x53c   :  { %872 = vadd.xlane.f32.xlu1 %v871_v45 }
 0x540   :  { %984 = vadd.xlane.f32.xlu1 %v983_v47 }
 0x546   :  { %742 = vrot.lane.b32.xlu0 %v3949_v49, %s3629_s23  ;;  %v1207_v49 = vsel %vm344_vm6, %v4086_v58, 0.0 }
 0x551   :  { %989 = vrot.lane.b32.xlu1 %v3963_v52, %s3627_s4 }
 0x565   :  { %1096 = vadd.xlane.f32.xlu0 %v1095_v57 }
 0x575   :  { %1208 = vadd.xlane.f32.xlu1 %v1207_v49 }
 0x57b   :  { %1101 = vrot.lane.b32.xlu0 %v3963_v52, %s3628_s30 }
 0x586   :  { %1213 = vrot.lane.b32.xlu1 %v3963_v52, %s3629_s23 }
 0x588   :  { %v401_v60 = vpop.xlane.xlu0 %400 }
 0x589   :  { %3261 = vrcp.f32 %v401_v60 }
 0x590   :  { %v514_v61 = vpop.xlane.xlu1 %513 }
 0x591   :  { %3263 = vrcp.f32 %v514_v61 }
 0x593   :  { %v3262_v62 = vpop.eup %3261 }
 0x594   :  { %v403_v63 = vmul.f32 %v3262_v62, %v3246_v25  ;;  %v878_v8 = vpop.permute.xlu1 %877 }
 0x595   :  { %v883_v23 = vsel %vm410_vm9, %v878_v8, 0  ;;  %v3223_v8 = vld [vmem:[#allocation12] sm:$0xff]  }
 0x596   :  { %v404_v2 = vpack.c.bf16 %v403_v63, %v403_v63  ;;  %3044 = vmatpush3.bf16.msra.mxu1 %v3223_v8 }
 0x597   :  { %3045 = vmatprep.subr.bf16.mxu1 %v3618_v15 }
 0x598   :  { %2956 = vmatmul.mubr.msk.bf16.vlgmr.msra.gmra.mrb[0].mxu0 %vm344_vm6, %v404_v2 }
 0x599   :  { %2966 = vmatpush3.bf16.msra.mxu0 %v524_v3  ;;  %2967 = vmatprep.mubr.msk.bf16.mxu0 %vm3619_vm1, %v3618_v15 }
 0x59a   :  { %2977 = vmatprep.subr.bf16.mxu0 %v3618_v15 }
 0x59b   :  { %v3264_v4 = vpop.eup %3263 }
 0x59c   :  { %v516_v52 = vmul.f32 %v3264_v4, %v4058_v21 }
 0x59e   :  { %v517_v5 = vpack.c.bf16 %v516_v52, %v516_v52 }
 0x5a0   :  { %2968 = vmatmul.mubr.msk.bf16.vlgmr.msra.gmra.mrb[4].mxu0 %vm344_vm6, %v517_v5 }
 0x5a1   :  { %2978 = vmatpush3.bf16.msra.mxu0 %v636_v6  ;;  %2979 = vmatprep.mubr.msk.bf16.mxu0 %vm3619_vm1, %v3618_v15 }
 0x5a2   :  { %2989 = vmatprep.subr.bf16.mxu0 %v3618_v15 }
 0x5bd   :  { %v626_v7 = vpop.xlane.xlu0 %625 }
 0x5be   :  { %3265 = vrcp.f32 %v626_v7 }
 0x5c1   :  { %v743_v13 = vpop.permute.xlu0 %742 }
 0x5c2   :  { %v748_v16 = vsel %vm410_vm9, %v743_v13, 0 }
 0x5c5   :  { %v738_v9 = vpop.xlane.xlu1 %737 }
 0x5c6   :  { %3267 = vrcp.f32 %v738_v9  ;;  %v3224_v9 = vld [vmem:[#allocation12 + $0x8] sm:$0xff]  }
 0x5c7   :  { %3046 = vmatpush3.bf16.msra.mxu1 %v3224_v9 }
 0x5c8   :  { %v3266_v10 = vpop.eup %3265 }
 0x5c9   :  { %v628_v11 = vmul.f32 %v3266_v10, %v3250_v39  ;;  %v873_v12 = vpop.xlane.xlu1 %872 }
 0x5ca   :  { %3269 = vrcp.f32 %v873_v12 }
 0x5cb   :  { %v629_v14 = vpack.c.bf16 %v628_v11, %v628_v11 }
 0x5cd   :  { %2980 = vmatmul.mubr.msk.bf16.vlgmr.msra.gmra.mrb[8].mxu0 %vm344_vm6, %v629_v14  ;;  %v985_v17 = vpop.xlane.xlu1 %984 }
 0x5ce   :  { %2990 = vmatpush3.bf16.msra.mxu0 %v748_v16  ;;  %2991 = vmatprep.mubr.msk.bf16.mxu0 %vm3619_vm1, %v3618_v15  ;;  %3271 = vrcp.f32 %v985_v17 }
 0x5cf   :  { %3001 = vmatprep.subr.bf16.mxu0 %v3618_v15 }
 0x5d0   :  { %v3268_v18 = vpop.eup %3267 }
 0x5d1   :  { %v740_v19 = vmul.f32 %v3268_v18, %v4066_v42  ;;  %v990_v25 = vpop.permute.xlu1 %989 }
 0x5d2   :  { %v995_v27 = vsel %vm410_vm9, %v990_v25, 0 }
 0x5d3   :  { %v741_v20 = vpack.c.bf16 %v740_v19, %v740_v19 }
 0x5d4   :  { %v3270_v22 = vpop.eup %3269 }
 0x5d5   :  { %2992 = vmatmul.mubr.msk.bf16.vlgmr.msra.gmra.mrb[12].mxu0 %vm344_vm6, %v741_v20  ;;  %v875_v24 = vmul.f32 %v3270_v22, %v4070_v44 }
 0x5d6   :  { %3002 = vmatpush3.bf16.msra.mxu0 %v883_v23  ;;  %3003 = vmatprep.mubr.msk.bf16.mxu0 %vm3619_vm1, %v3618_v15 }
 0x5d7   :  { %3013 = vmatprep.subr.bf16.mxu0 %v3618_v15  ;;  %v876_v26 = vpack.c.bf16 %v875_v24, %v875_v24 }
 0x5d8   :  { %v3272_v21 = vpop.eup %3271 }
 0x5d9   :  { %v987_v29 = vmul.f32 %v3272_v21, %v4074_v46 }
 0x5db   :  { %v988_v30 = vpack.c.bf16 %v987_v29, %v987_v29 }
 0x5dd   :  { %3004 = vmatmul.mubr.msk.bf16.vlgmr.msra.gmra.mrb[16].mxu0 %vm344_vm6, %v876_v26  ;;  %v2807_v26 = vld [vmem:[#allocation14] ss:$0 sm:$0xff] }
 0x5de   :  { %3014 = vmatpush3.bf16.msra.mxu0 %v995_v27  ;;  %3015 = vmatprep.mubr.msk.bf16.mxu0 %vm3619_vm1, %v3618_v15 }
 0x5df   :  { %3025 = vmatprep.subr.bf16.mxu0 %v3618_v15 }
 0x5e5   :  { %3016 = vmatmul.mubr.msk.bf16.vlgmr.msra.gmra.mrb[20].mxu0 %vm344_vm6, %v988_v30 }
 0x5e6   :  { %3027 = vmatprep.mubr.msk.bf16.mxu0 %vm3619_vm1, %v3618_v15 }
 0x5f2   :  { %v1097_v31 = vpop.xlane.xlu0 %1096 }
 0x5f3   :  { %3273 = vrcp.f32 %v1097_v31 }
 0x5f6   :  { %v1102_v32 = vpop.permute.xlu0 %1101 }
 0x5f7   :  { %v1107_v28 = vsel %vm410_vm9, %v1102_v32, 0 }
 0x5f8   :  { %3026 = vmatpush3.bf16.msra.mxu0 %v1107_v28 }
 0x5f9   :  { %3037 = vmatprep.subr.bf16.mxu0 %v3618_v15 }
 0x5fd   :  { %v3274_v33 = vpop.eup %3273 }
 0x5fe   :  { %v1099_v34 = vmul.f32 %v3274_v33, %v4082_v55 }
 0x600   :  { %v1100_v35 = vpack.c.bf16 %v1099_v34, %v1099_v34 }
 0x602   :  { %3028 = vmatmul.mubr.msk.bf16.vlgmr.msra.gmra.mrb[24].mxu0 %vm344_vm6, %v1100_v35  ;;  %v1209_v36 = vpop.xlane.xlu1 %1208 }
 0x603   :  { %3275 = vrcp.f32 %v1209_v36  ;;  %3039 = vmatprep.mubr.msk.bf16.mxu0 %vm3619_vm1, %v3618_v15 }
 0x606   :  { %v1214_v37 = vpop.permute.xlu1 %1213 }
 0x607   :  { %v1219_v38 = vsel %vm410_vm9, %v1214_v37, 0  ;;  %vm2711_vm9 = vcmask 523264  }
 0x608   :  { %3038 = vmatpush3.bf16.msra.mxu0 %v1219_v38 }
 0x609   :  { %3051 = vmatprep.subr.bf16.mxu0 %v3618_v15 }
 0x60d   :  { %v3276_v39 = vpop.eup %3275 }
 0x60e   :  { %v1211_v40 = vmul.f32 %v3276_v39, %v4086_v58 }
 0x610   :  { %v1212_v41 = vpack.c.bf16 %v1211_v40, %v1211_v40 }
 0x612   :  { %3040 = vmatmul.mubr.msk.bf16.vlgmr.msra.gmra.mrb[28].mxu0 %vm344_vm6, %v1212_v41 }
 0x613   :  { %3055 = vmatprep.mubr.msk.bf16.mxu0 %vm3619_vm1, %v3618_v15 }
 0x66b   :  { %v448_v42 = vpop.f32.mrb[0].mxu0 }
 0x66c   :  { %790 = vst.msk [vmem:[#allocation2] sm:$0xff] %vm344_vm6, %v448_v42  ;;  %v2957_v43 = vpop.f32.mrb[1].mxu0 }
 0x66d   :  { %v451_v44 = vpop.f32.mrb[2].mxu0  ;;  %v3225_v43 = vld [vmem:[#allocation17] sm:$0xff]  }
 0x66e   :  { %v2958_v45 = vpop.f32.mrb[3].mxu0  ;;  %3059 = vmatprep.subr.bf16.mxu1 %v3225_v43  ;;  %v3226_v44 = vld [vmem:[#allocation17 + $0x8] sm:$0xff]  }
 0x66f   :  { %v208_v45 = vld [vmem:[%s4491_s1] sm:$0xff] }
 0x673   :  { %v560_v46 = vpop.f32.mrb[4].mxu0 }
 0x674   :  { %792 = vrot.lane.b32.xlu0 %v560_v46, %s3606_s21  ;;  %v2969_v47 = vpop.f32.mrb[5].mxu0  ;;  %v209_v46 = vld [vmem:[%s4491_s1 + $0x8] sm:$0xff] }
 0x675   :  { %v563_v48 = vpop.f32.mrb[6].mxu0  ;;  %v1477_v47 = vpack.c.bf16 %v209_v46, %v208_v45 }
 0x676   :  { %v2970_v50 = vpop.f32.mrb[7].mxu0  ;;  %v210_v48 = vld [vmem:[%s4491_s1 + $0x10] sm:$0xff] }
 0x677   :  { %v211_v50 = vld [vmem:[%s4491_s1 + $0x18] sm:$0xff] }
 0x6a0   :  { %v672_v51 = vpop.f32.mrb[8].mxu0 }
 0x6a1   :  { %798 = vrot.lane.b32.xlu0 %v672_v51, %s3630_s8  ;;  %v2981_v53 = vpop.f32.mrb[9].mxu0  ;;  %v1478_v51 = vpack.c.bf16 %v211_v50, %v210_v48 }
 0x6a2   :  { %v675_v54 = vpop.f32.mrb[10].mxu0  ;;  %v3227_v53 = vld [vmem:[%s4460_s10] sm:$0xff]  }
 0x6a3   :  { %v2982_v55 = vpop.f32.mrb[11].mxu0  ;;  %3052 = vmatpush3.bf16.msra.mxu0 %v3227_v53  ;;  %v3228_v54 = vld [vmem:[%s4460_s10 + $0x8] sm:$0xff]  }
 0x6a4   :  { %3053 = vmatprep.subr.bf16.mxu0 %v3618_v15 }
 0x6a7   :  { %3054 = vmatpush3.bf16.msra.mxu0 %v3228_v54 }
 0x6a8   :  { %v784_v56 = vpop.f32.mrb[12].mxu0  ;;  %3067 = vmatprep.subr.bf16.mxu0 %v3618_v15 }
 0x6a9   :  { %804 = vrot.lane.b32.xlu0 %v784_v56, %s3631_s26  ;;  %v2993_v57 = vpop.f32.mrb[13].mxu0 }
 0x6aa   :  { %v787_v58 = vpop.f32.mrb[14].mxu0 }
 0x6ab   :  { %v2994_v49 = vpop.f32.mrb[15].mxu0 }
 0x6b0   :  { %v919_v59 = vpop.f32.mrb[16].mxu0 }
 0x6b1   :  { %1261 = vst.msk [vmem:[#allocation2 + $0x8] sm:$0xff] %vm344_vm6, %v919_v59  ;;  %v3005_v60 = vpop.f32.mrb[17].mxu0 }
 0x6b2   :  { %v922_v61 = vpop.f32.mrb[18].mxu0 }
 0x6b3   :  { %v3006_v62 = vpop.f32.mrb[19].mxu0 }
 0x6b8   :  { %v1031_v63 = vpop.f32.mrb[20].mxu0 }
 0x6b9   :  { %1263 = vrot.lane.b32.xlu1 %v1031_v63, %s3606_s21  ;;  %v3017_v2 = vpop.f32.mrb[21].mxu0 }
 0x6ba   :  { %v1034_v3 = vpop.f32.mrb[22].mxu0 }
 0x6bb   :  { %v3018_v4 = vpop.f32.mrb[23].mxu0 }
 0x6d5   :  { %v1143_v52 = vpop.f32.mrb[24].mxu0 }
 0x6d6   :  { %1268 = vrot.lane.b32.xlu1 %v1143_v52, %s3630_s8  ;;  %v3029_v5 = vpop.f32.mrb[25].mxu0 }
 0x6d7   :  { %v1146_v6 = vpop.f32.mrb[26].mxu0 }
 0x6d8   :  { %v3030_v7 = vpop.f32.mrb[27].mxu0 }
 0x6d9   :  { %v2808_v7 = vld [vmem:[#allocation8 + $0x1] ss:$0 sm:$0xff] }
 0x6e5   :  { %v1255_v10 = vpop.f32.mrb[28].mxu0 }
 0x6e6   :  { %v793_v11 = vpop.permute.xlu0 %792  ;;  %1273 = vrot.lane.b32.xlu1 %v1255_v10, %s3631_s26  ;;  %v3041_v12 = vpop.f32.mrb[29].mxu0 }
 0x6e7   :  { %796 = vst.msk [vmem:[#allocation2] sm:$0xff] %vm795_vm10, %v793_v11  ;;  %v1258_v13 = vpop.f32.mrb[30].mxu0 }
 0x6e8   :  { %v3042_v14 = vpop.f32.mrb[31].mxu0  ;;  %v2809_v13 = vld [vmem:[#allocation9 + $0x1] ss:$0 sm:$0xff] }
 0x713   :  { %v799_v16 = vpop.permute.xlu0 %798 }
 0x714   :  { %802 = vst.msk [vmem:[#allocation2] sm:$0xff] %vm801_vm11, %v799_v16 }
 0x71b   :  { %v805_v17 = vpop.permute.xlu0 %804 }
 0x71c   :  { %808 = vst.msk [vmem:[#allocation2] sm:$0xff] %vm807_vm12, %v805_v17 }
 0x723   :  { %v1277_v22 = vld [vmem:[#allocation2] sm:$0xff] }
 0x72b   :  { %v1264_v18 = vpop.permute.xlu1 %1263 }
 0x72c   :  { %1266 = vst.msk [vmem:[#allocation2 + $0x8] sm:$0xff] %vm795_vm10, %v1264_v18 }
 0x748   :  { %v1269_v19 = vpop.permute.xlu1 %1268 }
 0x749   :  { %1271 = vst.msk [vmem:[#allocation2 + $0x8] sm:$0xff] %vm801_vm11, %v1269_v19  ;;  %v2814_v19 = vld [vmem:[#allocation18] ss:$0 sm:$0xff] }
 0x758   :  { %v1274_v20 = vpop.permute.xlu1 %1273 }
 0x759   :  { %1276 = vst.msk [vmem:[#allocation2 + $0x8] sm:$0xff] %vm807_vm12, %v1274_v20 }
 0x760   :  { %v1278_v23 = vld [vmem:[#allocation2 + $0x8] sm:$0xff] }
 0x761   :  { %v1283_v24 = vpack.c.bf16 %v1278_v23, %v1277_v22 }
 0x763   :  { %3048 = vmatmul.mubr.msk.bf16.vlgmr.msra.gmra.mrb[36].mxu1 %vm214_vm0, %v1283_v24 }
 0x764   :  { %3060 = vmatpush3.bf16.msra.mxu1 %v3225_v43  ;;  %3063 = vmatprep.mubr.msk.bf16.mxu1 %vm214_vm0, %v1477_v47 }
 0x765   :  { %3061 = vmatprep.subr.bf16.mxu1 %v3226_v44 }
 0x768   :  { %3062 = vmatpush3.bf16.msra.mxu1 %v3226_v44 }
 0x769   :  { %3073 = vmatprep.subr.bf16.mxu1 %v3618_v15 }
 0x76b   :  { %3064 = vmatmul.mubr.msk.bf16.vlgmr.msra.gmra.mrb[40].mxu1 %vm214_vm0, %v1478_v51 }
 0x76c   :  { %3075 = vmatprep.mubr.msk.bf16.mxu1 %vm3619_vm1, %v3618_v15 }
 0x836   :  { %v1333_v25 = vpop.f32.mrb[36].mxu1 }
 0x837   :  { %v1340_v21 = vadd.f32 %v1333_v25, %v3920_v0  ;;  %v3049_v27 = vpop.f32.mrb[37].mxu1 }
 0x838   :  { %v1336_v29 = vpop.f32.mrb[38].mxu1 }
 0x839   :  { %v4155_v30 = vadd.f32 %v2807_v26, %v1340_v21  ;;  %v1341_v31 = vadd.f32 %v1336_v29, %v3925_v1  ;;  %v3050_v32 = vpop.f32.mrb[39].mxu1 }
 0x83b   :  { %v4158_v28 = vadd.f32 %v2807_v26, %v1341_v31  ;;  %v1353_v33 = vsel %vm214_vm0, %v4155_v30, 0.0 }
 0x83c   :  { %1354 = vadd.xlane.f32.xlu0 %v1353_v33  ;;  %v2810_v33 = vld [vmem:[#allocation15] ss:$0 sm:$0xff] }
 0x83d   :  { %v1356_v34 = vsel %vm214_vm0, %v4158_v28, 0.0 }
 0x83e   :  { %1357 = vadd.xlane.f32.xlu1 %v1356_v34  ;;  %v3065_v20 = vpop.f32.mrb[40].mxu1 }
 0x83f   :  { %v1547_v22 = vadd.f32 %v3065_v20, %v2814_v19  ;;  %v1538_v23 = vpop.f32.mrb[41].mxu1 }
 0x840   :  { %v1539_v24 = vadd.f32 %v2814_v19, %v1538_v23  ;;  %v3066_v25 = vpop.f32.mrb[42].mxu1 }
 0x841   :  { %v1550_v26 = vadd.f32 %v3066_v25, %v2814_v19  ;;  %v1541_v21 = vpop.f32.mrb[43].mxu1 }
 0x842   :  { %v1542_v27 = vadd.f32 %v2814_v19, %v1541_v21 }
 0x843   :  { %v4196_v29 = vpack.c.bf16 %v1550_v26, %v1547_v22  ;;  %v2014_v26 = vld [vmem:[#allocation6 + $0x8] sm:$0xff] }
 0x844   :  { %v4198_v31 = vpack.c.bf16 %v1542_v27, %v1539_v24  ;;  %vm2015_vm5 = vcmp.eq.f32.partialorder %v2014_v26, 0.0 }
 0x845   :  { %v2023_v50 = vsel %vm344_vm6, %v4196_v29, 0 }
 0x846   :  { %v1562_v32 = vsel %vm344_vm6, %v4198_v31, 0 }
 0x8c9   :  { %v1355_v35 = vpop.xlane.xlu0 %1354 }
 0x8ca   :  { %v1359_v36 = vmul.f32 0.03125, %v1355_v35 }
 0x8cb   :  { %v1358_v0 = vpop.xlane.xlu1 %1357 }
 0x8cc   :  { %v1361_v37 = vsub.f32 %v4155_v30, %v1359_v36  ;;  %v1360_v38 = vmul.f32 0.03125, %v1358_v0 }
 0x8ce   :  { %v1362_v39 = vsub.f32 %v4158_v28, %v1360_v38  ;;  %v1363_v1 = vmul.f32 %v1361_v37, %v1361_v37  ;;  %v1391_v9 = vmul.f32 %v2808_v7, %v1361_v37 }
 0x8d0   :  { %v1365_v40 = vsel %vm214_vm0, %v1363_v1, 0.0  ;;  %v1364_v41 = vmul.f32 %v1362_v39, %v1362_v39  ;;  %v1392_v10 = vmul.f32 %v2808_v7, %v1362_v39 }
 0x8d1   :  { %1366 = vadd.xlane.f32.xlu0 %v1365_v40 }
 0x8d2   :  { %v1368_v42 = vsel %vm214_vm0, %v1364_v41, 0.0 }
 0x8d5   :  { %1369 = vadd.xlane.f32.xlu0 %v1368_v42 }
 0x8eb   :  { %1669 = vrot.lane.b32.xlu0 %v4198_v31, %s3622_s28 }
 0x8ef   :  { %1889 = vrot.lane.b32.xlu0 %v4198_v31, %s3625_s3 }
 0x8f3   :  { %2129 = vrot.lane.b32.xlu0 %v4196_v29, %s3622_s28 }
 0x8f7   :  { %2239 = vrot.lane.b32.xlu0 %v4196_v29, %s3623_s7 }
 0x8fb   :  { %2349 = vrot.lane.b32.xlu0 %v4196_v29, %s3625_s3 }
 0x95e   :  { %v1367_v55 = vpop.xlane.xlu0 %1366 }
 0x95f   :  { %v1371_v56 = vmul.f32 0.032258064, %v1367_v55 }
 0x961   :  { %3277 = vrsqrt.f32 %v1371_v56  ;;  %vm1375_vm13 = vcmp.eq.f32.partialorder %v1371_v56, inf  ;;  %v1378_v60 = vand.u32 2147483648, %v1371_v56  ;;  %vm1377_vm14 = vcmp.eq.f32.partialorder %v1371_v56, 0.0 }
 0x962   :  { %v1370_v57 = vpop.xlane.xlu0 %1369 }
 0x963   :  { %v1372_v58 = vmul.f32 0.032258064, %v1370_v57 }
 0x965   :  { %3279 = vrsqrt.f32 %v1372_v58  ;;  %vm1382_vm15 = vcmp.eq.f32.partialorder %v1372_v58, inf  ;;  %v1385_v4 = vand.u32 2147483648, %v1372_v58  ;;  %vm1384_vm2 = vcmp.eq.f32.partialorder %v1372_v58, 0.0 }
 0x966   :  { %v1670_v37 = vpop.permute.xlu0 %1669 }
 0x967   :  { %v1675_v1 = vsel %vm344_vm6, %v1670_v37, 0 }
 0x96a   :  { %v1890_v45 = vpop.permute.xlu0 %1889 }
 0x96b   :  { %v3278_v49 = vpop.eup %3277  ;;  %v1895_v47 = vsel %vm344_vm6, %v1890_v45, 0 }
 0x96c   :  { %v1374_v59 = vmul.f32 %v3278_v49, %v1371_v56 }
 0x96e   :  { %v1376_v61 = vsel %vm1375_vm13, %v1371_v56, %v1374_v59  ;;  %v2130_v51 = vpop.permute.xlu0 %2129 }
 0x96f   :  { %v3280_v62 = vpop.eup %3279  ;;  %v1379_v63 = vsel %vm1377_vm14, %v1378_v60, %v1376_v61  ;;  %v2135_v53 = vsel %vm344_vm6, %v2130_v51, 0  ;;  %v1553_v60 = vld [vmem:[#allocation6] sm:$0xff] }
 0x970   :  { %v1393_v2 = vadd.f32 1e-06, %v1379_v63  ;;  %v1381_v3 = vmul.f32 %v3280_v62, %v1372_v58  ;;  %vm1554_vm3 = vcmp.eq.f32.partialorder %v1553_v60, 0.0 }
 0x971   :  { %v1555_v62 = vsel %vm1554_vm3, -1e+09, %v3618_v15 }
 0x972   :  { %3281 = vrcp.f32 %v1393_v2  ;;  %v1383_v52 = vsel %vm1382_vm15, %v1372_v58, %v1381_v3  ;;  %v2240_v54 = vpop.permute.xlu0 %2239 }
 0x973   :  { %v1386_v5 = vsel %vm1384_vm2, %v1385_v4, %v1383_v52  ;;  %v2245_v56 = vsel %vm344_vm6, %v2240_v54, 0 }
 0x974   :  { %v1394_v6 = vadd.f32 1e-06, %v1386_v5 }
 0x976   :  { %3283 = vrcp.f32 %v1394_v6  ;;  %v2350_v57 = vpop.permute.xlu0 %2349 }
 0x977   :  { %v2355_v49 = vsel %vm344_vm6, %v2350_v57, 0 }
 0x97c   :  { %v3282_v8 = vpop.eup %3281 }
 0x97d   :  { %v1396_v11 = vmul.f32 %v3282_v8, %v1391_v9 }
 0x97f   :  { %v1403_v16 = vadd.f32 %v2809_v13, %v1396_v11 }
 0x980   :  { %v3284_v12 = vpop.eup %3283 }
 0x981   :  { %v1398_v14 = vmul.f32 %v3284_v12, %v1392_v10 }
 0x983   :  { %v1404_v17 = vadd.f32 %v2809_v13, %v1398_v14 }
 0x985   :  { %v1409_v18 = vpack.c.bf16 %v1404_v17, %v1403_v16 }
 0x987   :  { %3056 = vmatmul.mubr.msk.bf16.vlgmr.msra.gmra.mrb[32].mxu0 %vm214_vm0, %v1409_v18 }
 0x988   :  { %3069 = vmatprep.mubr.msk.bf16.mxu0 %vm3619_vm1, %v3618_v15  ;;  %3068 = vmatpush3.bf16.xpose.msra.mxu0 %v1562_v32 }
 0x989   :  { %3079 = vmatprep.subr.bf16.mxu0 %v3618_v15 }
 0xa5a   :  { %v1466_v34 = vpop.f32.mrb[32].mxu0 }
 0xa5b   :  { %v1467_v35 = vadd.f32 %v2810_v33, %v1466_v34  ;;  %v3057_v36 = vpop.f32.mrb[33].mxu0  ;;  %v2016_v34 = vsel %vm2015_vm5, -1e+09, %v3618_v15 }
 0xa5c   :  { %v1469_v0 = vpop.f32.mrb[34].mxu0 }
 0xa5d   :  { %v1556_v38 = vpack.c.bf16 %v1467_v35, %v1467_v35  ;;  %v3058_v39 = vpop.f32.mrb[35].mxu0  ;;  %v1470_v40 = vadd.f32 %v2810_v33, %v1469_v0 }
 0xa5f   :  { %1667 = vrot.lane.b32.xlu1 %v1556_v38, %s3622_s28  ;;  %3070 = vmatmul.mubr.msk.bf16.vlgmr.msra.gmra.mrb[36].mxu0 %vm344_vm6, %v1556_v38  ;;  %v2017_v41 = vpack.c.bf16 %v1470_v40, %v1470_v40 }
 0xa60   :  { %3080 = vmatpush3.bf16.xpose.msra.mxu0 %v1675_v1  ;;  %3081 = vmatprep.mubr.msk.bf16.mxu0 %vm3619_vm1, %v3618_v15 }
 0xa61   :  { %3091 = vmatprep.subr.bf16.mxu0 %v3618_v15 }
 0xa63   :  { %1779 = vrot.lane.b32.xlu1 %v4198_v31, %s3623_s7 }
 0xa67   :  { %1777 = vrot.lane.b32.xlu1 %v1556_v38, %s3623_s7 }
 0xa6b   :  { %1887 = vrot.lane.b32.xlu1 %v1556_v38, %s3625_s3 }
 0xa6f   :  { %2127 = vrot.lane.b32.xlu1 %v2017_v41, %s3622_s28 }
 0xa73   :  { %2237 = vrot.lane.b32.xlu1 %v2017_v41, %s3623_s7 }
 0xa77   :  { %2347 = vrot.lane.b32.xlu1 %v2017_v41, %s3625_s3 }
 0xa7b   :  { %1731 = vrot.lane.b32.xlu1 %v4198_v31, %s3620_s2 }
 0xad1   :  { %v1668_v42 = vpop.permute.xlu1 %1667 }
 0xad2   :  { %3082 = vmatmul.mubr.msk.bf16.vlgmr.msra.gmra.mrb[40].mxu0 %vm344_vm6, %v1668_v42 }
 0xad3   :  { %3093 = vmatprep.mubr.msk.bf16.mxu0 %vm3619_vm1, %v3618_v15 }
 0xad5   :  { %v1780_v43 = vpop.permute.xlu1 %1779 }
 0xad6   :  { %v1785_v44 = vsel %vm344_vm6, %v1780_v43, 0 }
 0xad7   :  { %3092 = vmatpush3.bf16.xpose.msra.mxu0 %v1785_v44 }
 0xad8   :  { %3103 = vmatprep.subr.bf16.mxu0 %v3618_v15 }
 0xad9   :  { %v1778_v46 = vpop.permute.xlu1 %1777 }
 0xadd   :  { %v1888_v48 = vpop.permute.xlu1 %1887 }
 0xade   :  { %3094 = vmatmul.mubr.msk.bf16.vlgmr.msra.gmra.mrb[44].mxu0 %vm344_vm6, %v1778_v46 }
 0xadf   :  { %3104 = vmatpush3.bf16.xpose.msra.mxu0 %v1895_v47  ;;  %3105 = vmatprep.mubr.msk.bf16.mxu0 %vm3619_vm1, %v3618_v15 }
 0xae0   :  { %3115 = vmatprep.subr.bf16.mxu0 %v3618_v15 }
 0xae1   :  { %v2128_v55 = vpop.permute.xlu1 %2127 }
 0xae5   :  { %v2238_v58 = vpop.permute.xlu1 %2237 }
 0xae6   :  { %3106 = vmatmul.mubr.msk.bf16.vlgmr.msra.gmra.mrb[48].mxu0 %vm344_vm6, %v1888_v48 }
 0xae7   :  { %3116 = vmatpush3.bf16.xpose.msra.mxu0 %v2023_v50  ;;  %3117 = vmatprep.mubr.msk.bf16.mxu0 %vm3619_vm1, %v3618_v15 }
 0xae8   :  { %3127 = vmatprep.subr.bf16.mxu0 %v3618_v15 }
 0xae9   :  { %v2348_v59 = vpop.permute.xlu1 %2347 }
 0xaee   :  { %3118 = vmatmul.mubr.msk.bf16.vlgmr.msra.gmra.mrb[52].mxu0 %vm344_vm6, %v2017_v41 }
 0xaef   :  { %3128 = vmatpush3.bf16.xpose.msra.mxu0 %v2135_v53  ;;  %3129 = vmatprep.mubr.msk.bf16.mxu0 %vm3619_vm1, %v3618_v15 }
 0xaf0   :  { %3139 = vmatprep.subr.bf16.mxu0 %v3618_v15 }
 0xaf6   :  { %3130 = vmatmul.mubr.msk.bf16.vlgmr.msra.gmra.mrb[56].mxu0 %vm344_vm6, %v2128_v55 }
 0xaf7   :  { %3140 = vmatpush3.bf16.xpose.msra.mxu0 %v2245_v56  ;;  %3141 = vmatprep.mubr.msk.bf16.mxu0 %vm3619_vm1, %v3618_v15 }
 0xaf8   :  { %3151 = vmatprep.subr.bf16.mxu0 %v3618_v15 }
 0xafe   :  { %3142 = vmatmul.mubr.msk.bf16.vlgmr.msra.gmra.mrb[60].mxu0 %vm344_vm6, %v2238_v58 }
 0xaff   :  { %3152 = vmatpush3.bf16.xpose.msra.mxu0 %v2355_v49  ;;  %3153 = vmatprep.mubr.msk.bf16.mxu0 %vm3619_vm1, %v3618_v15 }
 0xb00   :  { %3163 = vmatprep.subr.bf16.mxu0 %v3618_v15 }
 0xb06   :  { %3154 = vmatmul.mubr.msk.bf16.vlgmr.msra.gmra.mrb[64].mxu0 %vm344_vm6, %v2348_v59 }
 0xb07   :  { %3167 = vmatprep.mubr.msk.bf16.mxu0 %vm3619_vm1, %v3618_v15 }
 0xb32   :  { %v1598_v61 = vpop.f32.mrb[36].mxu0 }
 0xb33   :  { %v1604_v63 = vmul.f32 0.35355338, %v1598_v61  ;;  %v3071_v2 = vpop.f32.mrb[37].mxu0 }
 0xb34   :  { %v1601_v3 = vpop.f32.mrb[38].mxu0 }
 0xb35   :  { %v3072_v4 = vpop.f32.mrb[39].mxu0  ;;  %v4263_v52 = vadd.f32 %v1604_v63, %v1555_v62 }
 0xb37   :  { %v1607_v5 = vsel %vm1606_vm4, %v4263_v52, -inf }
 0xb38   :  { %1608 = vmax.xlane.f32.xlu0 %v1607_v5  ;;  %v1732_v5 = vpop.permute.xlu1 %1731 }
 0xb4e   :  { %1620 = vrot.lane.b32.xlu0 %v4198_v31, %s3621_s27 }
 0xba5   :  { %v1711_v6 = vpop.f32.mrb[40].mxu0 }
 0xba6   :  { %v1717_v7 = vmul.f32 0.35355338, %v1711_v6  ;;  %v3083_v8 = vpop.f32.mrb[41].mxu0 }
 0xba7   :  { %v1714_v9 = vpop.f32.mrb[42].mxu0 }
 0xba8   :  { %v3084_v10 = vpop.f32.mrb[43].mxu0  ;;  %v4269_v11 = vadd.f32 %v1717_v7, %v1555_v62 }
 0xbaa   :  { %v1719_v12 = vsel %vm1606_vm4, %v4269_v11, -inf }
 0xbab   :  { %1720 = vmax.xlane.f32.xlu1 %v1719_v12 }
 0xbb1   :  { %v1821_v13 = vpop.f32.mrb[44].mxu0 }
 0xbb2   :  { %v1827_v14 = vmul.f32 0.35355338, %v1821_v13  ;;  %v3095_v16 = vpop.f32.mrb[45].mxu0 }
 0xbb3   :  { %v1824_v17 = vpop.f32.mrb[46].mxu0 }
 0xbb4   :  { %v3096_v18 = vpop.f32.mrb[47].mxu0  ;;  %v4273_v19 = vadd.f32 %v1827_v14, %v1555_v62 }
 0xbb6   :  { %v1829_v20 = vsel %vm1606_vm4, %v4273_v19, -inf }
 0xbb7   :  { %1830 = vmax.xlane.f32.xlu0 %v1829_v20 }
 0xbb9   :  { %v1931_v22 = vpop.f32.mrb[48].mxu0 }
 0xbba   :  { %v1937_v23 = vmul.f32 0.35355338, %v1931_v22  ;;  %v3107_v24 = vpop.f32.mrb[49].mxu0 }
 0xbbb   :  { %v1934_v25 = vpop.f32.mrb[50].mxu0 }
 0xbbc   :  { %v3108_v21 = vpop.f32.mrb[51].mxu0  ;;  %v4277_v27 = vadd.f32 %v1937_v23, %v1555_v62 }
 0xbbe   :  { %v1939_v32 = vsel %vm1606_vm4, %v4277_v27, -inf }
 0xbbf   :  { %1940 = vmax.xlane.f32.xlu0 %v1939_v32 }
 0xbc1   :  { %v2059_v33 = vpop.f32.mrb[52].mxu0 }
 0xbc2   :  { %v2065_v35 = vmul.f32 0.35355338, %v2059_v33  ;;  %v3119_v36 = vpop.f32.mrb[53].mxu0 }
 0xbc3   :  { %v2062_v0 = vpop.f32.mrb[54].mxu0 }
 0xbc4   :  { %v3120_v37 = vpop.f32.mrb[55].mxu0  ;;  %v2066_v38 = vadd.f32 %v2065_v35, %v2016_v34 }
 0xbc5   :  { %v1609_v39 = vpop.xlane.xlu0 %1608 }
 0xbc6   :  { %v2067_v1 = vsel %vm1606_vm4, %v2066_v38, -inf  ;;  %v1610_v63 = vsub.f32 %v4263_v52, %v1609_v39 }
 0xbc7   :  { %2068 = vmax.xlane.f32.xlu0 %v2067_v1 }
 0xbc8   :  { %v1611_v2 = vmul.f32 1.442695, %v1610_v63 }
 0xbc9   :  { %v1621_v40 = vpop.permute.xlu0 %1620  ;;  %v2171_v41 = vpop.f32.mrb[56].mxu0 }
 0xbca   :  { %v2177_v42 = vmul.f32 0.35355338, %v2171_v41  ;;  %3074 = vmatpush3.bf16.msra.mxu1 %v1621_v40  ;;  %v3131_v43 = vpop.f32.mrb[57].mxu0  ;;  %3285 = vpow2.f32 %v1611_v2 }
 0xbcb   :  { %v2174_v44 = vpop.f32.mrb[58].mxu0  ;;  %3085 = vmatprep.subr.bf16.mxu1 %v3618_v15 }
 0xbcc   :  { %v3132_v45 = vpop.f32.mrb[59].mxu0  ;;  %v2178_v46 = vadd.f32 %v2177_v42, %v2016_v34 }
 0xbce   :  { %v2179_v47 = vsel %vm1606_vm4, %v2178_v46, -inf }
 0xbcf   :  { %2180 = vmax.xlane.f32.xlu1 %v2179_v47 }
 0xbd1   :  { %v2281_v48 = vpop.f32.mrb[60].mxu0 }
 0xbd2   :  { %v2287_v50 = vmul.f32 0.35355338, %v2281_v48  ;;  %v3143_v51 = vpop.f32.mrb[61].mxu0 }
 0xbd3   :  { %v2284_v53 = vpop.f32.mrb[62].mxu0 }
 0xbd4   :  { %v3144_v54 = vpop.f32.mrb[63].mxu0  ;;  %v2288_v55 = vadd.f32 %v2287_v50, %v2016_v34  ;;  %v3286_v3 = vpop.eup %3285 }
 0xbd5   :  { %v1613_v4 = vsel %vm1606_vm4, %v3286_v3, 0.0 }
 0xbd6   :  { %v2289_v56 = vsel %vm1606_vm4, %v2288_v55, -inf }
 0xbd7   :  { %2290 = vmax.xlane.f32.xlu0 %v2289_v56 }
 0xbd9   :  { %v2391_v57 = vpop.f32.mrb[64].mxu0 }
 0xbda   :  { %v2397_v58 = vmul.f32 0.35355338, %v2391_v57  ;;  %v3155_v49 = vpop.f32.mrb[65].mxu0 }
 0xbdb   :  { %v2394_v59 = vpop.f32.mrb[66].mxu0 }
 0xbdc   :  { %v3156_v60 = vpop.f32.mrb[67].mxu0  ;;  %v4286_v61 = vadd.f32 %v2397_v58, %v2016_v34 }
 0xbde   :  { %v2399_v62 = vsel %vm1606_vm4, %v4286_v61, -inf }
 0xbdf   :  { %2400 = vmax.xlane.f32.xlu1 %v2399_v62 }
 0xbed   :  { %1841 = vrot.lane.b32.xlu0 %v4198_v31, %s3624_s6 }
 0xc0c   :  { %1614 = vadd.xlane.f32.xlu0 %v1613_v4 }
 0xc38   :  { %v1721_v6 = vpop.xlane.xlu1 %1720 }
 0xc39   :  { %v1722_v7 = vsub.f32 %v4269_v11, %v1721_v6 }
 0xc3b   :  { %v1723_v8 = vmul.f32 1.442695, %v1722_v7 }
 0xc3d   :  { %3287 = vpow2.f32 %v1723_v8 }
 0xc44   :  { %v1831_v9 = vpop.xlane.xlu0 %1830 }
 0xc45   :  { %v1832_v10 = vsub.f32 %v4273_v19, %v1831_v9 }
 0xc47   :  { %v3288_v12 = vpop.eup %3287  ;;  %v1833_v13 = vmul.f32 1.442695, %v1832_v10 }
 0xc48   :  { %v1725_v14 = vsel %vm1606_vm4, %v3288_v12, 0.0 }
 0xc49   :  { %3289 = vpow2.f32 %v1833_v13  ;;  %1726 = vadd.xlane.f32.xlu1 %v1725_v14 }
 0xc4c   :  { %v1941_v11 = vpop.xlane.xlu0 %1940 }
 0xc4d   :  { %v1942_v17 = vsub.f32 %v4277_v27, %v1941_v11 }
 0xc4f   :  { %v1943_v19 = vmul.f32 1.442695, %v1942_v17 }
 0xc51   :  { %3291 = vpow2.f32 %v1943_v19 }
 0xc53   :  { %v4297_v52 = vpop.eup %3289 }
 0xc54   :  { %v1835_v16 = vsel %vm1606_vm4, %v4297_v52, 0.0  ;;  %v2069_v18 = vpop.xlane.xlu0 %2068 }
 0xc55   :  { %1836 = vadd.xlane.f32.xlu0 %v1835_v16  ;;  %v2070_v20 = vsub.f32 %v2066_v38, %v2069_v18 }
 0xc57   :  { %v2071_v23 = vmul.f32 1.442695, %v2070_v20 }
 0xc59   :  { %3293 = vpow2.f32 %v2071_v23 }
 0xc5a   :  { %2080 = vrot.lane.b32.xlu1 %v4196_v29, %s3621_s27 }
 0xc5b   :  { %v3292_v33 = vpop.eup %3291 }
 0xc5c   :  { %v2181_v22 = vpop.xlane.xlu1 %2180  ;;  %v1945_v27 = vsel %vm1606_vm4, %v3292_v33, 0.0 }
 0xc5d   :  { %v2182_v24 = vsub.f32 %v2178_v46, %v2181_v22 }
 0xc5f   :  { %v2183_v26 = vmul.f32 1.442695, %v2182_v24 }
 0xc61   :  { %3295 = vpow2.f32 %v2183_v26 }
 0xc63   :  { %v4307_v34 = vpop.eup %3293 }
 0xc64   :  { %v2291_v25 = vpop.xlane.xlu0 %2290 }
 0xc65   :  { %v2292_v21 = vsub.f32 %v2288_v55, %v2291_v25 }
 0xc67   :  { %v2293_v32 = vmul.f32 1.442695, %v2292_v21 }
 0xc68   :  { %v1842_v38 = vpop.permute.xlu0 %1841 }
 0xc69   :  { %3297 = vpow2.f32 %v2293_v32 }
 0xc6b   :  { %1951 = vrot.lane.b32.xlu0 %v4198_v31, %s3626_s29  ;;  %v2073_v31 = vsel %vm1606_vm4, %v4307_v34, 0.0  ;;  %v4311_v35 = vpop.eup %3295 }
 0xc6c   :  { %v2185_v36 = vsel %vm1606_vm4, %v4311_v35, 0.0  ;;  %v2401_v1 = vpop.xlane.xlu1 %2400 }
 0xc6d   :  { %v2402_v41 = vsub.f32 %v4286_v61, %v2401_v1 }
 0xc6f   :  { %v2403_v44 = vmul.f32 1.442695, %v2402_v41 }
 0xc73   :  { %v4315_v0 = vpop.eup %3297 }
 0xc74   :  { %v2295_v37 = vsel %vm1606_vm4, %v4315_v0, 0.0 }
 0xc7e   :  { %1946 = vadd.xlane.f32.xlu1 %v1945_v27 }
 0xc82   :  { %2074 = vadd.xlane.f32.xlu1 %v2073_v31 }
 0xc86   :  { %2186 = vadd.xlane.f32.xlu1 %v2185_v36 }
 0xc8a   :  { %2296 = vadd.xlane.f32.xlu0 %v2295_v37 }
 0xc97   :  { %2191 = vrot.lane.b32.xlu1 %v4196_v29, %s3620_s2 }
 0xc99   :  { %v1615_v39 = vpop.xlane.xlu0 %1614 }
 0xc9a   :  { %3299 = vrcp.f32 %v1615_v39 }
 0xc9b   :  { %3301 = vpow2.f32 %v2403_v44 }
 0xca0   :  { %2301 = vrot.lane.b32.xlu0 %v4196_v29, %s3624_s6 }
 0xca4   :  { %v3300_v40 = vpop.eup %3299 }
 0xca5   :  { %v1617_v42 = vmul.f32 %v3300_v40, %v3286_v3  ;;  %v4328_v45 = vpop.eup %3301 }
 0xca6   :  { %v2405_v46 = vsel %vm1606_vm4, %v4328_v45, 0.0 }
 0xca7   :  { %v1618_v43 = vpack.c.bf16 %v1617_v42, %v1617_v42 }
 0xca9   :  { %3076 = vmatmul.mubr.msk.bf16.vlgmr.msra.gmra.mrb[44].mxu1 %vm1606_vm4, %v1618_v43 }
 0xcaa   :  { %3086 = vmatpush3.bf16.msra.mxu1 %v1732_v5  ;;  %3087 = vmatprep.mubr.msk.bf16.mxu1 %vm3619_vm1, %v3618_v15 }
 0xcab   :  { %3097 = vmatprep.subr.bf16.mxu1 %v3618_v15 }
 0xcbb   :  { %2406 = vadd.xlane.f32.xlu1 %v2405_v46 }
 0xccc   :  { %2411 = vrot.lane.b32.xlu1 %v4196_v29, %s3626_s29 }
 0xcd6   :  { %v1727_v47 = vpop.xlane.xlu1 %1726 }
 0xcd7   :  { %3303 = vrcp.f32 %v1727_v47  ;;  %v3229_v47 = vld [vmem:[%s4464_s14] sm:$0xff]  }
 0xcd8   :  { %3164 = vmatpush3.bf16.msra.mxu0 %v3229_v47 }
 0xcd9   :  { %3165 = vmatprep.subr.bf16.mxu0 %v3618_v15 }
 0xcda   :  { %v2081_v57 = vpop.permute.xlu1 %2080 }
 0xce1   :  { %v3304_v48 = vpop.eup %3303 }
 0xce2   :  { %v1729_v50 = vmul.f32 %v3304_v48, %v3288_v12  ;;  %v1837_v51 = vpop.xlane.xlu0 %1836  ;;  %v3230_v48 = vld [vmem:[%s4464_s14 + $0x8] sm:$0xff]  }
 0xce3   :  { %3305 = vrcp.f32 %v1837_v51  ;;  %3166 = vmatpush3.bf16.msra.mxu0 %v3230_v48 }
 0xce4   :  { %v1730_v53 = vpack.c.bf16 %v1729_v50, %v1729_v50  ;;  %3179 = vmatprep.subr.bf16.mxu0 %v3618_v15 }
 0xce6   :  { %3088 = vmatmul.mubr.msk.bf16.vlgmr.msra.gmra.mrb[48].mxu1 %vm1606_vm4, %v1730_v53  ;;  %v1952_v29 = vpop.permute.xlu0 %1951 }
 0xce7   :  { %3098 = vmatpush3.bf16.msra.mxu1 %v1842_v38  ;;  %3099 = vmatprep.mubr.msk.bf16.mxu1 %vm3619_vm1, %v3618_v15 }
 0xce8   :  { %3109 = vmatprep.subr.bf16.mxu1 %v3618_v15 }
 0xced   :  { %v3306_v54 = vpop.eup %3305 }
 0xcee   :  { %v1839_v55 = vmul.f32 %v3306_v54, %v4297_v52 }
 0xcf0   :  { %v1840_v56 = vpack.c.bf16 %v1839_v55, %v1839_v55 }
 0xcf2   :  { %3100 = vmatmul.mubr.msk.bf16.vlgmr.msra.gmra.mrb[52].mxu1 %vm1606_vm4, %v1840_v56 }
 0xcf3   :  { %3110 = vmatpush3.bf16.msra.mxu1 %v1952_v29  ;;  %3111 = vmatprep.mubr.msk.bf16.mxu1 %vm3619_vm1, %v3618_v15 }
 0xcf4   :  { %3121 = vmatprep.subr.bf16.mxu1 %v3618_v15 }
 0xd0b   :  { %v1947_v58 = vpop.xlane.xlu1 %1946 }
 0xd0c   :  { %3307 = vrcp.f32 %v1947_v58 }
 0xd0f   :  { %v2075_v49 = vpop.xlane.xlu1 %2074 }
 0xd10   :  { %3309 = vrcp.f32 %v2075_v49 }
 0xd13   :  { %v2187_v59 = vpop.xlane.xlu1 %2186 }
 0xd14   :  { %3311 = vrcp.f32 %v2187_v59 }
 0xd16   :  { %v3308_v60 = vpop.eup %3307 }
 0xd17   :  { %v1949_v61 = vmul.f32 %v3308_v60, %v3292_v33  ;;  %v2297_v3 = vpop.xlane.xlu0 %2296  ;;  %v2192_v6 = vpop.permute.xlu1 %2191 }
 0xd18   :  { %3313 = vrcp.f32 %v2297_v3 }
 0xd19   :  { %v1950_v62 = vpack.c.bf16 %v1949_v61, %v1949_v61 }
 0xd1a   :  { %v3310_v63 = vpop.eup %3309 }
 0xd1b   :  { %3112 = vmatmul.mubr.msk.bf16.vlgmr.msra.gmra.mrb[56].mxu1 %vm1606_vm4, %v1950_v62  ;;  %v2077_v2 = vmul.f32 %v3310_v63, %v4307_v34  ;;  %v2302_v10 = vpop.permute.xlu0 %2301  ;;  %v2838_v63 = vld [vmem:[%s4465_s15] ss:$0 sm:$0xff] }
 0xd1c   :  { %3122 = vmatpush3.bf16.msra.mxu1 %v2081_v57  ;;  %3123 = vmatprep.mubr.msk.bf16.mxu1 %vm3619_vm1, %v3618_v15 }
 0xd1d   :  { %3133 = vmatprep.subr.bf16.mxu1 %v3618_v15  ;;  %v2078_v4 = vpack.c.bf16 %v2077_v2, %v2077_v2 }
 0xd1e   :  { %v3312_v5 = vpop.eup %3311 }
 0xd1f   :  { %v2189_v7 = vmul.f32 %v3312_v5, %v4311_v35 }
 0xd21   :  { %v2190_v8 = vpack.c.bf16 %v2189_v7, %v2189_v7 }
 0xd22   :  { %v3314_v9 = vpop.eup %3313 }
 0xd23   :  { %3124 = vmatmul.mubr.msk.bf16.vlgmr.msra.gmra.mrb[60].mxu1 %vm1606_vm4, %v2078_v4  ;;  %v2299_v12 = vmul.f32 %v3314_v9, %v4315_v0 }
 0xd24   :  { %3134 = vmatpush3.bf16.msra.mxu1 %v2192_v6  ;;  %3135 = vmatprep.mubr.msk.bf16.mxu1 %vm3619_vm1, %v3618_v15 }
 0xd25   :  { %3145 = vmatprep.subr.bf16.mxu1 %v3618_v15  ;;  %v2300_v13 = vpack.c.bf16 %v2299_v12, %v2299_v12 }
 0xd2b   :  { %3136 = vmatmul.mubr.msk.bf16.vlgmr.msra.gmra.mrb[64].mxu1 %vm1606_vm4, %v2190_v8 }
 0xd2c   :  { %3146 = vmatpush3.bf16.msra.mxu1 %v2302_v10  ;;  %3147 = vmatprep.mubr.msk.bf16.mxu1 %vm3619_vm1, %v3618_v15 }
 0xd2d   :  { %3157 = vmatprep.subr.bf16.mxu1 %v3618_v15 }
 0xd33   :  { %3148 = vmatmul.mubr.msk.bf16.vlgmr.msra.gmra.mrb[68].mxu1 %vm1606_vm4, %v2300_v13 }
 0xd34   :  { %3159 = vmatprep.mubr.msk.bf16.mxu1 %vm3619_vm1, %v3618_v15 }
 0xd48   :  { %v2407_v14 = vpop.xlane.xlu1 %2406 }
 0xd49   :  { %3315 = vrcp.f32 %v2407_v14 }
 0xd4c   :  { %v2412_v52 = vpop.permute.xlu1 %2411 }
 0xd4d   :  { %3158 = vmatpush3.bf16.msra.mxu1 %v2412_v52 }
 0xd4e   :  { %3171 = vmatprep.subr.bf16.mxu1 %v3618_v15 }
 0xd53   :  { %v3316_v16 = vpop.eup %3315 }
 0xd54   :  { %v2409_v11 = vmul.f32 %v3316_v16, %v4328_v45 }
 0xd56   :  { %v2410_v17 = vpack.c.bf16 %v2409_v11, %v2409_v11 }
 0xd58   :  { %3160 = vmatmul.mubr.msk.bf16.vlgmr.msra.gmra.mrb[72].mxu1 %vm1606_vm4, %v2410_v17 }
 0xd59   :  { %3175 = vmatprep.mubr.msk.bf16.mxu1 %vm3619_vm1, %v3618_v15 }
 0xd7c   :  { %v1660_v18 = vpop.f32.mrb[44].mxu1 }
 0xd7d   :  { %1997 = vst.msk [vmem:[#allocation2] sm:$0xff] %vm344_vm6, %v1660_v18  ;;  %v3077_v19 = vpop.f32.mrb[45].mxu1 }
 0xd7e   :  { %v1663_v20 = vpop.f32.mrb[46].mxu1  ;;  %v3231_v19 = vld [vmem:[#allocation20] sm:$0xff]  }
 0xd7f   :  { %v3078_v22 = vpop.f32.mrb[47].mxu1  ;;  %3172 = vmatpush3.bf16.msra.mxu1 %v3231_v19  ;;  %v3232_v20 = vld [vmem:[#allocation20 + $0x8] sm:$0xff]  }
 0xd80   :  { %3173 = vmatprep.subr.bf16.mxu1 %v3618_v15  ;;  %v3233_v22 = vld [vmem:[%s4468_s18] sm:$0xff]  }
 0xd83   :  { %3174 = vmatpush3.bf16.msra.mxu1 %v3232_v20 }
 0xdb9   :  { %v1771_v23 = vpop.f32.mrb[48].mxu1 }
 0xdba   :  { %1999 = vrot.lane.b32.xlu0 %v1771_v23, %s3606_s21  ;;  %v3089_v24 = vpop.f32.mrb[49].mxu1  ;;  %v3234_v23 = vld [vmem:[%s4468_s18 + $0x8] sm:$0xff]  }
 0xdbb   :  { %v1774_v25 = vpop.f32.mrb[50].mxu1 }
 0xdbc   :  { %v3090_v26 = vpop.f32.mrb[51].mxu1 }
 0xdc5   :  { %v1881_v21 = vpop.f32.mrb[52].mxu1 }
 0xdc6   :  { %2004 = vrot.lane.b32.xlu0 %v1881_v21, %s3630_s8  ;;  %v3101_v32 = vpop.f32.mrb[53].mxu1 }
 0xdc7   :  { %v1884_v33 = vpop.f32.mrb[54].mxu1 }
 0xdc8   :  { %v3102_v27 = vpop.f32.mrb[55].mxu1 }
 0xdee   :  { %v1991_v34 = vpop.f32.mrb[56].mxu1 }
 0xdef   :  { %2009 = vrot.lane.b32.xlu0 %v1991_v34, %s3631_s26  ;;  %v3113_v31 = vpop.f32.mrb[57].mxu1 }
 0xdf0   :  { %v1994_v35 = vpop.f32.mrb[58].mxu1 }
 0xdf1   :  { %v3114_v36 = vpop.f32.mrb[59].mxu1 }
 0xdf6   :  { %v2120_v0 = vpop.f32.mrb[60].mxu1 }
 0xdf7   :  { %2457 = vst.msk [vmem:[#allocation2 + $0x8] sm:$0xff] %vm344_vm6, %v2120_v0  ;;  %v3125_v37 = vpop.f32.mrb[61].mxu1 }
 0xdf8   :  { %v2123_v38 = vpop.f32.mrb[62].mxu1 }
 0xdf9   :  { %v3126_v39 = vpop.f32.mrb[63].mxu1 }
 0xdfe   :  { %v2231_v1 = vpop.f32.mrb[64].mxu1 }
 0xdff   :  { %2459 = vrot.lane.b32.xlu1 %v2231_v1, %s3606_s21  ;;  %v3137_v40 = vpop.f32.mrb[65].mxu1 }
 0xe00   :  { %v2234_v41 = vpop.f32.mrb[66].mxu1  ;;  %v2839_v40 = vld [vmem:[#allocation8 + $0x2] ss:$0 sm:$0xff] }
 0xe01   :  { %v3138_v42 = vpop.f32.mrb[67].mxu1 }
 0xe06   :  { %v2341_v43 = vpop.f32.mrb[68].mxu1 }
 0xe07   :  { %2464 = vrot.lane.b32.xlu1 %v2341_v43, %s3630_s8  ;;  %v3149_v44 = vpop.f32.mrb[69].mxu1 }
 0xe08   :  { %v2344_v45 = vpop.f32.mrb[70].mxu1 }
 0xe09   :  { %v3150_v46 = vpop.f32.mrb[71].mxu1 }
 0xe0a   :  { %v2840_v46 = vld [vmem:[#allocation9 + $0x2] ss:$0 sm:$0xff] }
 0xe2b   :  { %v2451_v50 = vpop.f32.mrb[72].mxu1 }
 0xe2c   :  { %v2000_v51 = vpop.permute.xlu0 %1999  ;;  %2469 = vrot.lane.b32.xlu1 %v2451_v50, %s3631_s26  ;;  %v3161_v53 = vpop.f32.mrb[73].mxu1 }
 0xe2d   :  { %2002 = vst.msk [vmem:[#allocation2] sm:$0xff] %vm795_vm10, %v2000_v51  ;;  %v2454_v54 = vpop.f32.mrb[74].mxu1  ;;  %v3235_v53 = vld [vmem:[%s4468_s18 + $0x10] sm:$0xff]  }
 0xe2e   :  { %v3162_v55 = vpop.f32.mrb[75].mxu1  ;;  %v3236_v54 = vld [vmem:[%s4468_s18 + $0x18] sm:$0xff]  }
 0xe2f   :  { %v2841_v55 = vld [vmem:[%s4467_s17] ss:$0 sm:$0xff]  ;;  %s3632_s17 = smov [#allocation21]  }
 0xe30   :  { %s2765_s18 = sshll.u32 %s3632_s17, 4  ;;  %s2766_s18 = int_to_ptr.vmem [resolvable:$true] %s2765_s18 }
 0xe31   :  { %s3567_s24 = scalar_lea.vmem %s2766_s18, 256  ;;  %p3572_p5 = scmp.lt.s32.totalorder %s2766_s18, %s2766_s18 }
 0xe32   :  { %p3568_p4 = scmp.ne.s32.totalorder %s2766_s18, %s3567_s24  ;;  %p3573_p6 = scmp.lt.s32.totalorder %s3567_s24, %s3567_s24 }
 0xe34   :  { %p3574_p7 = por %p3573_p6, %p3572_p5 }
 0xe36   :  { %p3575_p8 = pnand %p3574_p7, %p3568_p4 }
 0xe38   :  { %v2005_v56 = vpop.permute.xlu0 %2004 }
 0xe39   :  { %2007 = vst.msk [vmem:[#allocation2] sm:$0xff] %vm801_vm11, %v2005_v56 }
 0xe61   :  { %v2010_v29 = vpop.permute.xlu0 %2009 }
 0xe62   :  { %2012 = vst.msk [vmem:[#allocation2] sm:$0xff] %vm807_vm12, %v2010_v29 }
 0xe69   :  { %v2473_v59 = vld [vmem:[#allocation2] sm:$0xff] }
 0xe71   :  { %v2460_v57 = vpop.permute.xlu1 %2459 }
 0xe72   :  { %2462 = vst.msk [vmem:[#allocation2 + $0x8] sm:$0xff] %vm795_vm10, %v2460_v57 }
 0xe79   :  { %v2465_v58 = vpop.permute.xlu1 %2464 }
 0xe7a   :  { %2467 = vst.msk [vmem:[#allocation2 + $0x8] sm:$0xff] %vm801_vm11, %v2465_v58 }
 0xe9e   :  { %v2470_v49 = vpop.permute.xlu1 %2469 }
 0xe9f   :  { %2472 = vst.msk [vmem:[#allocation2 + $0x8] sm:$0xff] %vm807_vm12, %v2470_v49 }
 0xea6   :  { %v2474_v60 = vld [vmem:[#allocation2 + $0x8] sm:$0xff] }
 0xea7   :  { %v2479_v61 = vpack.c.bf16 %v2474_v60, %v2473_v59 }
 0xea9   :  { %3168 = vmatmul.mubr.msk.bf16.vlgmr.msra.gmra.mrb[68].mxu0 %vm214_vm0, %v2479_v61 }
 0xeaa   :  { %3187 = vmatprep.mubr.msk.bf16.mxu0 %vm3619_vm1, %v3618_v15  ;;  %3180 = vmatpush3.bf16.msra.mxu0 %v3233_v22 }
 0xeab   :  { %3181 = vmatprep.subr.bf16.mxu0 %v3618_v15 }
 0xeae   :  { %3182 = vmatpush3.bf16.msra.mxu0 %v3234_v23 }
 0xeaf   :  { %3183 = vmatprep.subr.bf16.mxu0 %v3618_v15 }
 0xeb2   :  { %3184 = vmatpush3.bf16.msra.mxu0 %v3235_v53 }
 0xeb3   :  { %3185 = vmatprep.subr.bf16.mxu0 %v3618_v15  ;;  %v2845_v15 = vld [vmem:[%s4469_s19] ss:$0 sm:$0xff] }
 0xeb6   :  { %3186 = vmatpush3.bf16.msra.mxu0 %v3236_v54 }
 0xf7c   :  { %v2529_v62 = vpop.f32.mrb[68].mxu0 }
 0xf7d   :  { %v2536_v2 = vadd.f32 %v2529_v62, %v4155_v30  ;;  %v3169_v3 = vpop.f32.mrb[69].mxu0 }
 0xf7e   :  { %v2532_v4 = vpop.f32.mrb[70].mxu0 }
 0xf7f   :  { %v4395_v5 = vadd.f32 %v2838_v63, %v2536_v2  ;;  %v2537_v6 = vadd.f32 %v2532_v4, %v4158_v28  ;;  %v3170_v7 = vpop.f32.mrb[71].mxu0 }
 0xf81   :  { %v4398_v8 = vadd.f32 %v2838_v63, %v2537_v6  ;;  %v2549_v9 = vsel %vm214_vm0, %v4395_v5, 0.0 }
 0xf82   :  { %2550 = vadd.xlane.f32.xlu0 %v2549_v9 }
 0xf83   :  { %v2552_v10 = vsel %vm214_vm0, %v4398_v8, 0.0 }
 0xf84   :  { %2553 = vadd.xlane.f32.xlu1 %v2552_v10 }
0x100f   :  { %v2551_v12 = vpop.xlane.xlu0 %2550 }
0x1010   :  { %v2555_v13 = vmul.f32 0.03125, %v2551_v12 }
0x1011   :  { %v2554_v30 = vpop.xlane.xlu1 %2553 }
0x1012   :  { %v2557_v14 = vsub.f32 %v4395_v5, %v2555_v13  ;;  %v2556_v52 = vmul.f32 0.03125, %v2554_v30 }
0x1014   :  { %v2558_v16 = vsub.f32 %v4398_v8, %v2556_v52  ;;  %v2559_v28 = vmul.f32 %v2557_v14, %v2557_v14  ;;  %v2587_v42 = vmul.f32 %v2839_v40, %v2557_v14 }
0x1016   :  { %v2561_v11 = vsel %vm214_vm0, %v2559_v28, 0.0  ;;  %v2560_v17 = vmul.f32 %v2558_v16, %v2558_v16  ;;  %v2588_v43 = vmul.f32 %v2839_v40, %v2558_v16 }
0x1017   :  { %2562 = vadd.xlane.f32.xlu0 %v2561_v11 }
0x1018   :  { %v2564_v18 = vsel %vm214_vm0, %v2560_v17, 0.0 }
0x101b   :  { %2565 = vadd.xlane.f32.xlu0 %v2564_v18 }
0x10a4   :  { %v2563_v24 = vpop.xlane.xlu0 %2562 }
0x10a5   :  { %v2567_v25 = vmul.f32 0.032258064, %v2563_v24 }
0x10a7   :  { %3317 = vrsqrt.f32 %v2567_v25  ;;  %vm2571_vm1 = vcmp.eq.f32.partialorder %v2567_v25, inf  ;;  %v2574_v27 = vand.u32 2147483648, %v2567_v25  ;;  %vm2573_vm6 = vcmp.eq.f32.partialorder %v2567_v25, 0.0 }
0x10a8   :  { %v2566_v26 = vpop.xlane.xlu0 %2565 }
0x10a9   :  { %v2568_v21 = vmul.f32 0.032258064, %v2566_v26 }
0x10ab   :  { %3319 = vrsqrt.f32 %v2568_v21  ;;  %vm2578_vm7 = vcmp.eq.f32.partialorder %v2568_v21, inf  ;;  %v2581_v37 = vand.u32 2147483648, %v2568_v21  ;;  %vm2580_vm8 = vcmp.eq.f32.partialorder %v2568_v21, 0.0 }
0x10b1   :  { %v3318_v32 = vpop.eup %3317 }
0x10b2   :  { %v2570_v33 = vmul.f32 %v3318_v32, %v2567_v25 }
0x10b4   :  { %v2572_v34 = vsel %vm2571_vm1, %v2567_v25, %v2570_v33 }
0x10b5   :  { %v3320_v31 = vpop.eup %3319  ;;  %v2575_v35 = vsel %vm2573_vm6, %v2574_v27, %v2572_v34 }
0x10b6   :  { %v2589_v36 = vadd.f32 1e-06, %v2575_v35  ;;  %v2577_v0 = vmul.f32 %v3320_v31, %v2568_v21 }
0x10b8   :  { %3321 = vrcp.f32 %v2589_v36  ;;  %v2579_v38 = vsel %vm2578_vm7, %v2568_v21, %v2577_v0 }
0x10b9   :  { %v2582_v39 = vsel %vm2580_vm8, %v2581_v37, %v2579_v38 }
0x10ba   :  { %v2590_v1 = vadd.f32 1e-06, %v2582_v39 }
0x10bc   :  { %3323 = vrcp.f32 %v2590_v1 }
0x10c2   :  { %v3322_v41 = vpop.eup %3321 }
0x10c3   :  { %v2592_v44 = vmul.f32 %v3322_v41, %v2587_v42 }
0x10c5   :  { %v2599_v48 = vadd.f32 %v2840_v46, %v2592_v44 }
0x10c6   :  { %v3324_v45 = vpop.eup %3323 }
0x10c7   :  { %v2594_v47 = vmul.f32 %v3324_v45, %v2588_v43 }
0x10c9   :  { %v2600_v50 = vadd.f32 %v2840_v46, %v2594_v47 }
0x10cb   :  { %v2605_v51 = vpack.c.bf16 %v2600_v50, %v2599_v48 }
0x10cd   :  { %3176 = vmatmul.mubr.msk.bf16.vlgmr.msra.gmra.mrb[76].mxu1 %vm214_vm0, %v2605_v51 }
0x11a0   :  { %v2662_v56 = vpop.f32.mrb[76].mxu1 }
0x11a1   :  { %v2663_v29 = vadd.f32 %v2841_v55, %v2662_v56  ;;  %v3177_v57 = vpop.f32.mrb[77].mxu1 }
0x11a2   :  { %v2665_v58 = vpop.f32.mrb[78].mxu1 }
0x11a3   :  { %v2666_v49 = vadd.f32 %v2841_v55, %v2665_v58  ;;  %v3178_v59 = vpop.f32.mrb[79].mxu1  ;;  %v2669_v60 = vmax.f32 %v2663_v29, 0.0 }
0x11a5   :  { %v2670_v61 = vmax.f32 %v2666_v49, 0.0 }
0x11a7   :  { %v2679_v62 = vpack.c.bf16 %v2670_v61, %v2669_v60 }
0x11a9   :  { %3188 = vmatmul.mubr.msk.bf16.vlgmr.msra.gmra.mrb[72].mxu0 %vm2711_vm9, %v2679_v62 }
0x127c   :  { %v2749_v63 = vpop.f32.mrb[72].mxu0 }
0x127d   :  { %v2750_v2 = vadd.f32 %v2845_v15, %v2749_v63  ;;  %v3189_v3 = vpop.f32.mrb[73].mxu0 }
0x127e   :  { %v2752_v4 = vpop.f32.mrb[74].mxu0 }
0x127f   :  { %v2756_v6 = vadd.f32 %v2750_v2, %v4395_v5  ;;  %v2753_v7 = vadd.f32 %v2845_v15, %v2752_v4  ;;  %v3190_v9 = vpop.f32.mrb[75].mxu0 }
0x1281   :  { %2758 = vst.msk [vmem:[#allocation21] sm:$0xff] %vm214_vm0, %v2756_v6  ;;  %v2757_v10 = vadd.f32 %v2753_v7, %v4398_v8 }
0x1283   :  { %2759 = vst.msk [vmem:[#allocation21 + $0x8] sm:$0xff] %vm214_vm0, %v2757_v10 }
0x1284   :  { %3578 = shalt.err (!%p3575_p8)
}
0x1285   :  { %s3579_s22 = scalar_lea.hbm %s4470_s20, 256 }
0x1286   :  { %p3580_p9 = scmp.ne.s32.totalorder %s4470_s20, %s3579_s22  ;;  %p3583_p10 = scmp.lt.u32.totalorder %s3579_s22, %s4470_s20 }
0x1288   :  { %p3585_p11 = pnand %p3583_p10, %p3580_p9 }
0x128a   :  { %3588 = shalt.err (!%p3585_p11)
}
0x128b   :  { %2771 = dma.vmem_to_hbm [thread:$0]  %s2766_s18, 256, %s4470_s20, [#allocation5], %s4487_s13, %s4487_s13, %s3606_s21  }
0x128c   :  { %3601 = dma.done.wait [#allocation5], 256  }
0x128d   :  { %3602 = vsyncadd [#allocation5], 4294967040 }
0x128e   :  { %2775 = vsyncpa [#allocation4], 1 }
0x128f   :  { %2776 = vsyncpa [#allocation7], 1 }
0x1290   :  { %2777 = vsyncpa [#allocation10], 1 }
0x1291   :  { %2778 = vsyncpa [#allocation13], 1 }
0x1292   :  { %2779 = vsyncpa [#allocation16], 1 }
0x1293   :  { %2780 = vsyncpa [#allocation19], 1 }
0x1294   :  { %2781 = vsyncpa [#allocation5], 1 }

</bundles_post_ra>
